<compile_context>
chip_gen: v6e
topology: v6e:2x2x1
jax: 0.10.0
libtpu: 0.0.40
codegen_flags: <defaults>
</compile_context>

<pallas_src>
import functools
import math

import jax
import jax.numpy as jnp
from jax import lax
from jax.experimental import pallas as pl
from jax.experimental.pallas import tpu as pltpu


def _round_up(x, m):
    return (x + m - 1) // m * m


# ----------------------------------------------------------------------------
# Fused decoder-layer kernel: one grid step = Nb batch elements.
# ----------------------------------------------------------------------------
def _decoder_layer_kernel(
    # activations (per-grid-step blocks, f32)
    tgt_ref, m1_ref, m2_ref,
    # self-attention: packed QKV in-proj (E,3E) bf16, bias (1,3E) f32, W_o^T (E,E) bf16, b_o (1,E)
    sa_win_ref, sa_bin_ref, sa_wo_ref, sa_bo_ref,
    # cross-attention 1: Wq^T, bq, packed KV (E,2E), bkv, Wo^T, bo
    c1_wq_ref, c1_bq_ref, c1_wkv_ref, c1_bkv_ref, c1_wo_ref, c1_bo_ref,
    # cross-attention 2
    c2_wq_ref, c2_bq_ref, c2_wkv_ref, c2_bkv_ref, c2_wo_ref, c2_bo_ref,
    # feed-forward: W1^T (E,F), b1 (1,F), W2^T (F,E), b2 (1,E)
    f_w1_ref, f_b1_ref, f_w2_ref, f_b2_ref,
    # packed layernorm params (8, E) f32: rows = [g1,b1,g2,b2,g3,b3,g4,b4]
    ln_ref,
    # outputs
    out_ref, wself_ref, wm1_ref, wm2_ref,
    # scratch: per-head context assembled here, then one fused out-projection
    ctx_ref,
    *, nhead):
    Nb, L, E = tgt_ref.shape
    S1 = m1_ref.shape[1]
    S2 = m2_ref.shape[1]
    dh = E // nhead
    scale = 1.0 / math.sqrt(dh)
    inv_h = 1.0 / nhead
    M = Nb * L
    bf16 = jnp.bfloat16
    f32 = jnp.float32

    # Flatten batch into the matmul M dimension.
    x = tgt_ref[...].reshape(M, E).astype(f32)

    def layer_norm(y, idx):
        g = ln_ref[2 * idx:2 * idx + 1, :]          # (1, E) static slices
        b = ln_ref[2 * idx + 1:2 * idx + 2, :]
        mean = jnp.mean(y, axis=-1, keepdims=True)
        cen = y - mean
        var = jnp.mean(cen * cen, axis=-1, keepdims=True)
        return cen * lax.rsqrt(var + 1e-5) * g + b

    def attention(q3, k3, v3, wo_ref, bo_ref, w_ref):
        # q3: (Nb, L, E) f32; k3/v3: (Nb, S, E) f32.  Softmax math in f32; MXU operands bf16.
        S = k3.shape[1]
        Sp = w_ref.shape[-1]                        # lane-padded output width (multiple of 128)
        qb = (q3 * scale).astype(bf16)
        kb = k3.astype(bf16)
        vb = v3.astype(bf16)
        pad = jnp.zeros((L, Sp - S), f32) if Sp > S else None   # hoisted out of the loops
        # TODO(synk): for nhead >= 8 / long S switch the static unroll to lax.fori_loop and
        #             flash-style tiling over S to bound vreg/VMEM live ranges.
        for n in range(Nb):
            qn, kn, vn = qb[n], kb[n], vb[n]
            w_acc = jnp.zeros((L, S), f32)
            for h in range(nhead):
                sl = slice(h * dh, (h + 1) * dh)
                s = lax.dot_general(qn[:, sl], kn[:, sl],
                                    (((1,), (1,)), ((), ())),
                                    preferred_element_type=f32)             # (L, S)
                s = s - jnp.max(s, axis=-1, keepdims=True)
                e = jnp.exp(s)
                p = e * pl.reciprocal(jnp.sum(e, axis=-1, keepdims=True), approx=True)
                w_acc = w_acc + p
                # head context -> lane slice of the VMEM scratch; fused K=E out-proj below.
                ctx_ref[n, :, sl] = jnp.dot(p.astype(bf16), vn[:, sl],
                                            preferred_element_type=f32)     # (L, dh)
            w = w_acc * inv_h
            if pad is not None:
                w = jnp.concatenate([w, pad], axis=-1)   # full-width lane-dense store
            w_ref[n] = w
        ctx = ctx_ref[...].reshape(M, E).astype(bf16)
        return jnp.dot(ctx, wo_ref[...], preferred_element_type=f32) + bo_ref[...]

    # ---- norm1 + self-attention + residual ----
    x = layer_norm(x, 0)
    qkv = (jnp.dot(x.astype(bf16), sa_win_ref[...], preferred_element_type=f32)
           + sa_bin_ref[...]).reshape(Nb, L, 3 * E)
    x = x + attention(qkv[:, :, :E], qkv[:, :, E:2 * E], qkv[:, :, 2 * E:],
                      sa_wo_ref, sa_bo_ref, wself_ref)

    # ---- norm2 + cross-attention over memory1 + residual ----
    x = layer_norm(x, 1)
    q1 = (jnp.dot(x.astype(bf16), c1_wq_ref[...], preferred_element_type=f32)
          + c1_bq_ref[...]).reshape(Nb, L, E)
    kv1 = (jnp.dot(m1_ref[...].reshape(Nb * S1, E).astype(bf16), c1_wkv_ref[...],
                   preferred_element_type=f32) + c1_bkv_ref[...]).reshape(Nb, S1, 2 * E)
    x = x + attention(q1, kv1[:, :, :E], kv1[:, :, E:], c1_wo_ref, c1_bo_ref, wm1_ref)

    # ---- norm3 + cross-attention over memory2 + residual ----
    x = layer_norm(x, 2)
    q2 = (jnp.dot(x.astype(bf16), c2_wq_ref[...], preferred_element_type=f32)
          + c2_bq_ref[...]).reshape(Nb, L, E)
    kv2 = (jnp.dot(m2_ref[...].reshape(Nb * S2, E).astype(bf16), c2_wkv_ref[...],
                   preferred_element_type=f32) + c2_bkv_ref[...]).reshape(Nb, S2, 2 * E)
    x = x + attention(q2, kv2[:, :, :E], kv2[:, :, E:], c2_wo_ref, c2_bo_ref, wm2_ref)

    # ---- norm4 + feed-forward (relu) + residual ----
    x = layer_norm(x, 3)
    h = jnp.maximum(jnp.dot(x.astype(bf16), f_w1_ref[...], preferred_element_type=f32)
                    + f_b1_ref[...], 0.0)
    x = x + jnp.dot(h.astype(bf16), f_w2_ref[...], preferred_element_type=f32) + f_b2_ref[...]

    out_ref[...] = x.reshape(Nb, L, E).astype(out_ref.dtype)


# ----------------------------------------------------------------------------
# Weight packing (done ONCE, outside jit): pre-transpose / pre-concat / cast to bf16.
# ----------------------------------------------------------------------------
_WEIGHT_ORDER = ("sa_win", "sa_bin", "sa_wo", "sa_bo",
                 "c1_wq", "c1_bq", "c1_wkv", "c1_bkv", "c1_wo", "c1_bo",
                 "c2_wq", "c2_bq", "c2_wkv", "c2_bkv", "c2_wo", "c2_bo",
                 "f_w1", "f_b1", "f_w2", "f_b2", "ln")


def pack_decoder_layer_params(params):
    E = params["ln1_g"].shape[0]
    sa, c1, c2, ff = (params["self_attn"], params["cross_attn1"],
                      params["cross_attn2"], params["ffn"])
    bf, f32 = jnp.bfloat16, jnp.float32

    def row(v):
        return v.reshape(1, -1).astype(f32)

    return dict(
        sa_win=jnp.concatenate([sa["wq"], sa["wk"], sa["wv"]], axis=0).T.astype(bf),
        sa_bin=jnp.concatenate([sa["bq"], sa["bk"], sa["bv"]]).reshape(1, 3 * E).astype(f32),
        sa_wo=sa["wo"].T.astype(bf), sa_bo=row(sa["bo"]),
        c1_wq=c1["wq"].T.astype(bf), c1_bq=row(c1["bq"]),
        c1_wkv=jnp.concatenate([c1["wk"], c1["wv"]], axis=0).T.astype(bf),
        c1_bkv=jnp.concatenate([c1["bk"], c1["bv"]]).reshape(1, 2 * E).astype(f32),
        c1_wo=c1["wo"].T.astype(bf), c1_bo=row(c1["bo"]),
        c2_wq=c2["wq"].T.astype(bf), c2_bq=row(c2["bq"]),
        c2_wkv=jnp.concatenate([c2["wk"], c2["wv"]], axis=0).T.astype(bf),
        c2_bkv=jnp.concatenate([c2["bk"], c2["bv"]]).reshape(1, 2 * E).astype(f32),
        c2_wo=c2["wo"].T.astype(bf), c2_bo=row(c2["bo"]),
        f_w1=ff["w1"].T.astype(bf), f_b1=row(ff["b1"]),
        f_w2=ff["w2"].T.astype(bf), f_b2=row(ff["b2"]),
        ln=jnp.stack([params["ln1_g"], params["ln1_b"],
                      params["ln2_g"], params["ln2_b"],
                      params["ln3_g"], params["ln3_b"],
                      params["ln4_g"], params["ln4_b"]], axis=0).astype(f32),
    )


def _pick_batch_block(N, L, target_rows=256):
    """Fold batch rows into the matmul M dim (towards the MXU row width) while keeping >= 2
    grid steps when N allows it (dual-TensorCore sharding on v7x)."""
    divisors = [d for d in range(1, N + 1) if N % d == 0]
    cands = [d for d in divisors if d * L <= target_rows and N // d >= 2]
    if not cands:
        cands = [d for d in divisors if d * L <= target_rows] or [1]
    return max(cands)


def _vmem_limit_bytes(E, F, Nb, L, S1, S2, Lp, S1p, S2p):
    M = Nb * L
    weights = 2 * (12 * E * E + 2 * E * F)                 # bf16 weights (single-buffered)
    weights += 4 * (17 * E + F + 8 * E)                    # f32 biases + layernorm pack
    io = 2 * 4 * (Nb * (L + S1 + S2) * E                   # double-buffered activation inputs
                  + Nb * L * E                             # main output block
                  + Nb * L * (Lp + S1p + S2p))             # padded attention-weight outputs
    live = 4 * (M * (3 * E + F + 4 * E)                    # qkv / ffn hidden / q,out temps
                + Nb * (S1 + S2) * 2 * E                   # kv projections
                + M * E)                                   # ctx scratch
    need = weights + io + live
    return int(min(128 * 1024 * 1024, 2 * need + (16 << 20)))


# ----------------------------------------------------------------------------
# Wrapper: single pallas_call over the whole layer.
# ----------------------------------------------------------------------------
def transformer_decoder_layer(packed, tgt, memory1, memory2, nhead, batch_block=None):
    # tgt: (L, N, E)  memory1: (S1, N, E)  memory2: (S2, N, E)   (seq-first, like PyTorch)
    L, N, E = tgt.shape
    S1 = memory1.shape[0]
    S2 = memory2.shape[0]
    F = packed["f_w1"].shape[1]

    Nb = batch_block if batch_block is not None else _pick_batch_block(N, L)
    assert N % Nb == 0
    grid = (N // Nb,)

    # Lane-dense attention-weight outputs (padded last dim; sliced back in the wrapper).
    Lp, S1p, S2p = _round_up(L, 128), _round_up(S1, 128), _round_up(S2, 128)

    # Batch-first so each grid step sees Nb contiguous (seq, E) row blocks that flatten into a
    # single M = Nb*seq matmul dimension.
    # TODO(synk): these transposes are small HBM copies; reading the seq-first layout directly
    #             would need strided per-batch slices inside the kernel.
    x = jnp.transpose(tgt, (1, 0, 2))
    m1 = jnp.transpose(memory1, (1, 0, 2))
    m2 = jnp.transpose(memory2, (1, 0, 2))

    def bmap(b):
        return (b, 0, 0)

    # Grid-invariant weights: whole-array VMEM residents -> copied in once, single-buffered
    # (no per-grid-step DMA, no double buffer).
    w_spec = pl.BlockSpec(memory_space=pltpu.MemorySpace.VMEM)

    kernel = functools.partial(_decoder_layer_kernel, nhead=nhead)
    out, w_self, w_m1, w_m2 = pl.pallas_call(
        kernel,
        out_shape=(jax.ShapeDtypeStruct((N, L, E), tgt.dtype),
                   jax.ShapeDtypeStruct((N, L, Lp), jnp.float32),
                   jax.ShapeDtypeStruct((N, L, S1p), jnp.float32),
                   jax.ShapeDtypeStruct((N, L, S2p), jnp.float32)),
        grid=grid,
        in_specs=[pl.BlockSpec((Nb, L, E), bmap),
                  pl.BlockSpec((Nb, S1, E), bmap),
                  pl.BlockSpec((Nb, S2, E), bmap)] + [w_spec] * len(_WEIGHT_ORDER),
        out_specs=(pl.BlockSpec((Nb, L, E), bmap),
                   pl.BlockSpec((Nb, L, Lp), bmap),
                   pl.BlockSpec((Nb, L, S1p), bmap),
                   pl.BlockSpec((Nb, L, S2p), bmap)),
        scratch_shapes=[pltpu.VMEM((Nb, L, E), jnp.float32)],
        compiler_params=pltpu.CompilerParams(
            dimension_semantics=("parallel",),
            vmem_limit_bytes=_vmem_limit_bytes(E, F, Nb, L, S1, S2, Lp, S1p, S2p)),
    )(x, m1, m2, *[packed[k] for k in _WEIGHT_ORDER])

    return (jnp.transpose(out, (1, 0, 2)),
            w_self[..., :L], w_m1[..., :S1], w_m2[..., :S2])


# ----------------------------------------------------------------------------
# Pure-JAX f32 reference (same math, no Pallas) for the correctness check.
# ----------------------------------------------------------------------------
def _ref_ln(x, g, b):
    m = jnp.mean(x, -1, keepdims=True)
    v = jnp.mean((x - m) ** 2, -1, keepdims=True)
    return (x - m) / jnp.sqrt(v + 1e-5) * g + b


def _ref_mha(q, kv, p, nhead):
    N, L, E = q.shape
    S = kv.shape[1]
    dh = E // nhead
    qp = (q @ p["wq"].T + p["bq"]) / math.sqrt(dh)
    kp = kv @ p["wk"].T + p["bk"]
    vp = kv @ p["wv"].T + p["bv"]
    qh = qp.reshape(N, L, nhead, dh).transpose(0, 2, 1, 3)
    kh = kp.reshape(N, S, nhead, dh).transpose(0, 2, 1, 3)
    vh = vp.reshape(N, S, nhead, dh).transpose(0, 2, 1, 3)
    s = jnp.einsum("nhld,nhsd->nhls", qh, kh)
    pm = jax.nn.softmax(s, axis=-1)
    ctx = jnp.einsum("nhls,nhsd->nhld", pm, vh).transpose(0, 2, 1, 3).reshape(N, L, E)
    return ctx @ p["wo"].T + p["bo"], jnp.mean(pm, axis=1)


def _ref_forward(params, tgt, m1, m2, nhead):
    x = jnp.transpose(tgt, (1, 0, 2))
    m1 = jnp.transpose(m1, (1, 0, 2))
    m2 = jnp.transpose(m2, (1, 0, 2))
    x = _ref_ln(x, params["ln1_g"], params["ln1_b"])
    sa, ws = _ref_mha(x, x, params["self_attn"], nhead)
    x = x + sa
    x = _ref_ln(x, params["ln2_g"], params["ln2_b"])
    c1, w1 = _ref_mha(x, m1, params["cross_attn1"], nhead)
    x = x + c1
    x = _ref_ln(x, params["ln3_g"], params["ln3_b"])
    c2, w2 = _ref_mha(x, m2, params["cross_attn2"], nhead)
    x = x + c2
    x = _ref_ln(x, params["ln4_g"], params["ln4_b"])
    h = jnp.maximum(x @ params["ffn"]["w1"].T + params["ffn"]["b1"], 0.0)
    x = x + (h @ params["ffn"]["w2"].T + params["ffn"]["b2"])
    return jnp.transpose(x, (1, 0, 2)), ws, w1, w2


# ----------------------------------------------------------------------------
# Parameter construction (deterministic, synthetic)
# ----------------------------------------------------------------------------
def make_params(key, d_model, nhead, dim_feedforward):
    ks = iter(jax.random.split(key, 32))

    def mat(shape, scale=0.1):
        return (scale * jax.random.normal(next(ks), shape)).astype(jnp.float32)

    def attn_params():
        return {
            "wq": mat((d_model, d_model)), "wk": mat((d_model, d_model)),
            "wv": mat((d_model, d_model)), "wo": mat((d_model, d_model)),
            "bq": mat((d_model,)), "bk": mat((d_model,)),
            "bv": mat((d_model,)), "bo": mat((d_model,)),
        }

    return {
        "self_attn": attn_params(),
        "cross_attn1": attn_params(),
        "cross_attn2": attn_params(),
        "ffn": {
            "w1": mat((dim_feedforward, d_model)), "b1": mat((dim_feedforward,)),
            "w2": mat((d_model, dim_feedforward)), "b2": mat((d_model,)),
        },
        "ln1_g": jnp.ones((d_model,), jnp.float32), "ln1_b": jnp.zeros((d_model,), jnp.float32),
        "ln2_g": jnp.ones((d_model,), jnp.float32), "ln2_b": jnp.zeros((d_model,), jnp.float32),
        "ln3_g": jnp.ones((d_model,), jnp.float32), "ln3_b": jnp.zeros((d_model,), jnp.float32),
        "ln4_g": jnp.ones((d_model,), jnp.float32), "ln4_b": jnp.zeros((d_model,), jnp.float32),
    }


# ----------------------------------------------------------------------------
if __name__ == "__main__":
    d_model, nhead, dim_feedforward = 32, 4, 64
    L, S1, S2, N = 8, 10, 12, 4

    key = jax.random.PRNGKey(0)
    kp, kt, k1, k2 = jax.random.split(key, 4)
    params = make_params(kp, d_model, nhead, dim_feedforward)
    tgt = jax.random.normal(kt, (L, N, d_model), jnp.float32)
    memory1 = jax.random.normal(k1, (S1, N, d_model), jnp.float32)
    memory2 = jax.random.normal(k2, (S2, N, d_model), jnp.float32)

    packed = pack_decoder_layer_params(params)          # one-time packing, outside jit
    fwd = jax.jit(functools.partial(transformer_decoder_layer, nhead=nhead))
    out, w_self, w_mem1, w_mem2 = fwd(packed, tgt, memory1, memory2)
    jax.block_until_ready((out, w_self, w_mem1, w_mem2))

    # Cross-check against a pure-JAX f32 reference.  Kernel feeds the MXU bf16 operands, so
    # tolerances are loosened accordingly (softmax/LayerNorm math stays f32 in the kernel).
    r_out, r_ws, r_w1, r_w2 = _ref_forward(params, tgt, memory1, memory2, nhead)
    assert out.shape == (L, N, d_model)
    assert w_self.shape == (N, L, L) and w_mem1.shape == (N, L, S1) and w_mem2.shape == (N, L, S2)
    assert jnp.max(jnp.abs(out - r_out)) < 5e-2, "output mismatch vs reference"
    for a, b in ((w_self, r_ws), (w_mem1, r_w1), (w_mem2, r_w2)):
        assert jnp.max(jnp.abs(a - b)) < 1e-2, "attention-weight mismatch vs reference"

    print("KERNEL_OK")
</pallas_src>

<mosaic_0001>
module attributes {stable_mosaic.version = 11 : i64} {
  func.func @_decoder_layer_kernel(%arg0: i32, %arg1: memref<2x8x32xf32, #tpu.memory_space<vmem>>, %arg2: memref<2x10x32xf32, #tpu.memory_space<vmem>>, %arg3: memref<2x12x32xf32, #tpu.memory_space<vmem>>, %arg4: memref<32x96xbf16, #tpu.memory_space<vmem>>, %arg5: memref<1x96xf32, #tpu.memory_space<vmem>>, %arg6: memref<32x32xbf16, #tpu.memory_space<vmem>>, %arg7: memref<1x32xf32, #tpu.memory_space<vmem>>, %arg8: memref<32x32xbf16, #tpu.memory_space<vmem>>, %arg9: memref<1x32xf32, #tpu.memory_space<vmem>>, %arg10: memref<32x64xbf16, #tpu.memory_space<vmem>>, %arg11: memref<1x64xf32, #tpu.memory_space<vmem>>, %arg12: memref<32x32xbf16, #tpu.memory_space<vmem>>, %arg13: memref<1x32xf32, #tpu.memory_space<vmem>>, %arg14: memref<32x32xbf16, #tpu.memory_space<vmem>>, %arg15: memref<1x32xf32, #tpu.memory_space<vmem>>, %arg16: memref<32x64xbf16, #tpu.memory_space<vmem>>, %arg17: memref<1x64xf32, #tpu.memory_space<vmem>>, %arg18: memref<32x32xbf16, #tpu.memory_space<vmem>>, %arg19: memref<1x32xf32, #tpu.memory_space<vmem>>, %arg20: memref<32x64xbf16, #tpu.memory_space<vmem>>, %arg21: memref<1x64xf32, #tpu.memory_space<vmem>>, %arg22: memref<64x32xbf16, #tpu.memory_space<vmem>>, %arg23: memref<1x32xf32, #tpu.memory_space<vmem>>, %arg24: memref<8x32xf32, #tpu.memory_space<vmem>>, %arg25: memref<2x8x32xf32, #tpu.memory_space<vmem>>, %arg26: memref<2x8x128xf32, #tpu.memory_space<vmem>>, %arg27: memref<2x8x128xf32, #tpu.memory_space<vmem>>, %arg28: memref<2x8x128xf32, #tpu.memory_space<vmem>>, %arg29: memref<2x8x32xf32, #tpu.memory_space<vmem>>) attributes {dimension_semantics = [#tpu.dimension_semantics<parallel>], iteration_bounds = array<i64: 2>, scalar_prefetch = 0 : i64, scratch_operands = 1 : i64, tpu.core_type = #tpu.core_type<tc>, window_params = [{transform_indices = @transform_0, window_bounds = array<i64: 2, 8, 32>}, {transform_indices = @transform_1, window_bounds = array<i64: 2, 10, 32>}, {transform_indices = @transform_2, window_bounds = array<i64: 2, 12, 32>}, {pipeline_mode = #tpu.pipeline_mode<synchronous>, transform_indices = @transform_3, window_bounds = array<i64: 32, 96>}, {pipeline_mode = #tpu.pipeline_mode<synchronous>, transform_indices = @transform_4, window_bounds = array<i64: 1, 96>}, {pipeline_mode = #tpu.pipeline_mode<synchronous>, transform_indices = @transform_5, window_bounds = array<i64: 32, 32>}, {pipeline_mode = #tpu.pipeline_mode<synchronous>, transform_indices = @transform_6, window_bounds = array<i64: 1, 32>}, {pipeline_mode = #tpu.pipeline_mode<synchronous>, transform_indices = @transform_7, window_bounds = array<i64: 32, 32>}, {pipeline_mode = #tpu.pipeline_mode<synchronous>, transform_indices = @transform_8, window_bounds = array<i64: 1, 32>}, {pipeline_mode = #tpu.pipeline_mode<synchronous>, transform_indices = @transform_9, window_bounds = array<i64: 32, 64>}, {pipeline_mode = #tpu.pipeline_mode<synchronous>, transform_indices = @transform_10, window_bounds = array<i64: 1, 64>}, {pipeline_mode = #tpu.pipeline_mode<synchronous>, transform_indices = @transform_11, window_bounds = array<i64: 32, 32>}, {pipeline_mode = #tpu.pipeline_mode<synchronous>, transform_indices = @transform_12, window_bounds = array<i64: 1, 32>}, {pipeline_mode = #tpu.pipeline_mode<synchronous>, transform_indices = @transform_13, window_bounds = array<i64: 32, 32>}, {pipeline_mode = #tpu.pipeline_mode<synchronous>, transform_indices = @transform_14, window_bounds = array<i64: 1, 32>}, {pipeline_mode = #tpu.pipeline_mode<synchronous>, transform_indices = @transform_15, window_bounds = array<i64: 32, 64>}, {pipeline_mode = #tpu.pipeline_mode<synchronous>, transform_indices = @transform_16, window_bounds = array<i64: 1, 64>}, {pipeline_mode = #tpu.pipeline_mode<synchronous>, transform_indices = @transform_17, window_bounds = array<i64: 32, 32>}, {pipeline_mode = #tpu.pipeline_mode<synchronous>, transform_indices = @transform_18, window_bounds = array<i64: 1, 32>}, {pipeline_mode = #tpu.pipeline_mode<synchronous>, transform_indices = @transform_19, window_bounds = array<i64: 32, 64>}, {pipeline_mode = #tpu.pipeline_mode<synchronous>, transform_indices = @transform_20, window_bounds = array<i64: 1, 64>}, {pipeline_mode = #tpu.pipeline_mode<synchronous>, transform_indices = @transform_21, window_bounds = array<i64: 64, 32>}, {pipeline_mode = #tpu.pipeline_mode<synchronous>, transform_indices = @transform_22, window_bounds = array<i64: 1, 32>}, {pipeline_mode = #tpu.pipeline_mode<synchronous>, transform_indices = @transform_23, window_bounds = array<i64: 8, 32>}, {transform_indices = @transform_24, window_bounds = array<i64: 2, 8, 32>}, {transform_indices = @transform_25, window_bounds = array<i64: 2, 8, 128>}, {transform_indices = @transform_26, window_bounds = array<i64: 2, 8, 128>}, {transform_indices = @transform_27, window_bounds = array<i64: 2, 8, 128>}]} {
    %c0 = arith.constant 0 : index
    %c0_0 = arith.constant 0 : index
    %c0_1 = arith.constant 0 : index
    %0 = vector.load %arg1[%c0, %c0_0, %c0_1] : memref<2x8x32xf32, #tpu.memory_space<vmem>>, vector<2x8x32xf32>
    %1 = vector.shape_cast %0 : vector<2x8x32xf32> to vector<16x32xf32>
    %c0_2 = arith.constant 0 : index
    %c0_3 = arith.constant 0 : index
    %2 = vector.load %arg24[%c0_2, %c0_3] : memref<8x32xf32, #tpu.memory_space<vmem>>, vector<1x32xf32>
    %c1 = arith.constant 1 : index
    %c0_4 = arith.constant 0 : index
    %3 = vector.load %arg24[%c1, %c0_4] : memref<8x32xf32, #tpu.memory_space<vmem>>, vector<1x32xf32>
    %cst = arith.constant dense<0.000000e+00> : vector<16xf32>
    %4 = vector.multi_reduction <add>, %1, %cst [1] : vector<16x32xf32> to vector<16xf32>
    %5 = vector.shape_cast %4 : vector<16xf32> to vector<16x1xf32>
    %cst_5 = arith.constant 3.200000e+01 : f32
    %6 = vector.broadcast %cst_5 : f32 to vector<16x1xf32>
    %7 = arith.divf %5, %6 : vector<16x1xf32>
    %8 = vector.broadcast %7 : vector<16x1xf32> to vector<16x32xf32>
    %9 = arith.subf %1, %8 : vector<16x32xf32>
    %10 = arith.mulf %9, %9 : vector<16x32xf32>
    %cst_6 = arith.constant dense<0.000000e+00> : vector<16xf32>
    %11 = vector.multi_reduction <add>, %10, %cst_6 [1] : vector<16x32xf32> to vector<16xf32>
    %12 = vector.shape_cast %11 : vector<16xf32> to vector<16x1xf32>
    %cst_7 = arith.constant 3.200000e+01 : f32
    %13 = vector.broadcast %cst_7 : f32 to vector<16x1xf32>
    %14 = arith.divf %12, %13 : vector<16x1xf32>
    %cst_8 = arith.constant 9.99999974E-6 : f32
    %15 = vector.broadcast %cst_8 : f32 to vector<16x1xf32>
    %16 = arith.addf %14, %15 : vector<16x1xf32>
    %17 = math.rsqrt %16 : vector<16x1xf32>
    %18 = vector.broadcast %17 : vector<16x1xf32> to vector<16x32xf32>
    %19 = arith.mulf %9, %18 : vector<16x32xf32>
    %20 = vector.broadcast %2 : vector<1x32xf32> to vector<16x32xf32>
    %21 = arith.mulf %19, %20 : vector<16x32xf32>
    %22 = vector.broadcast %3 : vector<1x32xf32> to vector<16x32xf32>
    %23 = arith.addf %21, %22 : vector<16x32xf32>
    %24 = arith.truncf %23 : vector<16x32xf32> to vector<16x32xbf16>
    %c0_9 = arith.constant 0 : index
    %c0_10 = arith.constant 0 : index
    %25 = vector.load %arg4[%c0_9, %c0_10] : memref<32x96xbf16, #tpu.memory_space<vmem>>, vector<32x96xbf16>
    %cst_11 = arith.constant dense<0.000000e+00> : vector<16x96xf32>
    %26 = tpu.matmul %24, %25, %cst_11 {dimension_numbers = #tpu.dot_dimension_numbers<[1], [0], [0], [1], [0, 0, 1, 1], [], []>} : vector<16x32xbf16>, vector<32x96xbf16>, vector<16x96xf32> -> vector<16x96xf32>
    %c0_12 = arith.constant 0 : index
    %c0_13 = arith.constant 0 : index
    %27 = vector.load %arg5[%c0_12, %c0_13] : memref<1x96xf32, #tpu.memory_space<vmem>>, vector<1x96xf32>
    %28 = vector.broadcast %27 : vector<1x96xf32> to vector<16x96xf32>
    %29 = arith.addf %26, %28 : vector<16x96xf32>
    %30 = vector.shape_cast %29 : vector<16x96xf32> to vector<2x8x96xf32>
    %31 = vector.extract_strided_slice %30 {offsets = [0, 0, 0], sizes = [2, 8, 32], strides = [1, 1, 1]} : vector<2x8x96xf32> to vector<2x8x32xf32>
    %32 = vector.extract_strided_slice %30 {offsets = [0, 0, 32], sizes = [2, 8, 32], strides = [1, 1, 1]} : vector<2x8x96xf32> to vector<2x8x32xf32>
    %33 = vector.extract_strided_slice %30 {offsets = [0, 0, 64], sizes = [2, 8, 32], strides = [1, 1, 1]} : vector<2x8x96xf32> to vector<2x8x32xf32>
    %cst_14 = arith.constant 0.353553385 : f32
    %34 = vector.broadcast %cst_14 : f32 to vector<2x8x32xf32>
    %35 = arith.mulf %31, %34 : vector<2x8x32xf32>
    %36 = arith.truncf %35 : vector<2x8x32xf32> to vector<2x8x32xbf16>
    %37 = arith.truncf %32 : vector<2x8x32xf32> to vector<2x8x32xbf16>
    %38 = arith.truncf %33 : vector<2x8x32xf32> to vector<2x8x32xbf16>
    %cst_15 = arith.constant 0.000000e+00 : f32
    %39 = vector.broadcast %cst_15 : f32 to vector<8x120xf32>
    %40 = vector.extract_strided_slice %36 {offsets = [0, 0, 0], sizes = [1, 8, 32], strides = [1, 1, 1]} : vector<2x8x32xbf16> to vector<1x8x32xbf16>
    %41 = vector.shape_cast %40 : vector<1x8x32xbf16> to vector<8x32xbf16>
    %42 = vector.extract_strided_slice %37 {offsets = [0, 0, 0], sizes = [1, 8, 32], strides = [1, 1, 1]} : vector<2x8x32xbf16> to vector<1x8x32xbf16>
    %43 = vector.shape_cast %42 : vector<1x8x32xbf16> to vector<8x32xbf16>
    %44 = vector.extract_strided_slice %38 {offsets = [0, 0, 0], sizes = [1, 8, 32], strides = [1, 1, 1]} : vector<2x8x32xbf16> to vector<1x8x32xbf16>
    %45 = vector.shape_cast %44 : vector<1x8x32xbf16> to vector<8x32xbf16>
    %cst_16 = arith.constant 0.000000e+00 : f32
    %46 = vector.broadcast %cst_16 : f32 to vector<8x8xf32>
    %47 = vector.extract_strided_slice %41 {offsets = [0, 0], sizes = [8, 8], strides = [1, 1]} : vector<8x32xbf16> to vector<8x8xbf16>
    %48 = vector.extract_strided_slice %43 {offsets = [0, 0], sizes = [8, 8], strides = [1, 1]} : vector<8x32xbf16> to vector<8x8xbf16>
    %cst_17 = arith.constant dense<0.000000e+00> : vector<8x8xf32>
    %49 = tpu.matmul %47, %48, %cst_17 {dimension_numbers = #tpu.dot_dimension_numbers<[1], [1], [0], [0], [0, 0, 1, 0], [], []>} : vector<8x8xbf16>, vector<8x8xbf16>, vector<8x8xf32> -> vector<8x8xf32>
    %cst_18 = arith.constant dense<0xFF800000> : vector<8xf32>
    %50 = vector.multi_reduction <maximumf>, %49, %cst_18 [1] : vector<8x8xf32> to vector<8xf32>
    %51 = vector.shape_cast %50 : vector<8xf32> to vector<8x1xf32>
    %52 = vector.broadcast %51 : vector<8x1xf32> to vector<8x8xf32>
    %53 = arith.subf %49, %52 : vector<8x8xf32>
    %54 = math.exp %53 : vector<8x8xf32>
    %cst_19 = arith.constant dense<0.000000e+00> : vector<8xf32>
    %55 = vector.multi_reduction <add>, %54, %cst_19 [1] : vector<8x8xf32> to vector<8xf32>
    %56 = vector.shape_cast %55 : vector<8xf32> to vector<8x1xf32>
    %57 = tpu.reciprocal %56 {approx = true} : vector<8x1xf32> -> vector<8x1xf32>
    %58 = vector.broadcast %57 : vector<8x1xf32> to vector<8x8xf32>
    %59 = arith.mulf %54, %58 : vector<8x8xf32>
    %60 = arith.addf %46, %59 : vector<8x8xf32>
    %61 = arith.truncf %59 : vector<8x8xf32> to vector<8x8xbf16>
    %62 = vector.extract_strided_slice %45 {offsets = [0, 0], sizes = [8, 8], strides = [1, 1]} : vector<8x32xbf16> to vector<8x8xbf16>
    %cst_20 = arith.constant dense<0.000000e+00> : vector<8x8xf32>
    %63 = tpu.matmul %61, %62, %cst_20 {dimension_numbers = #tpu.dot_dimension_numbers<[1], [0], [0], [1], [0, 0, 1, 1], [], []>} : vector<8x8xbf16>, vector<8x8xbf16>, vector<8x8xf32> -> vector<8x8xf32>
    %c0_21 = arith.constant 0 : index
    %c0_22 = arith.constant 0 : index
    %c0_23 = arith.constant 0 : index
    %64 = vector.load %arg29[%c0_21, %c0_22, %c0_23] : memref<2x8x32xf32, #tpu.memory_space<vmem>>, vector<1x8x8xf32>
    %65 = vector.shape_cast %64 : vector<1x8x8xf32> to vector<8x8xf32>
    %66 = vector.shape_cast %63 : vector<8x8xf32> to vector<1x8x8xf32>
    tpu.vector_store %arg29[%c0_21, %c0_22, %c0_23], %66 {strides = array<i32>} : memref<2x8x32xf32, #tpu.memory_space<vmem>>, vector<1x8x8xf32>,
    %67 = vector.extract_strided_slice %41 {offsets = [0, 8], sizes = [8, 8], strides = [1, 1]} : vector<8x32xbf16> to vector<8x8xbf16>
    %68 = vector.extract_strided_slice %43 {offsets = [0, 8], sizes = [8, 8], strides = [1, 1]} : vector<8x32xbf16> to vector<8x8xbf16>
    %cst_24 = arith.constant dense<0.000000e+00> : vector<8x8xf32>
    %69 = tpu.matmul %67, %68, %cst_24 {dimension_numbers = #tpu.dot_dimension_numbers<[1], [1], [0], [0], [0, 0, 1, 0], [], []>} : vector<8x8xbf16>, vector<8x8xbf16>, vector<8x8xf32> -> vector<8x8xf32>
    %cst_25 = arith.constant dense<0xFF800000> : vector<8xf32>
    %70 = vector.multi_reduction <maximumf>, %69, %cst_25 [1] : vector<8x8xf32> to vector<8xf32>
    %71 = vector.shape_cast %70 : vector<8xf32> to vector<8x1xf32>
    %72 = vector.broadcast %71 : vector<8x1xf32> to vector<8x8xf32>
    %73 = arith.subf %69, %72 : vector<8x8xf32>
    %74 = math.exp %73 : vector<8x8xf32>
    %cst_26 = arith.constant dense<0.000000e+00> : vector<8xf32>
    %75 = vector.multi_reduction <add>, %74, %cst_26 [1] : vector<8x8xf32> to vector<8xf32>
    %76 = vector.shape_cast %75 : vector<8xf32> to vector<8x1xf32>
    %77 = tpu.reciprocal %76 {approx = true} : vector<8x1xf32> -> vector<8x1xf32>
    %78 = vector.broadcast %77 : vector<8x1xf32> to vector<8x8xf32>
    %79 = arith.mulf %74, %78 : vector<8x8xf32>
    %80 = arith.addf %60, %79 : vector<8x8xf32>
    %81 = arith.truncf %79 : vector<8x8xf32> to vector<8x8xbf16>
    %82 = vector.extract_strided_slice %45 {offsets = [0, 8], sizes = [8, 8], strides = [1, 1]} : vector<8x32xbf16> to vector<8x8xbf16>
    %cst_27 = arith.constant dense<0.000000e+00> : vector<8x8xf32>
    %83 = tpu.matmul %81, %82, %cst_27 {dimension_numbers = #tpu.dot_dimension_numbers<[1], [0], [0], [1], [0, 0, 1, 1], [], []>} : vector<8x8xbf16>, vector<8x8xbf16>, vector<8x8xf32> -> vector<8x8xf32>
    %c0_28 = arith.constant 0 : index
    %c0_29 = arith.constant 0 : index
    %c8 = arith.constant 8 : index
    %84 = vector.load %arg29[%c0_28, %c0_29, %c8] : memref<2x8x32xf32, #tpu.memory_space<vmem>>, vector<1x8x8xf32>
    %85 = vector.shape_cast %84 : vector<1x8x8xf32> to vector<8x8xf32>
    %86 = vector.shape_cast %83 : vector<8x8xf32> to vector<1x8x8xf32>
    tpu.vector_store %arg29[%c0_28, %c0_29, %c8], %86 {strides = array<i32>} : memref<2x8x32xf32, #tpu.memory_space<vmem>>, vector<1x8x8xf32>,
    %87 = vector.extract_strided_slice %41 {offsets = [0, 16], sizes = [8, 8], strides = [1, 1]} : vector<8x32xbf16> to vector<8x8xbf16>
    %88 = vector.extract_strided_slice %43 {offsets = [0, 16], sizes = [8, 8], strides = [1, 1]} : vector<8x32xbf16> to vector<8x8xbf16>
    %cst_30 = arith.constant dense<0.000000e+00> : vector<8x8xf32>
    %89 = tpu.matmul %87, %88, %cst_30 {dimension_numbers = #tpu.dot_dimension_numbers<[1], [1], [0], [0], [0, 0, 1, 0], [], []>} : vector<8x8xbf16>, vector<8x8xbf16>, vector<8x8xf32> -> vector<8x8xf32>
    %cst_31 = arith.constant dense<0xFF800000> : vector<8xf32>
    %90 = vector.multi_reduction <maximumf>, %89, %cst_31 [1] : vector<8x8xf32> to vector<8xf32>
    %91 = vector.shape_cast %90 : vector<8xf32> to vector<8x1xf32>
    %92 = vector.broadcast %91 : vector<8x1xf32> to vector<8x8xf32>
    %93 = arith.subf %89, %92 : vector<8x8xf32>
    %94 = math.exp %93 : vector<8x8xf32>
    %cst_32 = arith.constant dense<0.000000e+00> : vector<8xf32>
    %95 = vector.multi_reduction <add>, %94, %cst_32 [1] : vector<8x8xf32> to vector<8xf32>
    %96 = vector.shape_cast %95 : vector<8xf32> to vector<8x1xf32>
    %97 = tpu.reciprocal %96 {approx = true} : vector<8x1xf32> -> vector<8x1xf32>
    %98 = vector.broadcast %97 : vector<8x1xf32> to vector<8x8xf32>
    %99 = arith.mulf %94, %98 : vector<8x8xf32>
    %100 = arith.addf %80, %99 : vector<8x8xf32>
    %101 = arith.truncf %99 : vector<8x8xf32> to vector<8x8xbf16>
    %102 = vector.extract_strided_slice %45 {offsets = [0, 16], sizes = [8, 8], strides = [1, 1]} : vector<8x32xbf16> to vector<8x8xbf16>
    %cst_33 = arith.constant dense<0.000000e+00> : vector<8x8xf32>
    %103 = tpu.matmul %101, %102, %cst_33 {dimension_numbers = #tpu.dot_dimension_numbers<[1], [0], [0], [1], [0, 0, 1, 1], [], []>} : vector<8x8xbf16>, vector<8x8xbf16>, vector<8x8xf32> -> vector<8x8xf32>
    %c0_34 = arith.constant 0 : index
    %c0_35 = arith.constant 0 : index
    %c16 = arith.constant 16 : index
    %104 = vector.load %arg29[%c0_34, %c0_35, %c16] : memref<2x8x32xf32, #tpu.memory_space<vmem>>, vector<1x8x8xf32>
    %105 = vector.shape_cast %104 : vector<1x8x8xf32> to vector<8x8xf32>
    %106 = vector.shape_cast %103 : vector<8x8xf32> to vector<1x8x8xf32>
    tpu.vector_store %arg29[%c0_34, %c0_35, %c16], %106 {strides = array<i32>} : memref<2x8x32xf32, #tpu.memory_space<vmem>>, vector<1x8x8xf32>,
    %107 = vector.extract_strided_slice %41 {offsets = [0, 24], sizes = [8, 8], strides = [1, 1]} : vector<8x32xbf16> to vector<8x8xbf16>
    %108 = vector.extract_strided_slice %43 {offsets = [0, 24], sizes = [8, 8], strides = [1, 1]} : vector<8x32xbf16> to vector<8x8xbf16>
    %cst_36 = arith.constant dense<0.000000e+00> : vector<8x8xf32>
    %109 = tpu.matmul %107, %108, %cst_36 {dimension_numbers = #tpu.dot_dimension_numbers<[1], [1], [0], [0], [0, 0, 1, 0], [], []>} : vector<8x8xbf16>, vector<8x8xbf16>, vector<8x8xf32> -> vector<8x8xf32>
    %cst_37 = arith.constant dense<0xFF800000> : vector<8xf32>
    %110 = vector.multi_reduction <maximumf>, %109, %cst_37 [1] : vector<8x8xf32> to vector<8xf32>
    %111 = vector.shape_cast %110 : vector<8xf32> to vector<8x1xf32>
    %112 = vector.broadcast %111 : vector<8x1xf32> to vector<8x8xf32>
    %113 = arith.subf %109, %112 : vector<8x8xf32>
    %114 = math.exp %113 : vector<8x8xf32>
    %cst_38 = arith.constant dense<0.000000e+00> : vector<8xf32>
    %115 = vector.multi_reduction <add>, %114, %cst_38 [1] : vector<8x8xf32> to vector<8xf32>
    %116 = vector.shape_cast %115 : vector<8xf32> to vector<8x1xf32>
    %117 = tpu.reciprocal %116 {approx = true} : vector<8x1xf32> -> vector<8x1xf32>
    %118 = vector.broadcast %117 : vector<8x1xf32> to vector<8x8xf32>
    %119 = arith.mulf %114, %118 : vector<8x8xf32>
    %120 = arith.addf %100, %119 : vector<8x8xf32>
    %121 = arith.truncf %119 : vector<8x8xf32> to vector<8x8xbf16>
    %122 = vector.extract_strided_slice %45 {offsets = [0, 24], sizes = [8, 8], strides = [1, 1]} : vector<8x32xbf16> to vector<8x8xbf16>
    %cst_39 = arith.constant dense<0.000000e+00> : vector<8x8xf32>
    %123 = tpu.matmul %121, %122, %cst_39 {dimension_numbers = #tpu.dot_dimension_numbers<[1], [0], [0], [1], [0, 0, 1, 1], [], []>} : vector<8x8xbf16>, vector<8x8xbf16>, vector<8x8xf32> -> vector<8x8xf32>
    %c0_40 = arith.constant 0 : index
    %c0_41 = arith.constant 0 : index
    %c24 = arith.constant 24 : index
    %124 = vector.load %arg29[%c0_40, %c0_41, %c24] : memref<2x8x32xf32, #tpu.memory_space<vmem>>, vector<1x8x8xf32>
    %125 = vector.shape_cast %124 : vector<1x8x8xf32> to vector<8x8xf32>
    %126 = vector.shape_cast %123 : vector<8x8xf32> to vector<1x8x8xf32>
    tpu.vector_store %arg29[%c0_40, %c0_41, %c24], %126 {strides = array<i32>} : memref<2x8x32xf32, #tpu.memory_space<vmem>>, vector<1x8x8xf32>,
    %cst_42 = arith.constant 2.500000e-01 : f32
    %127 = vector.broadcast %cst_42 : f32 to vector<8x8xf32>
    %128 = arith.mulf %120, %127 : vector<8x8xf32>
    %129 = tpu.concatenate %128, %39 in 1 : vector<8x8xf32>, vector<8x120xf32> -> vector<8x128xf32>
    %c0_43 = arith.constant 0 : index
    %c0_44 = arith.constant 0 : index
    %c0_45 = arith.constant 0 : index
    %130 = vector.load %arg26[%c0_43, %c0_44, %c0_45] : memref<2x8x128xf32, #tpu.memory_space<vmem>>, vector<1x8x128xf32>
    %131 = vector.shape_cast %130 : vector<1x8x128xf32> to vector<8x128xf32>
    %132 = vector.shape_cast %129 : vector<8x128xf32> to vector<1x8x128xf32>
    tpu.vector_store %arg26[%c0_43, %c0_44, %c0_45], %132 {strides = array<i32>} : memref<2x8x128xf32, #tpu.memory_space<vmem>>, vector<1x8x128xf32>,
    %133 = vector.extract_strided_slice %36 {offsets = [1, 0, 0], sizes = [1, 8, 32], strides = [1, 1, 1]} : vector<2x8x32xbf16> to vector<1x8x32xbf16>
    %134 = vector.shape_cast %133 : vector<1x8x32xbf16> to vector<8x32xbf16>
    %135 = vector.extract_strided_slice %37 {offsets = [1, 0, 0], sizes = [1, 8, 32], strides = [1, 1, 1]} : vector<2x8x32xbf16> to vector<1x8x32xbf16>
    %136 = vector.shape_cast %135 : vector<1x8x32xbf16> to vector<8x32xbf16>
    %137 = vector.extract_strided_slice %38 {offsets = [1, 0, 0], sizes = [1, 8, 32], strides = [1, 1, 1]} : vector<2x8x32xbf16> to vector<1x8x32xbf16>
    %138 = vector.shape_cast %137 : vector<1x8x32xbf16> to vector<8x32xbf16>
    %cst_46 = arith.constant 0.000000e+00 : f32
    %139 = vector.broadcast %cst_46 : f32 to vector<8x8xf32>
    %140 = vector.extract_strided_slice %134 {offsets = [0, 0], sizes = [8, 8], strides = [1, 1]} : vector<8x32xbf16> to vector<8x8xbf16>
    %141 = vector.extract_strided_slice %136 {offsets = [0, 0], sizes = [8, 8], strides = [1, 1]} : vector<8x32xbf16> to vector<8x8xbf16>
    %cst_47 = arith.constant dense<0.000000e+00> : vector<8x8xf32>
    %142 = tpu.matmul %140, %141, %cst_47 {dimension_numbers = #tpu.dot_dimension_numbers<[1], [1], [0], [0], [0, 0, 1, 0], [], []>} : vector<8x8xbf16>, vector<8x8xbf16>, vector<8x8xf32> -> vector<8x8xf32>
    %cst_48 = arith.constant dense<0xFF800000> : vector<8xf32>
    %143 = vector.multi_reduction <maximumf>, %142, %cst_48 [1] : vector<8x8xf32> to vector<8xf32>
    %144 = vector.shape_cast %143 : vector<8xf32> to vector<8x1xf32>
    %145 = vector.broadcast %144 : vector<8x1xf32> to vector<8x8xf32>
    %146 = arith.subf %142, %145 : vector<8x8xf32>
    %147 = math.exp %146 : vector<8x8xf32>
    %cst_49 = arith.constant dense<0.000000e+00> : vector<8xf32>
    %148 = vector.multi_reduction <add>, %147, %cst_49 [1] : vector<8x8xf32> to vector<8xf32>
    %149 = vector.shape_cast %148 : vector<8xf32> to vector<8x1xf32>
    %150 = tpu.reciprocal %149 {approx = true} : vector<8x1xf32> -> vector<8x1xf32>
    %151 = vector.broadcast %150 : vector<8x1xf32> to vector<8x8xf32>
    %152 = arith.mulf %147, %151 : vector<8x8xf32>
    %153 = arith.addf %139, %152 : vector<8x8xf32>
    %154 = arith.truncf %152 : vector<8x8xf32> to vector<8x8xbf16>
    %155 = vector.extract_strided_slice %138 {offsets = [0, 0], sizes = [8, 8], strides = [1, 1]} : vector<8x32xbf16> to vector<8x8xbf16>
    %cst_50 = arith.constant dense<0.000000e+00> : vector<8x8xf32>
    %156 = tpu.matmul %154, %155, %cst_50 {dimension_numbers = #tpu.dot_dimension_numbers<[1], [0], [0], [1], [0, 0, 1, 1], [], []>} : vector<8x8xbf16>, vector<8x8xbf16>, vector<8x8xf32> -> vector<8x8xf32>
    %c1_51 = arith.constant 1 : index
    %c0_52 = arith.constant 0 : index
    %c0_53 = arith.constant 0 : index
    %157 = vector.load %arg29[%c1_51, %c0_52, %c0_53] : memref<2x8x32xf32, #tpu.memory_space<vmem>>, vector<1x8x8xf32>
    %158 = vector.shape_cast %157 : vector<1x8x8xf32> to vector<8x8xf32>
    %159 = vector.shape_cast %156 : vector<8x8xf32> to vector<1x8x8xf32>
    tpu.vector_store %arg29[%c1_51, %c0_52, %c0_53], %159 {strides = array<i32>} : memref<2x8x32xf32, #tpu.memory_space<vmem>>, vector<1x8x8xf32>,
    %160 = vector.extract_strided_slice %134 {offsets = [0, 8], sizes = [8, 8], strides = [1, 1]} : vector<8x32xbf16> to vector<8x8xbf16>
    %161 = vector.extract_strided_slice %136 {offsets = [0, 8], sizes = [8, 8], strides = [1, 1]} : vector<8x32xbf16> to vector<8x8xbf16>
    %cst_54 = arith.constant dense<0.000000e+00> : vector<8x8xf32>
    %162 = tpu.matmul %160, %161, %cst_54 {dimension_numbers = #tpu.dot_dimension_numbers<[1], [1], [0], [0], [0, 0, 1, 0], [], []>} : vector<8x8xbf16>, vector<8x8xbf16>, vector<8x8xf32> -> vector<8x8xf32>
    %cst_55 = arith.constant dense<0xFF800000> : vector<8xf32>
    %163 = vector.multi_reduction <maximumf>, %162, %cst_55 [1] : vector<8x8xf32> to vector<8xf32>
    %164 = vector.shape_cast %163 : vector<8xf32> to vector<8x1xf32>
    %165 = vector.broadcast %164 : vector<8x1xf32> to vector<8x8xf32>
    %166 = arith.subf %162, %165 : vector<8x8xf32>
    %167 = math.exp %166 : vector<8x8xf32>
    %cst_56 = arith.constant dense<0.000000e+00> : vector<8xf32>
    %168 = vector.multi_reduction <add>, %167, %cst_56 [1] : vector<8x8xf32> to vector<8xf32>
    %169 = vector.shape_cast %168 : vector<8xf32> to vector<8x1xf32>
    %170 = tpu.reciprocal %169 {approx = true} : vector<8x1xf32> -> vector<8x1xf32>
    %171 = vector.broadcast %170 : vector<8x1xf32> to vector<8x8xf32>
    %172 = arith.mulf %167, %171 : vector<8x8xf32>
    %173 = arith.addf %153, %172 : vector<8x8xf32>
    %174 = arith.truncf %172 : vector<8x8xf32> to vector<8x8xbf16>
    %175 = vector.extract_strided_slice %138 {offsets = [0, 8], sizes = [8, 8], strides = [1, 1]} : vector<8x32xbf16> to vector<8x8xbf16>
    %cst_57 = arith.constant dense<0.000000e+00> : vector<8x8xf32>
    %176 = tpu.matmul %174, %175, %cst_57 {dimension_numbers = #tpu.dot_dimension_numbers<[1], [0], [0], [1], [0, 0, 1, 1], [], []>} : vector<8x8xbf16>, vector<8x8xbf16>, vector<8x8xf32> -> vector<8x8xf32>
    %c1_58 = arith.constant 1 : index
    %c0_59 = arith.constant 0 : index
    %c8_60 = arith.constant 8 : index
    %177 = vector.load %arg29[%c1_58, %c0_59, %c8_60] : memref<2x8x32xf32, #tpu.memory_space<vmem>>, vector<1x8x8xf32>
    %178 = vector.shape_cast %177 : vector<1x8x8xf32> to vector<8x8xf32>
    %179 = vector.shape_cast %176 : vector<8x8xf32> to vector<1x8x8xf32>
    tpu.vector_store %arg29[%c1_58, %c0_59, %c8_60], %179 {strides = array<i32>} : memref<2x8x32xf32, #tpu.memory_space<vmem>>, vector<1x8x8xf32>,
    %180 = vector.extract_strided_slice %134 {offsets = [0, 16], sizes = [8, 8], strides = [1, 1]} : vector<8x32xbf16> to vector<8x8xbf16>
    %181 = vector.extract_strided_slice %136 {offsets = [0, 16], sizes = [8, 8], strides = [1, 1]} : vector<8x32xbf16> to vector<8x8xbf16>
    %cst_61 = arith.constant dense<0.000000e+00> : vector<8x8xf32>
    %182 = tpu.matmul %180, %181, %cst_61 {dimension_numbers = #tpu.dot_dimension_numbers<[1], [1], [0], [0], [0, 0, 1, 0], [], []>} : vector<8x8xbf16>, vector<8x8xbf16>, vector<8x8xf32> -> vector<8x8xf32>
    %cst_62 = arith.constant dense<0xFF800000> : vector<8xf32>
    %183 = vector.multi_reduction <maximumf>, %182, %cst_62 [1] : vector<8x8xf32> to vector<8xf32>
    %184 = vector.shape_cast %183 : vector<8xf32> to vector<8x1xf32>
    %185 = vector.broadcast %184 : vector<8x1xf32> to vector<8x8xf32>
    %186 = arith.subf %182, %185 : vector<8x8xf32>
    %187 = math.exp %186 : vector<8x8xf32>
    %cst_63 = arith.constant dense<0.000000e+00> : vector<8xf32>
    %188 = vector.multi_reduction <add>, %187, %cst_63 [1] : vector<8x8xf32> to vector<8xf32>
    %189 = vector.shape_cast %188 : vector<8xf32> to vector<8x1xf32>
    %190 = tpu.reciprocal %189 {approx = true} : vector<8x1xf32> -> vector<8x1xf32>
    %191 = vector.broadcast %190 : vector<8x1xf32> to vector<8x8xf32>
    %192 = arith.mulf %187, %191 : vector<8x8xf32>
    %193 = arith.addf %173, %192 : vector<8x8xf32>
    %194 = arith.truncf %192 : vector<8x8xf32> to vector<8x8xbf16>
    %195 = vector.extract_strided_slice %138 {offsets = [0, 16], sizes = [8, 8], strides = [1, 1]} : vector<8x32xbf16> to vector<8x8xbf16>
    %cst_64 = arith.constant dense<0.000000e+00> : vector<8x8xf32>
    %196 = tpu.matmul %194, %195, %cst_64 {dimension_numbers = #tpu.dot_dimension_numbers<[1], [0], [0], [1], [0, 0, 1, 1], [], []>} : vector<8x8xbf16>, vector<8x8xbf16>, vector<8x8xf32> -> vector<8x8xf32>
    %c1_65 = arith.constant 1 : index
    %c0_66 = arith.constant 0 : index
    %c16_67 = arith.constant 16 : index
    %197 = vector.load %arg29[%c1_65, %c0_66, %c16_67] : memref<2x8x32xf32, #tpu.memory_space<vmem>>, vector<1x8x8xf32>
    %198 = vector.shape_cast %197 : vector<1x8x8xf32> to vector<8x8xf32>
    %199 = vector.shape_cast %196 : vector<8x8xf32> to vector<1x8x8xf32>
    tpu.vector_store %arg29[%c1_65, %c0_66, %c16_67], %199 {strides = array<i32>} : memref<2x8x32xf32, #tpu.memory_space<vmem>>, vector<1x8x8xf32>,
    %200 = vector.extract_strided_slice %134 {offsets = [0, 24], sizes = [8, 8], strides = [1, 1]} : vector<8x32xbf16> to vector<8x8xbf16>
    %201 = vector.extract_strided_slice %136 {offsets = [0, 24], sizes = [8, 8], strides = [1, 1]} : vector<8x32xbf16> to vector<8x8xbf16>
    %cst_68 = arith.constant dense<0.000000e+00> : vector<8x8xf32>
    %202 = tpu.matmul %200, %201, %cst_68 {dimension_numbers = #tpu.dot_dimension_numbers<[1], [1], [0], [0], [0, 0, 1, 0], [], []>} : vector<8x8xbf16>, vector<8x8xbf16>, vector<8x8xf32> -> vector<8x8xf32>
    %cst_69 = arith.constant dense<0xFF800000> : vector<8xf32>
    %203 = vector.multi_reduction <maximumf>, %202, %cst_69 [1] : vector<8x8xf32> to vector<8xf32>
    %204 = vector.shape_cast %203 : vector<8xf32> to vector<8x1xf32>
    %205 = vector.broadcast %204 : vector<8x1xf32> to vector<8x8xf32>
    %206 = arith.subf %202, %205 : vector<8x8xf32>
    %207 = math.exp %206 : vector<8x8xf32>
    %cst_70 = arith.constant dense<0.000000e+00> : vector<8xf32>
    %208 = vector.multi_reduction <add>, %207, %cst_70 [1] : vector<8x8xf32> to vector<8xf32>
    %209 = vector.shape_cast %208 : vector<8xf32> to vector<8x1xf32>
    %210 = tpu.reciprocal %209 {approx = true} : vector<8x1xf32> -> vector<8x1xf32>
    %211 = vector.broadcast %210 : vector<8x1xf32> to vector<8x8xf32>
    %212 = arith.mulf %207, %211 : vector<8x8xf32>
    %213 = arith.addf %193, %212 : vector<8x8xf32>
    %214 = arith.truncf %212 : vector<8x8xf32> to vector<8x8xbf16>
    %215 = vector.extract_strided_slice %138 {offsets = [0, 24], sizes = [8, 8], strides = [1, 1]} : vector<8x32xbf16> to vector<8x8xbf16>
    %cst_71 = arith.constant dense<0.000000e+00> : vector<8x8xf32>
    %216 = tpu.matmul %214, %215, %cst_71 {dimension_numbers = #tpu.dot_dimension_numbers<[1], [0], [0], [1], [0, 0, 1, 1], [], []>} : vector<8x8xbf16>, vector<8x8xbf16>, vector<8x8xf32> -> vector<8x8xf32>
    %c1_72 = arith.constant 1 : index
    %c0_73 = arith.constant 0 : index
    %c24_74 = arith.constant 24 : index
    %217 = vector.load %arg29[%c1_72, %c0_73, %c24_74] : memref<2x8x32xf32, #tpu.memory_space<vmem>>, vector<1x8x8xf32>
    %218 = vector.shape_cast %217 : vector<1x8x8xf32> to vector<8x8xf32>
    %219 = vector.shape_cast %216 : vector<8x8xf32> to vector<1x8x8xf32>
    tpu.vector_store %arg29[%c1_72, %c0_73, %c24_74], %219 {strides = array<i32>} : memref<2x8x32xf32, #tpu.memory_space<vmem>>, vector<1x8x8xf32>,
    %cst_75 = arith.constant 2.500000e-01 : f32
    %220 = vector.broadcast %cst_75 : f32 to vector<8x8xf32>
    %221 = arith.mulf %213, %220 : vector<8x8xf32>
    %222 = tpu.concatenate %221, %39 in 1 : vector<8x8xf32>, vector<8x120xf32> -> vector<8x128xf32>
    %c1_76 = arith.constant 1 : index
    %c0_77 = arith.constant 0 : index
    %c0_78 = arith.constant 0 : index
    %223 = vector.load %arg26[%c1_76, %c0_77, %c0_78] : memref<2x8x128xf32, #tpu.memory_space<vmem>>, vector<1x8x128xf32>
    %224 = vector.shape_cast %223 : vector<1x8x128xf32> to vector<8x128xf32>
    %225 = vector.shape_cast %222 : vector<8x128xf32> to vector<1x8x128xf32>
    tpu.vector_store %arg26[%c1_76, %c0_77, %c0_78], %225 {strides = array<i32>} : memref<2x8x128xf32, #tpu.memory_space<vmem>>, vector<1x8x128xf32>,
    %c0_79 = arith.constant 0 : index
    %c0_80 = arith.constant 0 : index
    %c0_81 = arith.constant 0 : index
    %226 = vector.load %arg29[%c0_79, %c0_80, %c0_81] : memref<2x8x32xf32, #tpu.memory_space<vmem>>, vector<2x8x32xf32>
    %227 = vector.shape_cast %226 : vector<2x8x32xf32> to vector<16x32xf32>
    %228 = arith.truncf %227 : vector<16x32xf32> to vector<16x32xbf16>
    %c0_82 = arith.constant 0 : index
    %c0_83 = arith.constant 0 : index
    %229 = vector.load %arg6[%c0_82, %c0_83] : memref<32x32xbf16, #tpu.memory_space<vmem>>, vector<32x32xbf16>
    %cst_84 = arith.constant dense<0.000000e+00> : vector<16x32xf32>
    %230 = tpu.matmul %228, %229, %cst_84 {dimension_numbers = #tpu.dot_dimension_numbers<[1], [0], [0], [1], [0, 0, 1, 1], [], []>} : vector<16x32xbf16>, vector<32x32xbf16>, vector<16x32xf32> -> vector<16x32xf32>
    %c0_85 = arith.constant 0 : index
    %c0_86 = arith.constant 0 : index
    %231 = vector.load %arg7[%c0_85, %c0_86] : memref<1x32xf32, #tpu.memory_space<vmem>>, vector<1x32xf32>
    %232 = vector.broadcast %231 : vector<1x32xf32> to vector<16x32xf32>
    %233 = arith.addf %230, %232 : vector<16x32xf32>
    %234 = arith.addf %23, %233 : vector<16x32xf32>
    %c2 = arith.constant 2 : index
    %c0_87 = arith.constant 0 : index
    %235 = vector.load %arg24[%c2, %c0_87] : memref<8x32xf32, #tpu.memory_space<vmem>>, vector<1x32xf32>
    %c3 = arith.constant 3 : index
    %c0_88 = arith.constant 0 : index
    %236 = vector.load %arg24[%c3, %c0_88] : memref<8x32xf32, #tpu.memory_space<vmem>>, vector<1x32xf32>
    %cst_89 = arith.constant dense<0.000000e+00> : vector<16xf32>
    %237 = vector.multi_reduction <add>, %234, %cst_89 [1] : vector<16x32xf32> to vector<16xf32>
    %238 = vector.shape_cast %237 : vector<16xf32> to vector<16x1xf32>
    %cst_90 = arith.constant 3.200000e+01 : f32
    %239 = vector.broadcast %cst_90 : f32 to vector<16x1xf32>
    %240 = arith.divf %238, %239 : vector<16x1xf32>
    %241 = vector.broadcast %240 : vector<16x1xf32> to vector<16x32xf32>
    %242 = arith.subf %234, %241 : vector<16x32xf32>
    %243 = arith.mulf %242, %242 : vector<16x32xf32>
    %cst_91 = arith.constant dense<0.000000e+00> : vector<16xf32>
    %244 = vector.multi_reduction <add>, %243, %cst_91 [1] : vector<16x32xf32> to vector<16xf32>
    %245 = vector.shape_cast %244 : vector<16xf32> to vector<16x1xf32>
    %cst_92 = arith.constant 3.200000e+01 : f32
    %246 = vector.broadcast %cst_92 : f32 to vector<16x1xf32>
    %247 = arith.divf %245, %246 : vector<16x1xf32>
    %cst_93 = arith.constant 9.99999974E-6 : f32
    %248 = vector.broadcast %cst_93 : f32 to vector<16x1xf32>
    %249 = arith.addf %247, %248 : vector<16x1xf32>
    %250 = math.rsqrt %249 : vector<16x1xf32>
    %251 = vector.broadcast %250 : vector<16x1xf32> to vector<16x32xf32>
    %252 = arith.mulf %242, %251 : vector<16x32xf32>
    %253 = vector.broadcast %235 : vector<1x32xf32> to vector<16x32xf32>
    %254 = arith.mulf %252, %253 : vector<16x32xf32>
    %255 = vector.broadcast %236 : vector<1x32xf32> to vector<16x32xf32>
    %256 = arith.addf %254, %255 : vector<16x32xf32>
    %257 = arith.truncf %256 : vector<16x32xf32> to vector<16x32xbf16>
    %c0_94 = arith.constant 0 : index
    %c0_95 = arith.constant 0 : index
    %258 = vector.load %arg8[%c0_94, %c0_95] : memref<32x32xbf16, #tpu.memory_space<vmem>>, vector<32x32xbf16>
    %cst_96 = arith.constant dense<0.000000e+00> : vector<16x32xf32>
    %259 = tpu.matmul %257, %258, %cst_96 {dimension_numbers = #tpu.dot_dimension_numbers<[1], [0], [0], [1], [0, 0, 1, 1], [], []>} : vector<16x32xbf16>, vector<32x32xbf16>, vector<16x32xf32> -> vector<16x32xf32>
    %c0_97 = arith.constant 0 : index
    %c0_98 = arith.constant 0 : index
    %260 = vector.load %arg9[%c0_97, %c0_98] : memref<1x32xf32, #tpu.memory_space<vmem>>, vector<1x32xf32>
    %261 = vector.broadcast %260 : vector<1x32xf32> to vector<16x32xf32>
    %262 = arith.addf %259, %261 : vector<16x32xf32>
    %263 = vector.shape_cast %262 : vector<16x32xf32> to vector<2x8x32xf32>
    %c0_99 = arith.constant 0 : index
    %c0_100 = arith.constant 0 : index
    %c0_101 = arith.constant 0 : index
    %264 = vector.load %arg2[%c0_99, %c0_100, %c0_101] : memref<2x10x32xf32, #tpu.memory_space<vmem>>, vector<2x10x32xf32>
    %265 = vector.shape_cast %264 : vector<2x10x32xf32> to vector<20x32xf32>
    %266 = arith.truncf %265 : vector<20x32xf32> to vector<20x32xbf16>
    %c0_102 = arith.constant 0 : index
    %c0_103 = arith.constant 0 : index
    %267 = vector.load %arg10[%c0_102, %c0_103] : memref<32x64xbf16, #tpu.memory_space<vmem>>, vector<32x64xbf16>
    %cst_104 = arith.constant dense<0.000000e+00> : vector<20x64xf32>
    %268 = tpu.matmul %266, %267, %cst_104 {dimension_numbers = #tpu.dot_dimension_numbers<[1], [0], [0], [1], [0, 0, 1, 1], [], []>} : vector<20x32xbf16>, vector<32x64xbf16>, vector<20x64xf32> -> vector<20x64xf32>
    %c0_105 = arith.constant 0 : index
    %c0_106 = arith.constant 0 : index
    %269 = vector.load %arg11[%c0_105, %c0_106] : memref<1x64xf32, #tpu.memory_space<vmem>>, vector<1x64xf32>
    %270 = vector.broadcast %269 : vector<1x64xf32> to vector<20x64xf32>
    %271 = arith.addf %268, %270 : vector<20x64xf32>
    %272 = vector.shape_cast %271 : vector<20x64xf32> to vector<2x10x64xf32>
    %273 = vector.extract_strided_slice %272 {offsets = [0, 0, 0], sizes = [2, 10, 32], strides = [1, 1, 1]} : vector<2x10x64xf32> to vector<2x10x32xf32>
    %274 = vector.extract_strided_slice %272 {offsets = [0, 0, 32], sizes = [2, 10, 32], strides = [1, 1, 1]} : vector<2x10x64xf32> to vector<2x10x32xf32>
    %cst_107 = arith.constant 0.353553385 : f32
    %275 = vector.broadcast %cst_107 : f32 to vector<2x8x32xf32>
    %276 = arith.mulf %263, %275 : vector<2x8x32xf32>
    %277 = arith.truncf %276 : vector<2x8x32xf32> to vector<2x8x32xbf16>
    %278 = arith.truncf %273 : vector<2x10x32xf32> to vector<2x10x32xbf16>
    %279 = arith.truncf %274 : vector<2x10x32xf32> to vector<2x10x32xbf16>
    %cst_108 = arith.constant 0.000000e+00 : f32
    %280 = vector.broadcast %cst_108 : f32 to vector<8x118xf32>
    %281 = vector.extract_strided_slice %277 {offsets = [0, 0, 0], sizes = [1, 8, 32], strides = [1, 1, 1]} : vector<2x8x32xbf16> to vector<1x8x32xbf16>
    %282 = vector.shape_cast %281 : vector<1x8x32xbf16> to vector<8x32xbf16>
    %283 = vector.extract_strided_slice %278 {offsets = [0, 0, 0], sizes = [1, 10, 32], strides = [1, 1, 1]} : vector<2x10x32xbf16> to vector<1x10x32xbf16>
    %284 = vector.shape_cast %283 : vector<1x10x32xbf16> to vector<10x32xbf16>
    %285 = vector.extract_strided_slice %279 {offsets = [0, 0, 0], sizes = [1, 10, 32], strides = [1, 1, 1]} : vector<2x10x32xbf16> to vector<1x10x32xbf16>
    %286 = vector.shape_cast %285 : vector<1x10x32xbf16> to vector<10x32xbf16>
    %cst_109 = arith.constant 0.000000e+00 : f32
    %287 = vector.broadcast %cst_109 : f32 to vector<8x10xf32>
    %288 = vector.extract_strided_slice %282 {offsets = [0, 0], sizes = [8, 8], strides = [1, 1]} : vector<8x32xbf16> to vector<8x8xbf16>
    %289 = vector.extract_strided_slice %284 {offsets = [0, 0], sizes = [10, 8], strides = [1, 1]} : vector<10x32xbf16> to vector<10x8xbf16>
    %cst_110 = arith.constant dense<0.000000e+00> : vector<8x10xf32>
    %290 = tpu.matmul %288, %289, %cst_110 {dimension_numbers = #tpu.dot_dimension_numbers<[1], [1], [0], [0], [0, 0, 1, 0], [], []>} : vector<8x8xbf16>, vector<10x8xbf16>, vector<8x10xf32> -> vector<8x10xf32>
    %cst_111 = arith.constant dense<0xFF800000> : vector<8xf32>
    %291 = vector.multi_reduction <maximumf>, %290, %cst_111 [1] : vector<8x10xf32> to vector<8xf32>
    %292 = vector.shape_cast %291 : vector<8xf32> to vector<8x1xf32>
    %293 = vector.broadcast %292 : vector<8x1xf32> to vector<8x10xf32>
    %294 = arith.subf %290, %293 : vector<8x10xf32>
    %295 = math.exp %294 : vector<8x10xf32>
    %cst_112 = arith.constant dense<0.000000e+00> : vector<8xf32>
    %296 = vector.multi_reduction <add>, %295, %cst_112 [1] : vector<8x10xf32> to vector<8xf32>
    %297 = vector.shape_cast %296 : vector<8xf32> to vector<8x1xf32>
    %298 = tpu.reciprocal %297 {approx = true} : vector<8x1xf32> -> vector<8x1xf32>
    %299 = vector.broadcast %298 : vector<8x1xf32> to vector<8x10xf32>
    %300 = arith.mulf %295, %299 : vector<8x10xf32>
    %301 = arith.addf %287, %300 : vector<8x10xf32>
    %302 = arith.truncf %300 : vector<8x10xf32> to vector<8x10xbf16>
    %303 = vector.extract_strided_slice %286 {offsets = [0, 0], sizes = [10, 8], strides = [1, 1]} : vector<10x32xbf16> to vector<10x8xbf16>
    %cst_113 = arith.constant dense<0.000000e+00> : vector<8x8xf32>
    %304 = tpu.matmul %302, %303, %cst_113 {dimension_numbers = #tpu.dot_dimension_numbers<[1], [0], [0], [1], [0, 0, 1, 1], [], []>} : vector<8x10xbf16>, vector<10x8xbf16>, vector<8x8xf32> -> vector<8x8xf32>
    %c0_114 = arith.constant 0 : index
    %c0_115 = arith.constant 0 : index
    %c0_116 = arith.constant 0 : index
    %305 = vector.load %arg29[%c0_114, %c0_115, %c0_116] : memref<2x8x32xf32, #tpu.memory_space<vmem>>, vector<1x8x8xf32>
    %306 = vector.shape_cast %305 : vector<1x8x8xf32> to vector<8x8xf32>
    %307 = vector.shape_cast %304 : vector<8x8xf32> to vector<1x8x8xf32>
    tpu.vector_store %arg29[%c0_114, %c0_115, %c0_116], %307 {strides = array<i32>} : memref<2x8x32xf32, #tpu.memory_space<vmem>>, vector<1x8x8xf32>,
    %308 = vector.extract_strided_slice %282 {offsets = [0, 8], sizes = [8, 8], strides = [1, 1]} : vector<8x32xbf16> to vector<8x8xbf16>
    %309 = vector.extract_strided_slice %284 {offsets = [0, 8], sizes = [10, 8], strides = [1, 1]} : vector<10x32xbf16> to vector<10x8xbf16>
    %cst_117 = arith.constant dense<0.000000e+00> : vector<8x10xf32>
    %310 = tpu.matmul %308, %309, %cst_117 {dimension_numbers = #tpu.dot_dimension_numbers<[1], [1], [0], [0], [0, 0, 1, 0], [], []>} : vector<8x8xbf16>, vector<10x8xbf16>, vector<8x10xf32> -> vector<8x10xf32>
    %cst_118 = arith.constant dense<0xFF800000> : vector<8xf32>
    %311 = vector.multi_reduction <maximumf>, %310, %cst_118 [1] : vector<8x10xf32> to vector<8xf32>
    %312 = vector.shape_cast %311 : vector<8xf32> to vector<8x1xf32>
    %313 = vector.broadcast %312 : vector<8x1xf32> to vector<8x10xf32>
    %314 = arith.subf %310, %313 : vector<8x10xf32>
    %315 = math.exp %314 : vector<8x10xf32>
    %cst_119 = arith.constant dense<0.000000e+00> : vector<8xf32>
    %316 = vector.multi_reduction <add>, %315, %cst_119 [1] : vector<8x10xf32> to vector<8xf32>
    %317 = vector.shape_cast %316 : vector<8xf32> to vector<8x1xf32>
    %318 = tpu.reciprocal %317 {approx = true} : vector<8x1xf32> -> vector<8x1xf32>
    %319 = vector.broadcast %318 : vector<8x1xf32> to vector<8x10xf32>
    %320 = arith.mulf %315, %319 : vector<8x10xf32>
    %321 = arith.addf %301, %320 : vector<8x10xf32>
    %322 = arith.truncf %320 : vector<8x10xf32> to vector<8x10xbf16>
    %323 = vector.extract_strided_slice %286 {offsets = [0, 8], sizes = [10, 8], strides = [1, 1]} : vector<10x32xbf16> to vector<10x8xbf16>
    %cst_120 = arith.constant dense<0.000000e+00> : vector<8x8xf32>
    %324 = tpu.matmul %322, %323, %cst_120 {dimension_numbers = #tpu.dot_dimension_numbers<[1], [0], [0], [1], [0, 0, 1, 1], [], []>} : vector<8x10xbf16>, vector<10x8xbf16>, vector<8x8xf32> -> vector<8x8xf32>
    %c0_121 = arith.constant 0 : index
    %c0_122 = arith.constant 0 : index
    %c8_123 = arith.constant 8 : index
    %325 = vector.load %arg29[%c0_121, %c0_122, %c8_123] : memref<2x8x32xf32, #tpu.memory_space<vmem>>, vector<1x8x8xf32>
    %326 = vector.shape_cast %325 : vector<1x8x8xf32> to vector<8x8xf32>
    %327 = vector.shape_cast %324 : vector<8x8xf32> to vector<1x8x8xf32>
    tpu.vector_store %arg29[%c0_121, %c0_122, %c8_123], %327 {strides = array<i32>} : memref<2x8x32xf32, #tpu.memory_space<vmem>>, vector<1x8x8xf32>,
    %328 = vector.extract_strided_slice %282 {offsets = [0, 16], sizes = [8, 8], strides = [1, 1]} : vector<8x32xbf16> to vector<8x8xbf16>
    %329 = vector.extract_strided_slice %284 {offsets = [0, 16], sizes = [10, 8], strides = [1, 1]} : vector<10x32xbf16> to vector<10x8xbf16>
    %cst_124 = arith.constant dense<0.000000e+00> : vector<8x10xf32>
    %330 = tpu.matmul %328, %329, %cst_124 {dimension_numbers = #tpu.dot_dimension_numbers<[1], [1], [0], [0], [0, 0, 1, 0], [], []>} : vector<8x8xbf16>, vector<10x8xbf16>, vector<8x10xf32> -> vector<8x10xf32>
    %cst_125 = arith.constant dense<0xFF800000> : vector<8xf32>
    %331 = vector.multi_reduction <maximumf>, %330, %cst_125 [1] : vector<8x10xf32> to vector<8xf32>
    %332 = vector.shape_cast %331 : vector<8xf32> to vector<8x1xf32>
    %333 = vector.broadcast %332 : vector<8x1xf32> to vector<8x10xf32>
    %334 = arith.subf %330, %333 : vector<8x10xf32>
    %335 = math.exp %334 : vector<8x10xf32>
    %cst_126 = arith.constant dense<0.000000e+00> : vector<8xf32>
    %336 = vector.multi_reduction <add>, %335, %cst_126 [1] : vector<8x10xf32> to vector<8xf32>
    %337 = vector.shape_cast %336 : vector<8xf32> to vector<8x1xf32>
    %338 = tpu.reciprocal %337 {approx = true} : vector<8x1xf32> -> vector<8x1xf32>
    %339 = vector.broadcast %338 : vector<8x1xf32> to vector<8x10xf32>
    %340 = arith.mulf %335, %339 : vector<8x10xf32>
    %341 = arith.addf %321, %340 : vector<8x10xf32>
    %342 = arith.truncf %340 : vector<8x10xf32> to vector<8x10xbf16>
    %343 = vector.extract_strided_slice %286 {offsets = [0, 16], sizes = [10, 8], strides = [1, 1]} : vector<10x32xbf16> to vector<10x8xbf16>
    %cst_127 = arith.constant dense<0.000000e+00> : vector<8x8xf32>
    %344 = tpu.matmul %342, %343, %cst_127 {dimension_numbers = #tpu.dot_dimension_numbers<[1], [0], [0], [1], [0, 0, 1, 1], [], []>} : vector<8x10xbf16>, vector<10x8xbf16>, vector<8x8xf32> -> vector<8x8xf32>
    %c0_128 = arith.constant 0 : index
    %c0_129 = arith.constant 0 : index
    %c16_130 = arith.constant 16 : index
    %345 = vector.load %arg29[%c0_128, %c0_129, %c16_130] : memref<2x8x32xf32, #tpu.memory_space<vmem>>, vector<1x8x8xf32>
    %346 = vector.shape_cast %345 : vector<1x8x8xf32> to vector<8x8xf32>
    %347 = vector.shape_cast %344 : vector<8x8xf32> to vector<1x8x8xf32>
    tpu.vector_store %arg29[%c0_128, %c0_129, %c16_130], %347 {strides = array<i32>} : memref<2x8x32xf32, #tpu.memory_space<vmem>>, vector<1x8x8xf32>,
    %348 = vector.extract_strided_slice %282 {offsets = [0, 24], sizes = [8, 8], strides = [1, 1]} : vector<8x32xbf16> to vector<8x8xbf16>
    %349 = vector.extract_strided_slice %284 {offsets = [0, 24], sizes = [10, 8], strides = [1, 1]} : vector<10x32xbf16> to vector<10x8xbf16>
    %cst_131 = arith.constant dense<0.000000e+00> : vector<8x10xf32>
    %350 = tpu.matmul %348, %349, %cst_131 {dimension_numbers = #tpu.dot_dimension_numbers<[1], [1], [0], [0], [0, 0, 1, 0], [], []>} : vector<8x8xbf16>, vector<10x8xbf16>, vector<8x10xf32> -> vector<8x10xf32>
    %cst_132 = arith.constant dense<0xFF800000> : vector<8xf32>
    %351 = vector.multi_reduction <maximumf>, %350, %cst_132 [1] : vector<8x10xf32> to vector<8xf32>
    %352 = vector.shape_cast %351 : vector<8xf32> to vector<8x1xf32>
    %353 = vector.broadcast %352 : vector<8x1xf32> to vector<8x10xf32>
    %354 = arith.subf %350, %353 : vector<8x10xf32>
    %355 = math.exp %354 : vector<8x10xf32>
    %cst_133 = arith.constant dense<0.000000e+00> : vector<8xf32>
    %356 = vector.multi_reduction <add>, %355, %cst_133 [1] : vector<8x10xf32> to vector<8xf32>
    %357 = vector.shape_cast %356 : vector<8xf32> to vector<8x1xf32>
    %358 = tpu.reciprocal %357 {approx = true} : vector<8x1xf32> -> vector<8x1xf32>
    %359 = vector.broadcast %358 : vector<8x1xf32> to vector<8x10xf32>
    %360 = arith.mulf %355, %359 : vector<8x10xf32>
    %361 = arith.addf %341, %360 : vector<8x10xf32>
    %362 = arith.truncf %360 : vector<8x10xf32> to vector<8x10xbf16>
    %363 = vector.extract_strided_slice %286 {offsets = [0, 24], sizes = [10, 8], strides = [1, 1]} : vector<10x32xbf16> to vector<10x8xbf16>
    %cst_134 = arith.constant dense<0.000000e+00> : vector<8x8xf32>
    %364 = tpu.matmul %362, %363, %cst_134 {dimension_numbers = #tpu.dot_dimension_numbers<[1], [0], [0], [1], [0, 0, 1, 1], [], []>} : vector<8x10xbf16>, vector<10x8xbf16>, vector<8x8xf32> -> vector<8x8xf32>
    %c0_135 = arith.constant 0 : index
    %c0_136 = arith.constant 0 : index
    %c24_137 = arith.constant 24 : index
    %365 = vector.load %arg29[%c0_135, %c0_136, %c24_137] : memref<2x8x32xf32, #tpu.memory_space<vmem>>, vector<1x8x8xf32>
    %366 = vector.shape_cast %365 : vector<1x8x8xf32> to vector<8x8xf32>
    %367 = vector.shape_cast %364 : vector<8x8xf32> to vector<1x8x8xf32>
    tpu.vector_store %arg29[%c0_135, %c0_136, %c24_137], %367 {strides = array<i32>} : memref<2x8x32xf32, #tpu.memory_space<vmem>>, vector<1x8x8xf32>,
    %cst_138 = arith.constant 2.500000e-01 : f32
    %368 = vector.broadcast %cst_138 : f32 to vector<8x10xf32>
    %369 = arith.mulf %361, %368 : vector<8x10xf32>
    %370 = tpu.concatenate %369, %280 in 1 : vector<8x10xf32>, vector<8x118xf32> -> vector<8x128xf32>
    %c0_139 = arith.constant 0 : index
    %c0_140 = arith.constant 0 : index
    %c0_141 = arith.constant 0 : index
    %371 = vector.load %arg27[%c0_139, %c0_140, %c0_141] : memref<2x8x128xf32, #tpu.memory_space<vmem>>, vector<1x8x128xf32>
    %372 = vector.shape_cast %371 : vector<1x8x128xf32> to vector<8x128xf32>
    %373 = vector.shape_cast %370 : vector<8x128xf32> to vector<1x8x128xf32>
    tpu.vector_store %arg27[%c0_139, %c0_140, %c0_141], %373 {strides = array<i32>} : memref<2x8x128xf32, #tpu.memory_space<vmem>>, vector<1x8x128xf32>,
    %374 = vector.extract_strided_slice %277 {offsets = [1, 0, 0], sizes = [1, 8, 32], strides = [1, 1, 1]} : vector<2x8x32xbf16> to vector<1x8x32xbf16>
    %375 = vector.shape_cast %374 : vector<1x8x32xbf16> to vector<8x32xbf16>
    %376 = vector.extract_strided_slice %278 {offsets = [1, 0, 0], sizes = [1, 10, 32], strides = [1, 1, 1]} : vector<2x10x32xbf16> to vector<1x10x32xbf16>
    %377 = vector.shape_cast %376 : vector<1x10x32xbf16> to vector<10x32xbf16>
    %378 = vector.extract_strided_slice %279 {offsets = [1, 0, 0], sizes = [1, 10, 32], strides = [1, 1, 1]} : vector<2x10x32xbf16> to vector<1x10x32xbf16>
    %379 = vector.shape_cast %378 : vector<1x10x32xbf16> to vector<10x32xbf16>
    %cst_142 = arith.constant 0.000000e+00 : f32
    %380 = vector.broadcast %cst_142 : f32 to vector<8x10xf32>
    %381 = vector.extract_strided_slice %375 {offsets = [0, 0], sizes = [8, 8], strides = [1, 1]} : vector<8x32xbf16> to vector<8x8xbf16>
    %382 = vector.extract_strided_slice %377 {offsets = [0, 0], sizes = [10, 8], strides = [1, 1]} : vector<10x32xbf16> to vector<10x8xbf16>
    %cst_143 = arith.constant dense<0.000000e+00> : vector<8x10xf32>
    %383 = tpu.matmul %381, %382, %cst_143 {dimension_numbers = #tpu.dot_dimension_numbers<[1], [1], [0], [0], [0, 0, 1, 0], [], []>} : vector<8x8xbf16>, vector<10x8xbf16>, vector<8x10xf32> -> vector<8x10xf32>
    %cst_144 = arith.constant dense<0xFF800000> : vector<8xf32>
    %384 = vector.multi_reduction <maximumf>, %383, %cst_144 [1] : vector<8x10xf32> to vector<8xf32>
    %385 = vector.shape_cast %384 : vector<8xf32> to vector<8x1xf32>
    %386 = vector.broadcast %385 : vector<8x1xf32> to vector<8x10xf32>
    %387 = arith.subf %383, %386 : vector<8x10xf32>
    %388 = math.exp %387 : vector<8x10xf32>
    %cst_145 = arith.constant dense<0.000000e+00> : vector<8xf32>
    %389 = vector.multi_reduction <add>, %388, %cst_145 [1] : vector<8x10xf32> to vector<8xf32>
    %390 = vector.shape_cast %389 : vector<8xf32> to vector<8x1xf32>
    %391 = tpu.reciprocal %390 {approx = true} : vector<8x1xf32> -> vector<8x1xf32>
    %392 = vector.broadcast %391 : vector<8x1xf32> to vector<8x10xf32>
    %393 = arith.mulf %388, %392 : vector<8x10xf32>
    %394 = arith.addf %380, %393 : vector<8x10xf32>
    %395 = arith.truncf %393 : vector<8x10xf32> to vector<8x10xbf16>
    %396 = vector.extract_strided_slice %379 {offsets = [0, 0], sizes = [10, 8], strides = [1, 1]} : vector<10x32xbf16> to vector<10x8xbf16>
    %cst_146 = arith.constant dense<0.000000e+00> : vector<8x8xf32>
    %397 = tpu.matmul %395, %396, %cst_146 {dimension_numbers = #tpu.dot_dimension_numbers<[1], [0], [0], [1], [0, 0, 1, 1], [], []>} : vector<8x10xbf16>, vector<10x8xbf16>, vector<8x8xf32> -> vector<8x8xf32>
    %c1_147 = arith.constant 1 : index
    %c0_148 = arith.constant 0 : index
    %c0_149 = arith.constant 0 : index
    %398 = vector.load %arg29[%c1_147, %c0_148, %c0_149] : memref<2x8x32xf32, #tpu.memory_space<vmem>>, vector<1x8x8xf32>
    %399 = vector.shape_cast %398 : vector<1x8x8xf32> to vector<8x8xf32>
    %400 = vector.shape_cast %397 : vector<8x8xf32> to vector<1x8x8xf32>
    tpu.vector_store %arg29[%c1_147, %c0_148, %c0_149], %400 {strides = array<i32>} : memref<2x8x32xf32, #tpu.memory_space<vmem>>, vector<1x8x8xf32>,
    %401 = vector.extract_strided_slice %375 {offsets = [0, 8], sizes = [8, 8], strides = [1, 1]} : vector<8x32xbf16> to vector<8x8xbf16>
    %402 = vector.extract_strided_slice %377 {offsets = [0, 8], sizes = [10, 8], strides = [1, 1]} : vector<10x32xbf16> to vector<10x8xbf16>
    %cst_150 = arith.constant dense<0.000000e+00> : vector<8x10xf32>
    %403 = tpu.matmul %401, %402, %cst_150 {dimension_numbers = #tpu.dot_dimension_numbers<[1], [1], [0], [0], [0, 0, 1, 0], [], []>} : vector<8x8xbf16>, vector<10x8xbf16>, vector<8x10xf32> -> vector<8x10xf32>
    %cst_151 = arith.constant dense<0xFF800000> : vector<8xf32>
    %404 = vector.multi_reduction <maximumf>, %403, %cst_151 [1] : vector<8x10xf32> to vector<8xf32>
    %405 = vector.shape_cast %404 : vector<8xf32> to vector<8x1xf32>
    %406 = vector.broadcast %405 : vector<8x1xf32> to vector<8x10xf32>
    %407 = arith.subf %403, %406 : vector<8x10xf32>
    %408 = math.exp %407 : vector<8x10xf32>
    %cst_152 = arith.constant dense<0.000000e+00> : vector<8xf32>
    %409 = vector.multi_reduction <add>, %408, %cst_152 [1] : vector<8x10xf32> to vector<8xf32>
    %410 = vector.shape_cast %409 : vector<8xf32> to vector<8x1xf32>
    %411 = tpu.reciprocal %410 {approx = true} : vector<8x1xf32> -> vector<8x1xf32>
    %412 = vector.broadcast %411 : vector<8x1xf32> to vector<8x10xf32>
    %413 = arith.mulf %408, %412 : vector<8x10xf32>
    %414 = arith.addf %394, %413 : vector<8x10xf32>
    %415 = arith.truncf %413 : vector<8x10xf32> to vector<8x10xbf16>
    %416 = vector.extract_strided_slice %379 {offsets = [0, 8], sizes = [10, 8], strides = [1, 1]} : vector<10x32xbf16> to vector<10x8xbf16>
    %cst_153 = arith.constant dense<0.000000e+00> : vector<8x8xf32>
    %417 = tpu.matmul %415, %416, %cst_153 {dimension_numbers = #tpu.dot_dimension_numbers<[1], [0], [0], [1], [0, 0, 1, 1], [], []>} : vector<8x10xbf16>, vector<10x8xbf16>, vector<8x8xf32> -> vector<8x8xf32>
    %c1_154 = arith.constant 1 : index
    %c0_155 = arith.constant 0 : index
    %c8_156 = arith.constant 8 : index
    %418 = vector.load %arg29[%c1_154, %c0_155, %c8_156] : memref<2x8x32xf32, #tpu.memory_space<vmem>>, vector<1x8x8xf32>
    %419 = vector.shape_cast %418 : vector<1x8x8xf32> to vector<8x8xf32>
    %420 = vector.shape_cast %417 : vector<8x8xf32> to vector<1x8x8xf32>
    tpu.vector_store %arg29[%c1_154, %c0_155, %c8_156], %420 {strides = array<i32>} : memref<2x8x32xf32, #tpu.memory_space<vmem>>, vector<1x8x8xf32>,
    %421 = vector.extract_strided_slice %375 {offsets = [0, 16], sizes = [8, 8], strides = [1, 1]} : vector<8x32xbf16> to vector<8x8xbf16>
    %422 = vector.extract_strided_slice %377 {offsets = [0, 16], sizes = [10, 8], strides = [1, 1]} : vector<10x32xbf16> to vector<10x8xbf16>
    %cst_157 = arith.constant dense<0.000000e+00> : vector<8x10xf32>
    %423 = tpu.matmul %421, %422, %cst_157 {dimension_numbers = #tpu.dot_dimension_numbers<[1], [1], [0], [0], [0, 0, 1, 0], [], []>} : vector<8x8xbf16>, vector<10x8xbf16>, vector<8x10xf32> -> vector<8x10xf32>
    %cst_158 = arith.constant dense<0xFF800000> : vector<8xf32>
    %424 = vector.multi_reduction <maximumf>, %423, %cst_158 [1] : vector<8x10xf32> to vector<8xf32>
    %425 = vector.shape_cast %424 : vector<8xf32> to vector<8x1xf32>
    %426 = vector.broadcast %425 : vector<8x1xf32> to vector<8x10xf32>
    %427 = arith.subf %423, %426 : vector<8x10xf32>
    %428 = math.exp %427 : vector<8x10xf32>
    %cst_159 = arith.constant dense<0.000000e+00> : vector<8xf32>
    %429 = vector.multi_reduction <add>, %428, %cst_159 [1] : vector<8x10xf32> to vector<8xf32>
    %430 = vector.shape_cast %429 : vector<8xf32> to vector<8x1xf32>
    %431 = tpu.reciprocal %430 {approx = true} : vector<8x1xf32> -> vector<8x1xf32>
    %432 = vector.broadcast %431 : vector<8x1xf32> to vector<8x10xf32>
    %433 = arith.mulf %428, %432 : vector<8x10xf32>
    %434 = arith.addf %414, %433 : vector<8x10xf32>
    %435 = arith.truncf %433 : vector<8x10xf32> to vector<8x10xbf16>
    %436 = vector.extract_strided_slice %379 {offsets = [0, 16], sizes = [10, 8], strides = [1, 1]} : vector<10x32xbf16> to vector<10x8xbf16>
    %cst_160 = arith.constant dense<0.000000e+00> : vector<8x8xf32>
    %437 = tpu.matmul %435, %436, %cst_160 {dimension_numbers = #tpu.dot_dimension_numbers<[1], [0], [0], [1], [0, 0, 1, 1], [], []>} : vector<8x10xbf16>, vector<10x8xbf16>, vector<8x8xf32> -> vector<8x8xf32>
    %c1_161 = arith.constant 1 : index
    %c0_162 = arith.constant 0 : index
    %c16_163 = arith.constant 16 : index
    %438 = vector.load %arg29[%c1_161, %c0_162, %c16_163] : memref<2x8x32xf32, #tpu.memory_space<vmem>>, vector<1x8x8xf32>
    %439 = vector.shape_cast %438 : vector<1x8x8xf32> to vector<8x8xf32>
    %440 = vector.shape_cast %437 : vector<8x8xf32> to vector<1x8x8xf32>
    tpu.vector_store %arg29[%c1_161, %c0_162, %c16_163], %440 {strides = array<i32>} : memref<2x8x32xf32, #tpu.memory_space<vmem>>, vector<1x8x8xf32>,
    %441 = vector.extract_strided_slice %375 {offsets = [0, 24], sizes = [8, 8], strides = [1, 1]} : vector<8x32xbf16> to vector<8x8xbf16>
    %442 = vector.extract_strided_slice %377 {offsets = [0, 24], sizes = [10, 8], strides = [1, 1]} : vector<10x32xbf16> to vector<10x8xbf16>
    %cst_164 = arith.constant dense<0.000000e+00> : vector<8x10xf32>
    %443 = tpu.matmul %441, %442, %cst_164 {dimension_numbers = #tpu.dot_dimension_numbers<[1], [1], [0], [0], [0, 0, 1, 0], [], []>} : vector<8x8xbf16>, vector<10x8xbf16>, vector<8x10xf32> -> vector<8x10xf32>
    %cst_165 = arith.constant dense<0xFF800000> : vector<8xf32>
    %444 = vector.multi_reduction <maximumf>, %443, %cst_165 [1] : vector<8x10xf32> to vector<8xf32>
    %445 = vector.shape_cast %444 : vector<8xf32> to vector<8x1xf32>
    %446 = vector.broadcast %445 : vector<8x1xf32> to vector<8x10xf32>
    %447 = arith.subf %443, %446 : vector<8x10xf32>
    %448 = math.exp %447 : vector<8x10xf32>
    %cst_166 = arith.constant dense<0.000000e+00> : vector<8xf32>
    %449 = vector.multi_reduction <add>, %448, %cst_166 [1] : vector<8x10xf32> to vector<8xf32>
    %450 = vector.shape_cast %449 : vector<8xf32> to vector<8x1xf32>
    %451 = tpu.reciprocal %450 {approx = true} : vector<8x1xf32> -> vector<8x1xf32>
    %452 = vector.broadcast %451 : vector<8x1xf32> to vector<8x10xf32>
    %453 = arith.mulf %448, %452 : vector<8x10xf32>
    %454 = arith.addf %434, %453 : vector<8x10xf32>
    %455 = arith.truncf %453 : vector<8x10xf32> to vector<8x10xbf16>
    %456 = vector.extract_strided_slice %379 {offsets = [0, 24], sizes = [10, 8], strides = [1, 1]} : vector<10x32xbf16> to vector<10x8xbf16>
    %cst_167 = arith.constant dense<0.000000e+00> : vector<8x8xf32>
    %457 = tpu.matmul %455, %456, %cst_167 {dimension_numbers = #tpu.dot_dimension_numbers<[1], [0], [0], [1], [0, 0, 1, 1], [], []>} : vector<8x10xbf16>, vector<10x8xbf16>, vector<8x8xf32> -> vector<8x8xf32>
    %c1_168 = arith.constant 1 : index
    %c0_169 = arith.constant 0 : index
    %c24_170 = arith.constant 24 : index
    %458 = vector.load %arg29[%c1_168, %c0_169, %c24_170] : memref<2x8x32xf32, #tpu.memory_space<vmem>>, vector<1x8x8xf32>
    %459 = vector.shape_cast %458 : vector<1x8x8xf32> to vector<8x8xf32>
    %460 = vector.shape_cast %457 : vector<8x8xf32> to vector<1x8x8xf32>
    tpu.vector_store %arg29[%c1_168, %c0_169, %c24_170], %460 {strides = array<i32>} : memref<2x8x32xf32, #tpu.memory_space<vmem>>, vector<1x8x8xf32>,
    %cst_171 = arith.constant 2.500000e-01 : f32
    %461 = vector.broadcast %cst_171 : f32 to vector<8x10xf32>
    %462 = arith.mulf %454, %461 : vector<8x10xf32>
    %463 = tpu.concatenate %462, %280 in 1 : vector<8x10xf32>, vector<8x118xf32> -> vector<8x128xf32>
    %c1_172 = arith.constant 1 : index
    %c0_173 = arith.constant 0 : index
    %c0_174 = arith.constant 0 : index
    %464 = vector.load %arg27[%c1_172, %c0_173, %c0_174] : memref<2x8x128xf32, #tpu.memory_space<vmem>>, vector<1x8x128xf32>
    %465 = vector.shape_cast %464 : vector<1x8x128xf32> to vector<8x128xf32>
    %466 = vector.shape_cast %463 : vector<8x128xf32> to vector<1x8x128xf32>
    tpu.vector_store %arg27[%c1_172, %c0_173, %c0_174], %466 {strides = array<i32>} : memref<2x8x128xf32, #tpu.memory_space<vmem>>, vector<1x8x128xf32>,
    %c0_175 = arith.constant 0 : index
    %c0_176 = arith.constant 0 : index
    %c0_177 = arith.constant 0 : index
    %467 = vector.load %arg29[%c0_175, %c0_176, %c0_177] : memref<2x8x32xf32, #tpu.memory_space<vmem>>, vector<2x8x32xf32>
    %468 = vector.shape_cast %467 : vector<2x8x32xf32> to vector<16x32xf32>
    %469 = arith.truncf %468 : vector<16x32xf32> to vector<16x32xbf16>
    %c0_178 = arith.constant 0 : index
    %c0_179 = arith.constant 0 : index
    %470 = vector.load %arg12[%c0_178, %c0_179] : memref<32x32xbf16, #tpu.memory_space<vmem>>, vector<32x32xbf16>
    %cst_180 = arith.constant dense<0.000000e+00> : vector<16x32xf32>
    %471 = tpu.matmul %469, %470, %cst_180 {dimension_numbers = #tpu.dot_dimension_numbers<[1], [0], [0], [1], [0, 0, 1, 1], [], []>} : vector<16x32xbf16>, vector<32x32xbf16>, vector<16x32xf32> -> vector<16x32xf32>
    %c0_181 = arith.constant 0 : index
    %c0_182 = arith.constant 0 : index
    %472 = vector.load %arg13[%c0_181, %c0_182] : memref<1x32xf32, #tpu.memory_space<vmem>>, vector<1x32xf32>
    %473 = vector.broadcast %472 : vector<1x32xf32> to vector<16x32xf32>
    %474 = arith.addf %471, %473 : vector<16x32xf32>
    %475 = arith.addf %256, %474 : vector<16x32xf32>
    %c4 = arith.constant 4 : index
    %c0_183 = arith.constant 0 : index
    %476 = vector.load %arg24[%c4, %c0_183] : memref<8x32xf32, #tpu.memory_space<vmem>>, vector<1x32xf32>
    %c5 = arith.constant 5 : index
    %c0_184 = arith.constant 0 : index
    %477 = vector.load %arg24[%c5, %c0_184] : memref<8x32xf32, #tpu.memory_space<vmem>>, vector<1x32xf32>
    %cst_185 = arith.constant dense<0.000000e+00> : vector<16xf32>
    %478 = vector.multi_reduction <add>, %475, %cst_185 [1] : vector<16x32xf32> to vector<16xf32>
    %479 = vector.shape_cast %478 : vector<16xf32> to vector<16x1xf32>
    %cst_186 = arith.constant 3.200000e+01 : f32
    %480 = vector.broadcast %cst_186 : f32 to vector<16x1xf32>
    %481 = arith.divf %479, %480 : vector<16x1xf32>
    %482 = vector.broadcast %481 : vector<16x1xf32> to vector<16x32xf32>
    %483 = arith.subf %475, %482 : vector<16x32xf32>
    %484 = arith.mulf %483, %483 : vector<16x32xf32>
    %cst_187 = arith.constant dense<0.000000e+00> : vector<16xf32>
    %485 = vector.multi_reduction <add>, %484, %cst_187 [1] : vector<16x32xf32> to vector<16xf32>
    %486 = vector.shape_cast %485 : vector<16xf32> to vector<16x1xf32>
    %cst_188 = arith.constant 3.200000e+01 : f32
    %487 = vector.broadcast %cst_188 : f32 to vector<16x1xf32>
    %488 = arith.divf %486, %487 : vector<16x1xf32>
    %cst_189 = arith.constant 9.99999974E-6 : f32
    %489 = vector.broadcast %cst_189 : f32 to vector<16x1xf32>
    %490 = arith.addf %488, %489 : vector<16x1xf32>
    %491 = math.rsqrt %490 : vector<16x1xf32>
    %492 = vector.broadcast %491 : vector<16x1xf32> to vector<16x32xf32>
    %493 = arith.mulf %483, %492 : vector<16x32xf32>
    %494 = vector.broadcast %476 : vector<1x32xf32> to vector<16x32xf32>
    %495 = arith.mulf %493, %494 : vector<16x32xf32>
    %496 = vector.broadcast %477 : vector<1x32xf32> to vector<16x32xf32>
    %497 = arith.addf %495, %496 : vector<16x32xf32>
    %498 = arith.truncf %497 : vector<16x32xf32> to vector<16x32xbf16>
    %c0_190 = arith.constant 0 : index
    %c0_191 = arith.constant 0 : index
    %499 = vector.load %arg14[%c0_190, %c0_191] : memref<32x32xbf16, #tpu.memory_space<vmem>>, vector<32x32xbf16>
    %cst_192 = arith.constant dense<0.000000e+00> : vector<16x32xf32>
    %500 = tpu.matmul %498, %499, %cst_192 {dimension_numbers = #tpu.dot_dimension_numbers<[1], [0], [0], [1], [0, 0, 1, 1], [], []>} : vector<16x32xbf16>, vector<32x32xbf16>, vector<16x32xf32> -> vector<16x32xf32>
    %c0_193 = arith.constant 0 : index
    %c0_194 = arith.constant 0 : index
    %501 = vector.load %arg15[%c0_193, %c0_194] : memref<1x32xf32, #tpu.memory_space<vmem>>, vector<1x32xf32>
    %502 = vector.broadcast %501 : vector<1x32xf32> to vector<16x32xf32>
    %503 = arith.addf %500, %502 : vector<16x32xf32>
    %504 = vector.shape_cast %503 : vector<16x32xf32> to vector<2x8x32xf32>
    %c0_195 = arith.constant 0 : index
    %c0_196 = arith.constant 0 : index
    %c0_197 = arith.constant 0 : index
    %505 = vector.load %arg3[%c0_195, %c0_196, %c0_197] : memref<2x12x32xf32, #tpu.memory_space<vmem>>, vector<2x12x32xf32>
    %506 = vector.shape_cast %505 : vector<2x12x32xf32> to vector<24x32xf32>
    %507 = arith.truncf %506 : vector<24x32xf32> to vector<24x32xbf16>
    %c0_198 = arith.constant 0 : index
    %c0_199 = arith.constant 0 : index
    %508 = vector.load %arg16[%c0_198, %c0_199] : memref<32x64xbf16, #tpu.memory_space<vmem>>, vector<32x64xbf16>
    %cst_200 = arith.constant dense<0.000000e+00> : vector<24x64xf32>
    %509 = tpu.matmul %507, %508, %cst_200 {dimension_numbers = #tpu.dot_dimension_numbers<[1], [0], [0], [1], [0, 0, 1, 1], [], []>} : vector<24x32xbf16>, vector<32x64xbf16>, vector<24x64xf32> -> vector<24x64xf32>
    %c0_201 = arith.constant 0 : index
    %c0_202 = arith.constant 0 : index
    %510 = vector.load %arg17[%c0_201, %c0_202] : memref<1x64xf32, #tpu.memory_space<vmem>>, vector<1x64xf32>
    %511 = vector.broadcast %510 : vector<1x64xf32> to vector<24x64xf32>
    %512 = arith.addf %509, %511 : vector<24x64xf32>
    %513 = vector.shape_cast %512 : vector<24x64xf32> to vector<2x12x64xf32>
    %514 = vector.extract_strided_slice %513 {offsets = [0, 0, 0], sizes = [2, 12, 32], strides = [1, 1, 1]} : vector<2x12x64xf32> to vector<2x12x32xf32>
    %515 = vector.extract_strided_slice %513 {offsets = [0, 0, 32], sizes = [2, 12, 32], strides = [1, 1, 1]} : vector<2x12x64xf32> to vector<2x12x32xf32>
    %cst_203 = arith.constant 0.353553385 : f32
    %516 = vector.broadcast %cst_203 : f32 to vector<2x8x32xf32>
    %517 = arith.mulf %504, %516 : vector<2x8x32xf32>
    %518 = arith.truncf %517 : vector<2x8x32xf32> to vector<2x8x32xbf16>
    %519 = arith.truncf %514 : vector<2x12x32xf32> to vector<2x12x32xbf16>
    %520 = arith.truncf %515 : vector<2x12x32xf32> to vector<2x12x32xbf16>
    %cst_204 = arith.constant 0.000000e+00 : f32
    %521 = vector.broadcast %cst_204 : f32 to vector<8x116xf32>
    %522 = vector.extract_strided_slice %518 {offsets = [0, 0, 0], sizes = [1, 8, 32], strides = [1, 1, 1]} : vector<2x8x32xbf16> to vector<1x8x32xbf16>
    %523 = vector.shape_cast %522 : vector<1x8x32xbf16> to vector<8x32xbf16>
    %524 = vector.extract_strided_slice %519 {offsets = [0, 0, 0], sizes = [1, 12, 32], strides = [1, 1, 1]} : vector<2x12x32xbf16> to vector<1x12x32xbf16>
    %525 = vector.shape_cast %524 : vector<1x12x32xbf16> to vector<12x32xbf16>
    %526 = vector.extract_strided_slice %520 {offsets = [0, 0, 0], sizes = [1, 12, 32], strides = [1, 1, 1]} : vector<2x12x32xbf16> to vector<1x12x32xbf16>
    %527 = vector.shape_cast %526 : vector<1x12x32xbf16> to vector<12x32xbf16>
    %cst_205 = arith.constant 0.000000e+00 : f32
    %528 = vector.broadcast %cst_205 : f32 to vector<8x12xf32>
    %529 = vector.extract_strided_slice %523 {offsets = [0, 0], sizes = [8, 8], strides = [1, 1]} : vector<8x32xbf16> to vector<8x8xbf16>
    %530 = vector.extract_strided_slice %525 {offsets = [0, 0], sizes = [12, 8], strides = [1, 1]} : vector<12x32xbf16> to vector<12x8xbf16>
    %cst_206 = arith.constant dense<0.000000e+00> : vector<8x12xf32>
    %531 = tpu.matmul %529, %530, %cst_206 {dimension_numbers = #tpu.dot_dimension_numbers<[1], [1], [0], [0], [0, 0, 1, 0], [], []>} : vector<8x8xbf16>, vector<12x8xbf16>, vector<8x12xf32> -> vector<8x12xf32>
    %cst_207 = arith.constant dense<0xFF800000> : vector<8xf32>
    %532 = vector.multi_reduction <maximumf>, %531, %cst_207 [1] : vector<8x12xf32> to vector<8xf32>
    %533 = vector.shape_cast %532 : vector<8xf32> to vector<8x1xf32>
    %534 = vector.broadcast %533 : vector<8x1xf32> to vector<8x12xf32>
    %535 = arith.subf %531, %534 : vector<8x12xf32>
    %536 = math.exp %535 : vector<8x12xf32>
    %cst_208 = arith.constant dense<0.000000e+00> : vector<8xf32>
    %537 = vector.multi_reduction <add>, %536, %cst_208 [1] : vector<8x12xf32> to vector<8xf32>
    %538 = vector.shape_cast %537 : vector<8xf32> to vector<8x1xf32>
    %539 = tpu.reciprocal %538 {approx = true} : vector<8x1xf32> -> vector<8x1xf32>
    %540 = vector.broadcast %539 : vector<8x1xf32> to vector<8x12xf32>
    %541 = arith.mulf %536, %540 : vector<8x12xf32>
    %542 = arith.addf %528, %541 : vector<8x12xf32>
    %543 = arith.truncf %541 : vector<8x12xf32> to vector<8x12xbf16>
    %544 = vector.extract_strided_slice %527 {offsets = [0, 0], sizes = [12, 8], strides = [1, 1]} : vector<12x32xbf16> to vector<12x8xbf16>
    %cst_209 = arith.constant dense<0.000000e+00> : vector<8x8xf32>
    %545 = tpu.matmul %543, %544, %cst_209 {dimension_numbers = #tpu.dot_dimension_numbers<[1], [0], [0], [1], [0, 0, 1, 1], [], []>} : vector<8x12xbf16>, vector<12x8xbf16>, vector<8x8xf32> -> vector<8x8xf32>
    %c0_210 = arith.constant 0 : index
    %c0_211 = arith.constant 0 : index
    %c0_212 = arith.constant 0 : index
    %546 = vector.load %arg29[%c0_210, %c0_211, %c0_212] : memref<2x8x32xf32, #tpu.memory_space<vmem>>, vector<1x8x8xf32>
    %547 = vector.shape_cast %546 : vector<1x8x8xf32> to vector<8x8xf32>
    %548 = vector.shape_cast %545 : vector<8x8xf32> to vector<1x8x8xf32>
    tpu.vector_store %arg29[%c0_210, %c0_211, %c0_212], %548 {strides = array<i32>} : memref<2x8x32xf32, #tpu.memory_space<vmem>>, vector<1x8x8xf32>,
    %549 = vector.extract_strided_slice %523 {offsets = [0, 8], sizes = [8, 8], strides = [1, 1]} : vector<8x32xbf16> to vector<8x8xbf16>
    %550 = vector.extract_strided_slice %525 {offsets = [0, 8], sizes = [12, 8], strides = [1, 1]} : vector<12x32xbf16> to vector<12x8xbf16>
    %cst_213 = arith.constant dense<0.000000e+00> : vector<8x12xf32>
    %551 = tpu.matmul %549, %550, %cst_213 {dimension_numbers = #tpu.dot_dimension_numbers<[1], [1], [0], [0], [0, 0, 1, 0], [], []>} : vector<8x8xbf16>, vector<12x8xbf16>, vector<8x12xf32> -> vector<8x12xf32>
    %cst_214 = arith.constant dense<0xFF800000> : vector<8xf32>
    %552 = vector.multi_reduction <maximumf>, %551, %cst_214 [1] : vector<8x12xf32> to vector<8xf32>
    %553 = vector.shape_cast %552 : vector<8xf32> to vector<8x1xf32>
    %554 = vector.broadcast %553 : vector<8x1xf32> to vector<8x12xf32>
    %555 = arith.subf %551, %554 : vector<8x12xf32>
    %556 = math.exp %555 : vector<8x12xf32>
    %cst_215 = arith.constant dense<0.000000e+00> : vector<8xf32>
    %557 = vector.multi_reduction <add>, %556, %cst_215 [1] : vector<8x12xf32> to vector<8xf32>
    %558 = vector.shape_cast %557 : vector<8xf32> to vector<8x1xf32>
    %559 = tpu.reciprocal %558 {approx = true} : vector<8x1xf32> -> vector<8x1xf32>
    %560 = vector.broadcast %559 : vector<8x1xf32> to vector<8x12xf32>
    %561 = arith.mulf %556, %560 : vector<8x12xf32>
    %562 = arith.addf %542, %561 : vector<8x12xf32>
    %563 = arith.truncf %561 : vector<8x12xf32> to vector<8x12xbf16>
    %564 = vector.extract_strided_slice %527 {offsets = [0, 8], sizes = [12, 8], strides = [1, 1]} : vector<12x32xbf16> to vector<12x8xbf16>
    %cst_216 = arith.constant dense<0.000000e+00> : vector<8x8xf32>
    %565 = tpu.matmul %563, %564, %cst_216 {dimension_numbers = #tpu.dot_dimension_numbers<[1], [0], [0], [1], [0, 0, 1, 1], [], []>} : vector<8x12xbf16>, vector<12x8xbf16>, vector<8x8xf32> -> vector<8x8xf32>
    %c0_217 = arith.constant 0 : index
    %c0_218 = arith.constant 0 : index
    %c8_219 = arith.constant 8 : index
    %566 = vector.load %arg29[%c0_217, %c0_218, %c8_219] : memref<2x8x32xf32, #tpu.memory_space<vmem>>, vector<1x8x8xf32>
    %567 = vector.shape_cast %566 : vector<1x8x8xf32> to vector<8x8xf32>
    %568 = vector.shape_cast %565 : vector<8x8xf32> to vector<1x8x8xf32>
    tpu.vector_store %arg29[%c0_217, %c0_218, %c8_219], %568 {strides = array<i32>} : memref<2x8x32xf32, #tpu.memory_space<vmem>>, vector<1x8x8xf32>,
    %569 = vector.extract_strided_slice %523 {offsets = [0, 16], sizes = [8, 8], strides = [1, 1]} : vector<8x32xbf16> to vector<8x8xbf16>
    %570 = vector.extract_strided_slice %525 {offsets = [0, 16], sizes = [12, 8], strides = [1, 1]} : vector<12x32xbf16> to vector<12x8xbf16>
    %cst_220 = arith.constant dense<0.000000e+00> : vector<8x12xf32>
    %571 = tpu.matmul %569, %570, %cst_220 {dimension_numbers = #tpu.dot_dimension_numbers<[1], [1], [0], [0], [0, 0, 1, 0], [], []>} : vector<8x8xbf16>, vector<12x8xbf16>, vector<8x12xf32> -> vector<8x12xf32>
    %cst_221 = arith.constant dense<0xFF800000> : vector<8xf32>
    %572 = vector.multi_reduction <maximumf>, %571, %cst_221 [1] : vector<8x12xf32> to vector<8xf32>
    %573 = vector.shape_cast %572 : vector<8xf32> to vector<8x1xf32>
    %574 = vector.broadcast %573 : vector<8x1xf32> to vector<8x12xf32>
    %575 = arith.subf %571, %574 : vector<8x12xf32>
    %576 = math.exp %575 : vector<8x12xf32>
    %cst_222 = arith.constant dense<0.000000e+00> : vector<8xf32>
    %577 = vector.multi_reduction <add>, %576, %cst_222 [1] : vector<8x12xf32> to vector<8xf32>
    %578 = vector.shape_cast %577 : vector<8xf32> to vector<8x1xf32>
    %579 = tpu.reciprocal %578 {approx = true} : vector<8x1xf32> -> vector<8x1xf32>
    %580 = vector.broadcast %579 : vector<8x1xf32> to vector<8x12xf32>
    %581 = arith.mulf %576, %580 : vector<8x12xf32>
    %582 = arith.addf %562, %581 : vector<8x12xf32>
    %583 = arith.truncf %581 : vector<8x12xf32> to vector<8x12xbf16>
    %584 = vector.extract_strided_slice %527 {offsets = [0, 16], sizes = [12, 8], strides = [1, 1]} : vector<12x32xbf16> to vector<12x8xbf16>
    %cst_223 = arith.constant dense<0.000000e+00> : vector<8x8xf32>
    %585 = tpu.matmul %583, %584, %cst_223 {dimension_numbers = #tpu.dot_dimension_numbers<[1], [0], [0], [1], [0, 0, 1, 1], [], []>} : vector<8x12xbf16>, vector<12x8xbf16>, vector<8x8xf32> -> vector<8x8xf32>
    %c0_224 = arith.constant 0 : index
    %c0_225 = arith.constant 0 : index
    %c16_226 = arith.constant 16 : index
    %586 = vector.load %arg29[%c0_224, %c0_225, %c16_226] : memref<2x8x32xf32, #tpu.memory_space<vmem>>, vector<1x8x8xf32>
    %587 = vector.shape_cast %586 : vector<1x8x8xf32> to vector<8x8xf32>
    %588 = vector.shape_cast %585 : vector<8x8xf32> to vector<1x8x8xf32>
    tpu.vector_store %arg29[%c0_224, %c0_225, %c16_226], %588 {strides = array<i32>} : memref<2x8x32xf32, #tpu.memory_space<vmem>>, vector<1x8x8xf32>,
    %589 = vector.extract_strided_slice %523 {offsets = [0, 24], sizes = [8, 8], strides = [1, 1]} : vector<8x32xbf16> to vector<8x8xbf16>
    %590 = vector.extract_strided_slice %525 {offsets = [0, 24], sizes = [12, 8], strides = [1, 1]} : vector<12x32xbf16> to vector<12x8xbf16>
    %cst_227 = arith.constant dense<0.000000e+00> : vector<8x12xf32>
    %591 = tpu.matmul %589, %590, %cst_227 {dimension_numbers = #tpu.dot_dimension_numbers<[1], [1], [0], [0], [0, 0, 1, 0], [], []>} : vector<8x8xbf16>, vector<12x8xbf16>, vector<8x12xf32> -> vector<8x12xf32>
    %cst_228 = arith.constant dense<0xFF800000> : vector<8xf32>
    %592 = vector.multi_reduction <maximumf>, %591, %cst_228 [1] : vector<8x12xf32> to vector<8xf32>
    %593 = vector.shape_cast %592 : vector<8xf32> to vector<8x1xf32>
    %594 = vector.broadcast %593 : vector<8x1xf32> to vector<8x12xf32>
    %595 = arith.subf %591, %594 : vector<8x12xf32>
    %596 = math.exp %595 : vector<8x12xf32>
    %cst_229 = arith.constant dense<0.000000e+00> : vector<8xf32>
    %597 = vector.multi_reduction <add>, %596, %cst_229 [1] : vector<8x12xf32> to vector<8xf32>
    %598 = vector.shape_cast %597 : vector<8xf32> to vector<8x1xf32>
    %599 = tpu.reciprocal %598 {approx = true} : vector<8x1xf32> -> vector<8x1xf32>
    %600 = vector.broadcast %599 : vector<8x1xf32> to vector<8x12xf32>
    %601 = arith.mulf %596, %600 : vector<8x12xf32>
    %602 = arith.addf %582, %601 : vector<8x12xf32>
    %603 = arith.truncf %601 : vector<8x12xf32> to vector<8x12xbf16>
    %604 = vector.extract_strided_slice %527 {offsets = [0, 24], sizes = [12, 8], strides = [1, 1]} : vector<12x32xbf16> to vector<12x8xbf16>
    %cst_230 = arith.constant dense<0.000000e+00> : vector<8x8xf32>
    %605 = tpu.matmul %603, %604, %cst_230 {dimension_numbers = #tpu.dot_dimension_numbers<[1], [0], [0], [1], [0, 0, 1, 1], [], []>} : vector<8x12xbf16>, vector<12x8xbf16>, vector<8x8xf32> -> vector<8x8xf32>
    %c0_231 = arith.constant 0 : index
    %c0_232 = arith.constant 0 : index
    %c24_233 = arith.constant 24 : index
    %606 = vector.load %arg29[%c0_231, %c0_232, %c24_233] : memref<2x8x32xf32, #tpu.memory_space<vmem>>, vector<1x8x8xf32>
    %607 = vector.shape_cast %606 : vector<1x8x8xf32> to vector<8x8xf32>
    %608 = vector.shape_cast %605 : vector<8x8xf32> to vector<1x8x8xf32>
    tpu.vector_store %arg29[%c0_231, %c0_232, %c24_233], %608 {strides = array<i32>} : memref<2x8x32xf32, #tpu.memory_space<vmem>>, vector<1x8x8xf32>,
    %cst_234 = arith.constant 2.500000e-01 : f32
    %609 = vector.broadcast %cst_234 : f32 to vector<8x12xf32>
    %610 = arith.mulf %602, %609 : vector<8x12xf32>
    %611 = tpu.concatenate %610, %521 in 1 : vector<8x12xf32>, vector<8x116xf32> -> vector<8x128xf32>
    %c0_235 = arith.constant 0 : index
    %c0_236 = arith.constant 0 : index
    %c0_237 = arith.constant 0 : index
    %612 = vector.load %arg28[%c0_235, %c0_236, %c0_237] : memref<2x8x128xf32, #tpu.memory_space<vmem>>, vector<1x8x128xf32>
    %613 = vector.shape_cast %612 : vector<1x8x128xf32> to vector<8x128xf32>
    %614 = vector.shape_cast %611 : vector<8x128xf32> to vector<1x8x128xf32>
    tpu.vector_store %arg28[%c0_235, %c0_236, %c0_237], %614 {strides = array<i32>} : memref<2x8x128xf32, #tpu.memory_space<vmem>>, vector<1x8x128xf32>,
    %615 = vector.extract_strided_slice %518 {offsets = [1, 0, 0], sizes = [1, 8, 32], strides = [1, 1, 1]} : vector<2x8x32xbf16> to vector<1x8x32xbf16>
    %616 = vector.shape_cast %615 : vector<1x8x32xbf16> to vector<8x32xbf16>
    %617 = vector.extract_strided_slice %519 {offsets = [1, 0, 0], sizes = [1, 12, 32], strides = [1, 1, 1]} : vector<2x12x32xbf16> to vector<1x12x32xbf16>
    %618 = vector.shape_cast %617 : vector<1x12x32xbf16> to vector<12x32xbf16>
    %619 = vector.extract_strided_slice %520 {offsets = [1, 0, 0], sizes = [1, 12, 32], strides = [1, 1, 1]} : vector<2x12x32xbf16> to vector<1x12x32xbf16>
    %620 = vector.shape_cast %619 : vector<1x12x32xbf16> to vector<12x32xbf16>
    %cst_238 = arith.constant 0.000000e+00 : f32
    %621 = vector.broadcast %cst_238 : f32 to vector<8x12xf32>
    %622 = vector.extract_strided_slice %616 {offsets = [0, 0], sizes = [8, 8], strides = [1, 1]} : vector<8x32xbf16> to vector<8x8xbf16>
    %623 = vector.extract_strided_slice %618 {offsets = [0, 0], sizes = [12, 8], strides = [1, 1]} : vector<12x32xbf16> to vector<12x8xbf16>
    %cst_239 = arith.constant dense<0.000000e+00> : vector<8x12xf32>
    %624 = tpu.matmul %622, %623, %cst_239 {dimension_numbers = #tpu.dot_dimension_numbers<[1], [1], [0], [0], [0, 0, 1, 0], [], []>} : vector<8x8xbf16>, vector<12x8xbf16>, vector<8x12xf32> -> vector<8x12xf32>
    %cst_240 = arith.constant dense<0xFF800000> : vector<8xf32>
    %625 = vector.multi_reduction <maximumf>, %624, %cst_240 [1] : vector<8x12xf32> to vector<8xf32>
    %626 = vector.shape_cast %625 : vector<8xf32> to vector<8x1xf32>
    %627 = vector.broadcast %626 : vector<8x1xf32> to vector<8x12xf32>
    %628 = arith.subf %624, %627 : vector<8x12xf32>
    %629 = math.exp %628 : vector<8x12xf32>
    %cst_241 = arith.constant dense<0.000000e+00> : vector<8xf32>
    %630 = vector.multi_reduction <add>, %629, %cst_241 [1] : vector<8x12xf32> to vector<8xf32>
    %631 = vector.shape_cast %630 : vector<8xf32> to vector<8x1xf32>
    %632 = tpu.reciprocal %631 {approx = true} : vector<8x1xf32> -> vector<8x1xf32>
    %633 = vector.broadcast %632 : vector<8x1xf32> to vector<8x12xf32>
    %634 = arith.mulf %629, %633 : vector<8x12xf32>
    %635 = arith.addf %621, %634 : vector<8x12xf32>
    %636 = arith.truncf %634 : vector<8x12xf32> to vector<8x12xbf16>
    %637 = vector.extract_strided_slice %620 {offsets = [0, 0], sizes = [12, 8], strides = [1, 1]} : vector<12x32xbf16> to vector<12x8xbf16>
    %cst_242 = arith.constant dense<0.000000e+00> : vector<8x8xf32>
    %638 = tpu.matmul %636, %637, %cst_242 {dimension_numbers = #tpu.dot_dimension_numbers<[1], [0], [0], [1], [0, 0, 1, 1], [], []>} : vector<8x12xbf16>, vector<12x8xbf16>, vector<8x8xf32> -> vector<8x8xf32>
    %c1_243 = arith.constant 1 : index
    %c0_244 = arith.constant 0 : index
    %c0_245 = arith.constant 0 : index
    %639 = vector.load %arg29[%c1_243, %c0_244, %c0_245] : memref<2x8x32xf32, #tpu.memory_space<vmem>>, vector<1x8x8xf32>
    %640 = vector.shape_cast %639 : vector<1x8x8xf32> to vector<8x8xf32>
    %641 = vector.shape_cast %638 : vector<8x8xf32> to vector<1x8x8xf32>
    tpu.vector_store %arg29[%c1_243, %c0_244, %c0_245], %641 {strides = array<i32>} : memref<2x8x32xf32, #tpu.memory_space<vmem>>, vector<1x8x8xf32>,
    %642 = vector.extract_strided_slice %616 {offsets = [0, 8], sizes = [8, 8], strides = [1, 1]} : vector<8x32xbf16> to vector<8x8xbf16>
    %643 = vector.extract_strided_slice %618 {offsets = [0, 8], sizes = [12, 8], strides = [1, 1]} : vector<12x32xbf16> to vector<12x8xbf16>
    %cst_246 = arith.constant dense<0.000000e+00> : vector<8x12xf32>
    %644 = tpu.matmul %642, %643, %cst_246 {dimension_numbers = #tpu.dot_dimension_numbers<[1], [1], [0], [0], [0, 0, 1, 0], [], []>} : vector<8x8xbf16>, vector<12x8xbf16>, vector<8x12xf32> -> vector<8x12xf32>
    %cst_247 = arith.constant dense<0xFF800000> : vector<8xf32>
    %645 = vector.multi_reduction <maximumf>, %644, %cst_247 [1] : vector<8x12xf32> to vector<8xf32>
    %646 = vector.shape_cast %645 : vector<8xf32> to vector<8x1xf32>
    %647 = vector.broadcast %646 : vector<8x1xf32> to vector<8x12xf32>
    %648 = arith.subf %644, %647 : vector<8x12xf32>
    %649 = math.exp %648 : vector<8x12xf32>
    %cst_248 = arith.constant dense<0.000000e+00> : vector<8xf32>
    %650 = vector.multi_reduction <add>, %649, %cst_248 [1] : vector<8x12xf32> to vector<8xf32>
    %651 = vector.shape_cast %650 : vector<8xf32> to vector<8x1xf32>
    %652 = tpu.reciprocal %651 {approx = true} : vector<8x1xf32> -> vector<8x1xf32>
    %653 = vector.broadcast %652 : vector<8x1xf32> to vector<8x12xf32>
    %654 = arith.mulf %649, %653 : vector<8x12xf32>
    %655 = arith.addf %635, %654 : vector<8x12xf32>
    %656 = arith.truncf %654 : vector<8x12xf32> to vector<8x12xbf16>
    %657 = vector.extract_strided_slice %620 {offsets = [0, 8], sizes = [12, 8], strides = [1, 1]} : vector<12x32xbf16> to vector<12x8xbf16>
    %cst_249 = arith.constant dense<0.000000e+00> : vector<8x8xf32>
    %658 = tpu.matmul %656, %657, %cst_249 {dimension_numbers = #tpu.dot_dimension_numbers<[1], [0], [0], [1], [0, 0, 1, 1], [], []>} : vector<8x12xbf16>, vector<12x8xbf16>, vector<8x8xf32> -> vector<8x8xf32>
    %c1_250 = arith.constant 1 : index
    %c0_251 = arith.constant 0 : index
    %c8_252 = arith.constant 8 : index
    %659 = vector.load %arg29[%c1_250, %c0_251, %c8_252] : memref<2x8x32xf32, #tpu.memory_space<vmem>>, vector<1x8x8xf32>
    %660 = vector.shape_cast %659 : vector<1x8x8xf32> to vector<8x8xf32>
    %661 = vector.shape_cast %658 : vector<8x8xf32> to vector<1x8x8xf32>
    tpu.vector_store %arg29[%c1_250, %c0_251, %c8_252], %661 {strides = array<i32>} : memref<2x8x32xf32, #tpu.memory_space<vmem>>, vector<1x8x8xf32>,
    %662 = vector.extract_strided_slice %616 {offsets = [0, 16], sizes = [8, 8], strides = [1, 1]} : vector<8x32xbf16> to vector<8x8xbf16>
    %663 = vector.extract_strided_slice %618 {offsets = [0, 16], sizes = [12, 8], strides = [1, 1]} : vector<12x32xbf16> to vector<12x8xbf16>
    %cst_253 = arith.constant dense<0.000000e+00> : vector<8x12xf32>
    %664 = tpu.matmul %662, %663, %cst_253 {dimension_numbers = #tpu.dot_dimension_numbers<[1], [1], [0], [0], [0, 0, 1, 0], [], []>} : vector<8x8xbf16>, vector<12x8xbf16>, vector<8x12xf32> -> vector<8x12xf32>
    %cst_254 = arith.constant dense<0xFF800000> : vector<8xf32>
    %665 = vector.multi_reduction <maximumf>, %664, %cst_254 [1] : vector<8x12xf32> to vector<8xf32>
    %666 = vector.shape_cast %665 : vector<8xf32> to vector<8x1xf32>
    %667 = vector.broadcast %666 : vector<8x1xf32> to vector<8x12xf32>
    %668 = arith.subf %664, %667 : vector<8x12xf32>
    %669 = math.exp %668 : vector<8x12xf32>
    %cst_255 = arith.constant dense<0.000000e+00> : vector<8xf32>
    %670 = vector.multi_reduction <add>, %669, %cst_255 [1] : vector<8x12xf32> to vector<8xf32>
    %671 = vector.shape_cast %670 : vector<8xf32> to vector<8x1xf32>
    %672 = tpu.reciprocal %671 {approx = true} : vector<8x1xf32> -> vector<8x1xf32>
    %673 = vector.broadcast %672 : vector<8x1xf32> to vector<8x12xf32>
    %674 = arith.mulf %669, %673 : vector<8x12xf32>
    %675 = arith.addf %655, %674 : vector<8x12xf32>
    %676 = arith.truncf %674 : vector<8x12xf32> to vector<8x12xbf16>
    %677 = vector.extract_strided_slice %620 {offsets = [0, 16], sizes = [12, 8], strides = [1, 1]} : vector<12x32xbf16> to vector<12x8xbf16>
    %cst_256 = arith.constant dense<0.000000e+00> : vector<8x8xf32>
    %678 = tpu.matmul %676, %677, %cst_256 {dimension_numbers = #tpu.dot_dimension_numbers<[1], [0], [0], [1], [0, 0, 1, 1], [], []>} : vector<8x12xbf16>, vector<12x8xbf16>, vector<8x8xf32> -> vector<8x8xf32>
    %c1_257 = arith.constant 1 : index
    %c0_258 = arith.constant 0 : index
    %c16_259 = arith.constant 16 : index
    %679 = vector.load %arg29[%c1_257, %c0_258, %c16_259] : memref<2x8x32xf32, #tpu.memory_space<vmem>>, vector<1x8x8xf32>
    %680 = vector.shape_cast %679 : vector<1x8x8xf32> to vector<8x8xf32>
    %681 = vector.shape_cast %678 : vector<8x8xf32> to vector<1x8x8xf32>
    tpu.vector_store %arg29[%c1_257, %c0_258, %c16_259], %681 {strides = array<i32>} : memref<2x8x32xf32, #tpu.memory_space<vmem>>, vector<1x8x8xf32>,
    %682 = vector.extract_strided_slice %616 {offsets = [0, 24], sizes = [8, 8], strides = [1, 1]} : vector<8x32xbf16> to vector<8x8xbf16>
    %683 = vector.extract_strided_slice %618 {offsets = [0, 24], sizes = [12, 8], strides = [1, 1]} : vector<12x32xbf16> to vector<12x8xbf16>
    %cst_260 = arith.constant dense<0.000000e+00> : vector<8x12xf32>
    %684 = tpu.matmul %682, %683, %cst_260 {dimension_numbers = #tpu.dot_dimension_numbers<[1], [1], [0], [0], [0, 0, 1, 0], [], []>} : vector<8x8xbf16>, vector<12x8xbf16>, vector<8x12xf32> -> vector<8x12xf32>
    %cst_261 = arith.constant dense<0xFF800000> : vector<8xf32>
    %685 = vector.multi_reduction <maximumf>, %684, %cst_261 [1] : vector<8x12xf32> to vector<8xf32>
    %686 = vector.shape_cast %685 : vector<8xf32> to vector<8x1xf32>
    %687 = vector.broadcast %686 : vector<8x1xf32> to vector<8x12xf32>
    %688 = arith.subf %684, %687 : vector<8x12xf32>
    %689 = math.exp %688 : vector<8x12xf32>
    %cst_262 = arith.constant dense<0.000000e+00> : vector<8xf32>
    %690 = vector.multi_reduction <add>, %689, %cst_262 [1] : vector<8x12xf32> to vector<8xf32>
    %691 = vector.shape_cast %690 : vector<8xf32> to vector<8x1xf32>
    %692 = tpu.reciprocal %691 {approx = true} : vector<8x1xf32> -> vector<8x1xf32>
    %693 = vector.broadcast %692 : vector<8x1xf32> to vector<8x12xf32>
    %694 = arith.mulf %689, %693 : vector<8x12xf32>
    %695 = arith.addf %675, %694 : vector<8x12xf32>
    %696 = arith.truncf %694 : vector<8x12xf32> to vector<8x12xbf16>
    %697 = vector.extract_strided_slice %620 {offsets = [0, 24], sizes = [12, 8], strides = [1, 1]} : vector<12x32xbf16> to vector<12x8xbf16>
    %cst_263 = arith.constant dense<0.000000e+00> : vector<8x8xf32>
    %698 = tpu.matmul %696, %697, %cst_263 {dimension_numbers = #tpu.dot_dimension_numbers<[1], [0], [0], [1], [0, 0, 1, 1], [], []>} : vector<8x12xbf16>, vector<12x8xbf16>, vector<8x8xf32> -> vector<8x8xf32>
    %c1_264 = arith.constant 1 : index
    %c0_265 = arith.constant 0 : index
    %c24_266 = arith.constant 24 : index
    %699 = vector.load %arg29[%c1_264, %c0_265, %c24_266] : memref<2x8x32xf32, #tpu.memory_space<vmem>>, vector<1x8x8xf32>
    %700 = vector.shape_cast %699 : vector<1x8x8xf32> to vector<8x8xf32>
    %701 = vector.shape_cast %698 : vector<8x8xf32> to vector<1x8x8xf32>
    tpu.vector_store %arg29[%c1_264, %c0_265, %c24_266], %701 {strides = array<i32>} : memref<2x8x32xf32, #tpu.memory_space<vmem>>, vector<1x8x8xf32>,
    %cst_267 = arith.constant 2.500000e-01 : f32
    %702 = vector.broadcast %cst_267 : f32 to vector<8x12xf32>
    %703 = arith.mulf %695, %702 : vector<8x12xf32>
    %704 = tpu.concatenate %703, %521 in 1 : vector<8x12xf32>, vector<8x116xf32> -> vector<8x128xf32>
    %c1_268 = arith.constant 1 : index
    %c0_269 = arith.constant 0 : index
    %c0_270 = arith.constant 0 : index
    %705 = vector.load %arg28[%c1_268, %c0_269, %c0_270] : memref<2x8x128xf32, #tpu.memory_space<vmem>>, vector<1x8x128xf32>
    %706 = vector.shape_cast %705 : vector<1x8x128xf32> to vector<8x128xf32>
    %707 = vector.shape_cast %704 : vector<8x128xf32> to vector<1x8x128xf32>
    tpu.vector_store %arg28[%c1_268, %c0_269, %c0_270], %707 {strides = array<i32>} : memref<2x8x128xf32, #tpu.memory_space<vmem>>, vector<1x8x128xf32>,
    %c0_271 = arith.constant 0 : index
    %c0_272 = arith.constant 0 : index
    %c0_273 = arith.constant 0 : index
    %708 = vector.load %arg29[%c0_271, %c0_272, %c0_273] : memref<2x8x32xf32, #tpu.memory_space<vmem>>, vector<2x8x32xf32>
    %709 = vector.shape_cast %708 : vector<2x8x32xf32> to vector<16x32xf32>
    %710 = arith.truncf %709 : vector<16x32xf32> to vector<16x32xbf16>
    %c0_274 = arith.constant 0 : index
    %c0_275 = arith.constant 0 : index
    %711 = vector.load %arg18[%c0_274, %c0_275] : memref<32x32xbf16, #tpu.memory_space<vmem>>, vector<32x32xbf16>
    %cst_276 = arith.constant dense<0.000000e+00> : vector<16x32xf32>
    %712 = tpu.matmul %710, %711, %cst_276 {dimension_numbers = #tpu.dot_dimension_numbers<[1], [0], [0], [1], [0, 0, 1, 1], [], []>} : vector<16x32xbf16>, vector<32x32xbf16>, vector<16x32xf32> -> vector<16x32xf32>
    %c0_277 = arith.constant 0 : index
    %c0_278 = arith.constant 0 : index
    %713 = vector.load %arg19[%c0_277, %c0_278] : memref<1x32xf32, #tpu.memory_space<vmem>>, vector<1x32xf32>
    %714 = vector.broadcast %713 : vector<1x32xf32> to vector<16x32xf32>
    %715 = arith.addf %712, %714 : vector<16x32xf32>
    %716 = arith.addf %497, %715 : vector<16x32xf32>
    %c6 = arith.constant 6 : index
    %c0_279 = arith.constant 0 : index
    %717 = vector.load %arg24[%c6, %c0_279] : memref<8x32xf32, #tpu.memory_space<vmem>>, vector<1x32xf32>
    %c7 = arith.constant 7 : index
    %c0_280 = arith.constant 0 : index
    %718 = vector.load %arg24[%c7, %c0_280] : memref<8x32xf32, #tpu.memory_space<vmem>>, vector<1x32xf32>
    %cst_281 = arith.constant dense<0.000000e+00> : vector<16xf32>
    %719 = vector.multi_reduction <add>, %716, %cst_281 [1] : vector<16x32xf32> to vector<16xf32>
    %720 = vector.shape_cast %719 : vector<16xf32> to vector<16x1xf32>
    %cst_282 = arith.constant 3.200000e+01 : f32
    %721 = vector.broadcast %cst_282 : f32 to vector<16x1xf32>
    %722 = arith.divf %720, %721 : vector<16x1xf32>
    %723 = vector.broadcast %722 : vector<16x1xf32> to vector<16x32xf32>
    %724 = arith.subf %716, %723 : vector<16x32xf32>
    %725 = arith.mulf %724, %724 : vector<16x32xf32>
    %cst_283 = arith.constant dense<0.000000e+00> : vector<16xf32>
    %726 = vector.multi_reduction <add>, %725, %cst_283 [1] : vector<16x32xf32> to vector<16xf32>
    %727 = vector.shape_cast %726 : vector<16xf32> to vector<16x1xf32>
    %cst_284 = arith.constant 3.200000e+01 : f32
    %728 = vector.broadcast %cst_284 : f32 to vector<16x1xf32>
    %729 = arith.divf %727, %728 : vector<16x1xf32>
    %cst_285 = arith.constant 9.99999974E-6 : f32
    %730 = vector.broadcast %cst_285 : f32 to vector<16x1xf32>
    %731 = arith.addf %729, %730 : vector<16x1xf32>
    %732 = math.rsqrt %731 : vector<16x1xf32>
    %733 = vector.broadcast %732 : vector<16x1xf32> to vector<16x32xf32>
    %734 = arith.mulf %724, %733 : vector<16x32xf32>
    %735 = vector.broadcast %717 : vector<1x32xf32> to vector<16x32xf32>
    %736 = arith.mulf %734, %735 : vector<16x32xf32>
    %737 = vector.broadcast %718 : vector<1x32xf32> to vector<16x32xf32>
    %738 = arith.addf %736, %737 : vector<16x32xf32>
    %739 = arith.truncf %738 : vector<16x32xf32> to vector<16x32xbf16>
    %c0_286 = arith.constant 0 : index
    %c0_287 = arith.constant 0 : index
    %740 = vector.load %arg20[%c0_286, %c0_287] : memref<32x64xbf16, #tpu.memory_space<vmem>>, vector<32x64xbf16>
    %cst_288 = arith.constant dense<0.000000e+00> : vector<16x64xf32>
    %741 = tpu.matmul %739, %740, %cst_288 {dimension_numbers = #tpu.dot_dimension_numbers<[1], [0], [0], [1], [0, 0, 1, 1], [], []>} : vector<16x32xbf16>, vector<32x64xbf16>, vector<16x64xf32> -> vector<16x64xf32>
    %c0_289 = arith.constant 0 : index
    %c0_290 = arith.constant 0 : index
    %742 = vector.load %arg21[%c0_289, %c0_290] : memref<1x64xf32, #tpu.memory_space<vmem>>, vector<1x64xf32>
    %743 = vector.broadcast %742 : vector<1x64xf32> to vector<16x64xf32>
    %744 = arith.addf %741, %743 : vector<16x64xf32>
    %cst_291 = arith.constant 0.000000e+00 : f32
    %745 = vector.broadcast %cst_291 : f32 to vector<16x64xf32>
    %746 = arith.maximumf %744, %745 : vector<16x64xf32>
    %747 = arith.truncf %746 : vector<16x64xf32> to vector<16x64xbf16>
    %c0_292 = arith.constant 0 : index
    %c0_293 = arith.constant 0 : index
    %748 = vector.load %arg22[%c0_292, %c0_293] : memref<64x32xbf16, #tpu.memory_space<vmem>>, vector<64x32xbf16>
    %cst_294 = arith.constant dense<0.000000e+00> : vector<16x32xf32>
    %749 = tpu.matmul %747, %748, %cst_294 {dimension_numbers = #tpu.dot_dimension_numbers<[1], [0], [0], [1], [0, 0, 1, 1], [], []>} : vector<16x64xbf16>, vector<64x32xbf16>, vector<16x32xf32> -> vector<16x32xf32>
    %750 = arith.addf %738, %749 : vector<16x32xf32>
    %c0_295 = arith.constant 0 : index
    %c0_296 = arith.constant 0 : index
    %751 = vector.load %arg23[%c0_295, %c0_296] : memref<1x32xf32, #tpu.memory_space<vmem>>, vector<1x32xf32>
    %752 = vector.broadcast %751 : vector<1x32xf32> to vector<16x32xf32>
    %753 = arith.addf %750, %752 : vector<16x32xf32>
    %754 = vector.shape_cast %753 : vector<16x32xf32> to vector<2x8x32xf32>
    %c0_297 = arith.constant 0 : index
    %c0_298 = arith.constant 0 : index
    %c0_299 = arith.constant 0 : index
    %755 = vector.load %arg25[%c0_297, %c0_298, %c0_299] : memref<2x8x32xf32, #tpu.memory_space<vmem>>, vector<2x8x32xf32>
    tpu.vector_store %arg25[%c0_297, %c0_298, %c0_299], %754 {strides = array<i32>} : memref<2x8x32xf32, #tpu.memory_space<vmem>>, vector<2x8x32xf32>,
    return
  }
  func.func @transform_0(%arg0: i32) -> (i32, i32, i32) {
    %c0_i32 = arith.constant 0 : i32
    %c0_i32_0 = arith.constant 0 : i32
    %c0_i32_1 = arith.constant 0 : i32
    return %arg0, %c0_i32, %c0_i32_0 : i32, i32, i32
  }
  func.func @transform_1(%arg0: i32) -> (i32, i32, i32) {
    %c0_i32 = arith.constant 0 : i32
    %c0_i32_0 = arith.constant 0 : i32
    %c0_i32_1 = arith.constant 0 : i32
    return %arg0, %c0_i32, %c0_i32_0 : i32, i32, i32
  }
  func.func @transform_2(%arg0: i32) -> (i32, i32, i32) {
    %c0_i32 = arith.constant 0 : i32
    %c0_i32_0 = arith.constant 0 : i32
    %c0_i32_1 = arith.constant 0 : i32
    return %arg0, %c0_i32, %c0_i32_0 : i32, i32, i32
  }
  func.func @transform_3(%arg0: i32) -> (i32, i32) {
    %c0_i32 = arith.constant 0 : i32
    %c0_i32_0 = arith.constant 0 : i32
    %c0_i32_1 = arith.constant 0 : i32
    return %c0_i32, %c0_i32_0 : i32, i32
  }
  func.func @transform_4(%arg0: i32) -> (i32, i32) {
    %c0_i32 = arith.constant 0 : i32
    %c0_i32_0 = arith.constant 0 : i32
    %c0_i32_1 = arith.constant 0 : i32
    return %c0_i32, %c0_i32_0 : i32, i32
  }
  func.func @transform_5(%arg0: i32) -> (i32, i32) {
    %c0_i32 = arith.constant 0 : i32
    %c0_i32_0 = arith.constant 0 : i32
    %c0_i32_1 = arith.constant 0 : i32
    return %c0_i32, %c0_i32_0 : i32, i32
  }
  func.func @transform_6(%arg0: i32) -> (i32, i32) {
    %c0_i32 = arith.constant 0 : i32
    %c0_i32_0 = arith.constant 0 : i32
    %c0_i32_1 = arith.constant 0 : i32
    return %c0_i32, %c0_i32_0 : i32, i32
  }
  func.func @transform_7(%arg0: i32) -> (i32, i32) {
    %c0_i32 = arith.constant 0 : i32
    %c0_i32_0 = arith.constant 0 : i32
    %c0_i32_1 = arith.constant 0 : i32
    return %c0_i32, %c0_i32_0 : i32, i32
  }
  func.func @transform_8(%arg0: i32) -> (i32, i32) {
    %c0_i32 = arith.constant 0 : i32
    %c0_i32_0 = arith.constant 0 : i32
    %c0_i32_1 = arith.constant 0 : i32
    return %c0_i32, %c0_i32_0 : i32, i32
  }
  func.func @transform_9(%arg0: i32) -> (i32, i32) {
    %c0_i32 = arith.constant 0 : i32
    %c0_i32_0 = arith.constant 0 : i32
    %c0_i32_1 = arith.constant 0 : i32
    return %c0_i32, %c0_i32_0 : i32, i32
  }
  func.func @transform_10(%arg0: i32) -> (i32, i32) {
    %c0_i32 = arith.constant 0 : i32
    %c0_i32_0 = arith.constant 0 : i32
    %c0_i32_1 = arith.constant 0 : i32
    return %c0_i32, %c0_i32_0 : i32, i32
  }
  func.func @transform_11(%arg0: i32) -> (i32, i32) {
    %c0_i32 = arith.constant 0 : i32
    %c0_i32_0 = arith.constant 0 : i32
    %c0_i32_1 = arith.constant 0 : i32
    return %c0_i32, %c0_i32_0 : i32, i32
  }
  func.func @transform_12(%arg0: i32) -> (i32, i32) {
    %c0_i32 = arith.constant 0 : i32
    %c0_i32_0 = arith.constant 0 : i32
    %c0_i32_1 = arith.constant 0 : i32
    return %c0_i32, %c0_i32_0 : i32, i32
  }
  func.func @transform_13(%arg0: i32) -> (i32, i32) {
    %c0_i32 = arith.constant 0 : i32
    %c0_i32_0 = arith.constant 0 : i32
    %c0_i32_1 = arith.constant 0 : i32
    return %c0_i32, %c0_i32_0 : i32, i32
  }
  func.func @transform_14(%arg0: i32) -> (i32, i32) {
    %c0_i32 = arith.constant 0 : i32
    %c0_i32_0 = arith.constant 0 : i32
    %c0_i32_1 = arith.constant 0 : i32
    return %c0_i32, %c0_i32_0 : i32, i32
  }
  func.func @transform_15(%arg0: i32) -> (i32, i32) {
    %c0_i32 = arith.constant 0 : i32
    %c0_i32_0 = arith.constant 0 : i32
    %c0_i32_1 = arith.constant 0 : i32
    return %c0_i32, %c0_i32_0 : i32, i32
  }
  func.func @transform_16(%arg0: i32) -> (i32, i32) {
    %c0_i32 = arith.constant 0 : i32
    %c0_i32_0 = arith.constant 0 : i32
    %c0_i32_1 = arith.constant 0 : i32
    return %c0_i32, %c0_i32_0 : i32, i32
  }
  func.func @transform_17(%arg0: i32) -> (i32, i32) {
    %c0_i32 = arith.constant 0 : i32
    %c0_i32_0 = arith.constant 0 : i32
    %c0_i32_1 = arith.constant 0 : i32
    return %c0_i32, %c0_i32_0 : i32, i32
  }
  func.func @transform_18(%arg0: i32) -> (i32, i32) {
    %c0_i32 = arith.constant 0 : i32
    %c0_i32_0 = arith.constant 0 : i32
    %c0_i32_1 = arith.constant 0 : i32
    return %c0_i32, %c0_i32_0 : i32, i32
  }
  func.func @transform_19(%arg0: i32) -> (i32, i32) {
    %c0_i32 = arith.constant 0 : i32
    %c0_i32_0 = arith.constant 0 : i32
    %c0_i32_1 = arith.constant 0 : i32
    return %c0_i32, %c0_i32_0 : i32, i32
  }
  func.func @transform_20(%arg0: i32) -> (i32, i32) {
    %c0_i32 = arith.constant 0 : i32
    %c0_i32_0 = arith.constant 0 : i32
    %c0_i32_1 = arith.constant 0 : i32
    return %c0_i32, %c0_i32_0 : i32, i32
  }
  func.func @transform_21(%arg0: i32) -> (i32, i32) {
    %c0_i32 = arith.constant 0 : i32
    %c0_i32_0 = arith.constant 0 : i32
    %c0_i32_1 = arith.constant 0 : i32
    return %c0_i32, %c0_i32_0 : i32, i32
  }
  func.func @transform_22(%arg0: i32) -> (i32, i32) {
    %c0_i32 = arith.constant 0 : i32
    %c0_i32_0 = arith.constant 0 : i32
    %c0_i32_1 = arith.constant 0 : i32
    return %c0_i32, %c0_i32_0 : i32, i32
  }
  func.func @transform_23(%arg0: i32) -> (i32, i32) {
    %c0_i32 = arith.constant 0 : i32
    %c0_i32_0 = arith.constant 0 : i32
    %c0_i32_1 = arith.constant 0 : i32
    return %c0_i32, %c0_i32_0 : i32, i32
  }
  func.func @transform_24(%arg0: i32) -> (i32, i32, i32) {
    %c0_i32 = arith.constant 0 : i32
    %c0_i32_0 = arith.constant 0 : i32
    %c0_i32_1 = arith.constant 0 : i32
    return %arg0, %c0_i32, %c0_i32_0 : i32, i32, i32
  }
  func.func @transform_25(%arg0: i32) -> (i32, i32, i32) {
    %c0_i32 = arith.constant 0 : i32
    %c0_i32_0 = arith.constant 0 : i32
    %c0_i32_1 = arith.constant 0 : i32
    return %arg0, %c0_i32, %c0_i32_0 : i32, i32, i32
  }
  func.func @transform_26(%arg0: i32) -> (i32, i32, i32) {
    %c0_i32 = arith.constant 0 : i32
    %c0_i32_0 = arith.constant 0 : i32
    %c0_i32_1 = arith.constant 0 : i32
    return %arg0, %c0_i32, %c0_i32_0 : i32, i32, i32
  }
  func.func @transform_27(%arg0: i32) -> (i32, i32, i32) {
    %c0_i32 = arith.constant 0 : i32
    %c0_i32_0 = arith.constant 0 : i32
    %c0_i32_1 = arith.constant 0 : i32
    return %arg0, %c0_i32, %c0_i32_0 : i32, i32, i32
  }
}

</mosaic_0001>

<bundles_post_ra>
// kernel: transformer_decoder_layer.1
= control target key start
LH: loop header
LB: loop body
LE: loop exit
PB: predicated region body
PF: predicated region fallthrough
CT: control target
= control target key end

     0   :  { %s7216_s0 = inlined_call_operand.vmem [shape: f32[4,8,32], index: 0, kind: input, shape index: {}]   ;;  %s7217_s1 = inlined_call_operand.vmem [shape: f32[4,10,32], index: 1, kind: input, shape index: {}]   ;;  %s7218_s2 = inlined_call_operand.vmem [shape: f32[4,12,32], index: 2, kind: input, shape index: {}]   ;;  %s7219_s3 = inlined_call_operand.vmem [shape: bf16[32,96], index: 3, kind: input, shape index: {}]   ;;  %s7220_s4 = inlined_call_operand.vmem [shape: f32[1,96], index: 4, kind: input, shape index: {}]   ;;  %s7221_s5 = inlined_call_operand.vmem [shape: bf16[32,32], index: 5, kind: input, shape index: {}]   ;;  %s7222_s6 = inlined_call_operand.vmem [shape: f32[1,32], index: 6, kind: input, shape index: {}]   ;;  %s7223_s7 = inlined_call_operand.vmem [shape: bf16[32,32], index: 7, kind: input, shape index: {}]   ;;  %s7224_s8 = inlined_call_operand.vmem [shape: f32[1,32], index: 8, kind: input, shape index: {}]   ;;  %s7225_s9 = inlined_call_operand.vmem [shape: bf16[32,64], index: 9, kind: input, shape index: {}]   ;;  %s7226_s10 = inlined_call_operand.vmem [shape: f32[1,64], index: 10, kind: input, shape index: {}]   ;;  %s7227_s11 = inlined_call_operand.vmem [shape: bf16[32,32], index: 11, kind: input, shape index: {}]   ;;  %s7228_s12 = inlined_call_operand.vmem [shape: f32[1,32], index: 12, kind: input, shape index: {}]   ;;  %s7229_s13 = inlined_call_operand.vmem [shape: bf16[32,32], index: 13, kind: input, shape index: {}]   ;;  %s7230_s14 = inlined_call_operand.vmem [shape: f32[1,32], index: 14, kind: input, shape index: {}]   ;;  %s7231_s15 = inlined_call_operand.vmem [shape: bf16[32,64], index: 15, kind: input, shape index: {}]   ;;  %s7232_s16 = inlined_call_operand.vmem [shape: f32[1,64], index: 16, kind: input, shape index: {}]   ;;  %s7233_s17 = inlined_call_operand.vmem [shape: bf16[32,32], index: 17, kind: input, shape index: {}]   ;;  %s7234_s18 = inlined_call_operand.vmem [shape: f32[1,32], index: 18, kind: input, shape index: {}]   ;;  %s7235_s19 = inlined_call_operand.vmem [shape: bf16[32,64], index: 19, kind: input, shape index: {}]   ;;  %s7236_s20 = inlined_call_operand.vmem [shape: f32[1,64], index: 20, kind: input, shape index: {}]   ;;  %s7237_s21 = inlined_call_operand.vmem [shape: bf16[64,32], index: 21, kind: input, shape index: {}]   ;;  %s7238_s22 = inlined_call_operand.vmem [shape: f32[1,32], index: 22, kind: input, shape index: {}]   ;;  %s7239_s23 = inlined_call_operand.vmem [shape: f32[8,32], index: 23, kind: input, shape index: {}]   ;;  %s7240_s24 = inlined_call_operand.vmem [shape: f32[4,8,32], index: 24, kind: output, shape index: {0}]   ;;  %s7241_s25 = inlined_call_operand.hbm [shape: f32[4,8,128], index: 25, kind: output, shape index: {1}]   ;;  %s7242_s26 = inlined_call_operand.hbm [shape: f32[4,8,128], index: 26, kind: output, shape index: {2}]   ;;  %s7243_s27 = inlined_call_operand.hbm [shape: f32[4,8,128], index: 27, kind: output, shape index: {3}]  }
   0x1   :  { %7293 = sst [smem:[#allocation20_spill]] %s7216_s0 }
   0x2   :  { %7294 = sst [smem:[#allocation21_spill]] %s7217_s1 }
   0x3   :  { %7295 = sst [smem:[#allocation22_spill]] %s7218_s2 }
   0x4   :  { %7296 = sst [smem:[#allocation23_spill]] %s7219_s3 }
   0x5   :  { %7297 = sst [smem:[#allocation24_spill]] %s7220_s4 }
   0x6   :  { %7298 = sst [smem:[#allocation25_spill]] %s7221_s5 }
   0x7   :  { %7299 = sst [smem:[#allocation26_spill]] %s7222_s6 }
   0x8   :  { %7300 = sst [smem:[#allocation27_spill]] %s7223_s7 }
   0x9   :  { %7301 = sst [smem:[#allocation28_spill]] %s7224_s8 }
   0xa   :  { %7302 = sst [smem:[#allocation29_spill]] %s7225_s9 }
   0xb   :  { %7303 = sst [smem:[#allocation30_spill]] %s7226_s10 }
   0xc   :  { %7304 = sst [smem:[#allocation31_spill]] %s7227_s11 }
   0xd   :  { %7305 = sst [smem:[#allocation32_spill]] %s7228_s12 }
   0xe   :  { %7306 = sst [smem:[#allocation33_spill]] %s7229_s13 }
   0xf   :  { %7307 = sst [smem:[#allocation34_spill]] %s7230_s14 }
  0x10   :  { %7308 = sst [smem:[#allocation35_spill]] %s7236_s20 }
  0x11   :  { %7309 = sst [smem:[#allocation36_spill]] %s7238_s22 }
  0x12   :  { %7310 = sst [smem:[#allocation37_spill]] %s7240_s24 }
  0x13   :  { %7311 = sst [smem:[#allocation38_spill]] %s7241_s25 }
  0x14   :  { %7312 = sst [smem:[#allocation39_spill]] %s7242_s26 }
  0x15   :  { %7313 = sst [smem:[#allocation40_spill]] %s7243_s27 }
  0x16   :  { %33 = vsyncpa [#allocation4], 0 }
  0x17   :  { %35 = vsyncpa [#allocation4 + $0x1], 0 }
  0x18   :  { %36 = vsyncpa [#allocation6], 0 }
  0x19   :  { %38 = vsyncpa [#allocation6 + $0x1], 0  ;;  %s6195_s7 = smov 0   ;;  %s6197_s4 = smov 0  }
  0x1a   :  { %s6199_s8 = smov 0   ;;  %s6201_s30 = smov 0  }
  0x1b LB: > { %7314 = sst [smem:[#allocation10_spill]] %s6020_s7  ;;  %s6216_s9 = sadd.s32 4294967295, %s6032_s30   ;;  %s6032_s30 = sphi %s6201_s30, %s7370_s30   ;;  %s6028_s8 = sphi %s6199_s8, %s7373_s8   ;;  %s6024_s4 = sphi %s6197_s4, %s7372_s4   ;;  %s6020_s7 = sphi %s6195_s7, %s7371_s7  }
  0x1c   : > { %7315 = sst [smem:[#allocation11_spill]] %s6024_s4  ;;  %s7249_s5 = sadd.s32 4294967294, %s6032_s30  }
  0x1d   : > { %7316 = sst [smem:[#allocation12_spill]] %s6028_s8  ;;  %s6220_s28 = sadd.s32 1, %s6032_s30  }
  0x1e   : > { %7317 = sst [smem:[#allocation13_spill]] %s6032_s30  ;;  %s596_s0 = sadd.s32 1, %s6028_s8 }
  0x1f   : > { %7318 = sst [smem:[#allocation14_spill]] %s6220_s28  ;;  %s593_s10 = ssub.s32 %s6032_s30, %s6220_s28 }
  0x20   : > { %p606_p0 = scmp.ne.s32.totalorder %s6028_s8, %s6024_s4  ;;  %p594_p1 = scmp.eq.s32.totalorder %s593_s10, 0 }
  0x21   : > { %p607_p2 = scmp.eq.s32.totalorder %s6216_s9, 1  ;;  %p612_p3 = scmp.ne.s32.totalorder %s6024_s4, %s6020_s7 }
  0x22   : > { %p613_p4 = scmp.eq.s32.totalorder %s7249_s5, 1  ;;  %p5073_p7 = scmp.ge.s32.totalorder %s6032_s30, 1 }
  0x23   : > { %s6233_s29 = scalar_select %p594_p1, %s6028_s8, %s596_s0  }
  0x24   : > { %p6235_p5 = por %p607_p2, %p606_p0  ;;  %p6239_p6 = por %p613_p4, %p612_p3 }
  0x25   : > { %7319 = sst [smem:[#allocation15_spill]] %s6233_s29  ;;  %p775_p8 = scmp.lt.s32.totalorder %s6032_s30, 3 }
  0x26   : > { %s7320_s1 = scalar_select %p6235_p5, 1, 0 }
  0x27   : > { %s7322_s6 = scalar_select %p6239_p6, 1, 0 }
  0x28   : > { %7321 = sst [smem:[#allocation16_spill]] %s7320_s1  ;;  %p776_p9 = pnand %p5073_p7, %p775_p8 }
  0x29   : > { %7323 = sst [smem:[#allocation17_spill]] %s7322_s6 }
  0x2a   : > { %779 = sbr.rel (%p776_p9) target bundleno = 6080 (0x17c0), region = 116 }
  0x2f   : > { %s5077_s11 = sshll.u32 %s6216_s9, 1  ;;  %vm908_vm0 = vcmask 261120   ;;  %s7324_s10 = sld [smem:[#allocation20_spill]]  ;;  %v6034_v15 = vmov 0.0   ;;  %vm6035_vm1 = vmmov 0   ;;  %vm1025_vm2 = vcmask 64512  }
  0x30   : > { %p875_p10 = scmp.lt.s32.totalorder %s5077_s11, 3  ;;  %5338 = vmatprep.subr.bf16.mxu0 %v6034_v15  ;;  %5342 = vmatprep.mubr.msk.bf16.mxu0 %vm6035_vm1, %v6034_v15  ;;  %v5087_v25 = vld [vmem:[%s7239_s23] ss:$0 sm:$0xff]  ;;  %v5088_v29 = vld [vmem:[%s7239_s23 + $0x1] ss:$0 sm:$0xff]  ;;  %s7252_s0 = smov 88  }
  0x31   : > { %5346 = vmatprep.subr.bf16.mxu1 %v6034_v15  ;;  %5348 = vmatprep.mubr.msk.bf16.mxu1 %vm6035_vm1, %v6034_v15  ;;  %s7256_s29 = smov 112   ;;  %s7263_s3 = smov 80   ;;  %vm1090_vm3 = vcmask 1043456   ;;  %vm1251_vm4 = vcmask 130112   ;;  %vm1368_vm5 = vcmask 195712   ;;  %vm1485_vm6 = vcmask 261312  }
  0x32   : > { %s7375_s11 = smov (!%p875_p10, %s5077_s11), 3  ;;  %s7330_s8 = smov 104   ;;  %vm2464_vm7 = vcmask 80896   ;;  %vm2484_vm8 = vcmask 1044480   ;;  %vm3681_vm9 = vcmask 97280   ;;  %vm3701_vm10 = vcmask 1045504  }
  0x33   : > { %s7250_s2 = sshll.u32 %s7375_s11, 3  ;;  %s7280_s28 = smov 16   ;;  %vm4775_vm11 = vcmask 523264  }
  0x34   : > { %s7271_s6 = smov 24   ;;  %s7332_s30 = sld [smem:[#allocation25_spill]] }
  0x35   : > { %s878_s5 = scalar_lea.vmem %s7324_s10, %s7250_s2  ;;  %s7254_s10 = smov 96  }
  0x36   : > { %v904_v0 = vld [vmem:[%s878_s5] sm:$0xff]  ;;  %v905_v2 = vld [vmem:[%s878_s5 + $0x8] sm:$0xff]  ;;  %s7325_s5 = sld [smem:[#allocation23_spill]]  ;;  %s7258_s2 = smov 104  }
  0x37   : > { %v909_v1 = vsel %vm908_vm0, %v904_v0, 0.0  ;;  %v912_v3 = vsel %vm908_vm0, %v905_v2, 0.0  ;;  %s7335_s7 = sld [smem:[#allocation26_spill]]  ;;  %s7343_s25 = smov 80  }
  0x38   : > { %910 = vadd.xlane.f32.xlu0 %v909_v1  ;;  %s7336_s27 = sld [smem:[#allocation21_spill]] }
  0x39   : > { %s7342_s22 = sld [smem:[#allocation28_spill]] }
  0x3a   : > { %s7333_s24 = smov %s7332_s30  ;;  %s7349_s12 = sld [smem:[#allocation32_spill]] }
  0x3b   : > { %s7352_s13 = sld [smem:[#allocation33_spill]] }
  0x3c   : > { %913 = vadd.xlane.f32.xlu0 %v912_v3  ;;  %v5779_v14 = vld [vmem:[%s7325_s5 + $0x8] sm:$0xff]   ;;  %v5780_v16 = vld [vmem:[%s7325_s5] sm:$0xff]   ;;  %s7326_s5 = sld [smem:[#allocation24_spill]] }
  0x3d   : > { %5339 = vmatpush3.bf16.msra.mxu0 %v5779_v14  ;;  %s7353_s14 = sld [smem:[#allocation34_spill]] }
  0x3e   : > { %5340 = vmatprep.subr.bf16.mxu0 %v6034_v15  ;;  %s7357_s26 = sld [smem:[#allocation39_spill]] }
  0x41   : > { %5341 = vmatpush3.bf16.msra.mxu0 %v5780_v16 }
  0x42   : > { %5352 = vmatprep.subr.bf16.mxu0 %v6034_v15  ;;  %v5089_v34 = vld [vmem:[%s7326_s5] ss:$0 sm:$0xff]  ;;  %s7265_s5 = smov 120  }
  0xc1   : > { %v911_v4 = vpop.xlane.xlu0 %910 }
  0xc2   : > { %v916_v5 = vmul.f32 0.03125, %v911_v4 }
  0xc4   : > { %v918_v6 = vsub.f32 %v904_v0, %v916_v5 }
  0xc5   : > { %v914_v7 = vpop.xlane.xlu0 %913 }
  0xc6   : > { %v917_v8 = vmul.f32 0.03125, %v914_v7  ;;  %v920_v9 = vmul.f32 %v918_v6, %v918_v6 }
  0xc8   : > { %v919_v10 = vsub.f32 %v905_v2, %v917_v8  ;;  %v922_v11 = vsel %vm908_vm0, %v920_v9, 0.0 }
  0xc9   : > { %923 = vadd.xlane.f32.xlu1 %v922_v11 }
  0xca   : > { %v921_v12 = vmul.f32 %v919_v10, %v919_v10 }
  0xcc   : > { %v925_v13 = vsel %vm908_vm0, %v921_v12, 0.0 }
  0xcd   : > { %926 = vadd.xlane.f32.xlu1 %v925_v13 }
 0x152   : > { %v924_v17 = vpop.xlane.xlu1 %923 }
 0x153   : > { %v928_v18 = vmul.f32 0.03125, %v924_v17 }
 0x155   : > { %v930_v19 = vadd.f32 1e-05, %v928_v18 }
 0x156   : > { %v927_v20 = vpop.xlane.xlu1 %926 }
 0x157   : > { %5804 = vrsqrt.f32 %v930_v19  ;;  %v929_v21 = vmul.f32 0.03125, %v927_v20 }
 0x159   : > { %v931_v22 = vadd.f32 1e-05, %v929_v21 }
 0x15b   : > { %5806 = vrsqrt.f32 %v931_v22 }
 0x164   : > { %v5805_v23 = vpop.eup %5804 }
 0x165   : > { %v934_v24 = vmul.f32 %v5805_v23, %v918_v6 }
 0x167   : > { %v940_v28 = vmul.f32 %v5087_v25, %v934_v24 }
 0x168   : > { %v5807_v26 = vpop.eup %5806 }
 0x169   : > { %v935_v27 = vmul.f32 %v5807_v26, %v919_v10  ;;  %v6278_v31 = vadd.f32 %v5088_v29, %v940_v28 }
 0x16b   : > { %v941_v30 = vmul.f32 %v5087_v25, %v935_v27 }
 0x16d   : > { %v6280_v32 = vadd.f32 %v5088_v29, %v941_v30 }
 0x16f   : > { %v948_v33 = vpack.c.bf16 %v6280_v32, %v6278_v31 }
 0x171   : > { %5343 = vmatmul.mubr.msk.bf16.vlgmr.msra.gmra.mxu0 %vm908_vm0, %v948_v33 }
 0x172   : > { %5354 = vmatprep.mubr.msk.bf16.mxu0 %vm6035_vm1, %v6034_v15 }
 0x231   : > { %v1009_v35 = vpop.f32.mrf.mxu0 }
 0x232   : > { %v1010_v36 = vadd.f32 %v5089_v34, %v1009_v35 }
 0x233   : > { %v5344_v37 = vpop.f32.mrf.mxu0 }
 0x234   : > { %v1016_v38 = vmul.f32 0.35355338, %v1010_v36  ;;  %v6290_v39 = vpack.c.bf16 %v1010_v36, %v1010_v36 }
 0x235   : > { %v1012_v40 = vpop.f32.mrf.mxu0 }
 0x236   : > { %1138 = vrot.lane.b32.xlu1 %v6290_v39, %s7252_s0  ;;  %1023 = vrot.lane.b32.xlu0 %v6290_v39, %s7254_s10  ;;  %v1018_v42 = vpack.c.bf16 %v1016_v38, %v1016_v38  ;;  %v1013_v43 = vadd.f32 %v5089_v34, %v1012_v40  ;;  %s7261_s0 = smov 72   ;;  %s7327_s10 = smov 88  }
 0x237   : > { %v5345_v41 = vpop.f32.mrf.mxu0 }
 0x238   : > { %v6301_v44 = vpack.c.bf16 %v1013_v43, %v1013_v43  ;;  %v1017_v45 = vmul.f32 0.35355338, %v1013_v43 }
 0x23a   : > { %1253 = vrot.lane.b32.xlu0 %v1018_v42, %s7256_s29  ;;  %1136 = vrot.lane.b32.xlu1 %v1018_v42, %s7265_s5  ;;  %s7328_s29 = smov 96   ;;  %v1019_v46 = vpack.c.bf16 %v1017_v45, %v1017_v45 }
 0x23e   : > { %1370 = vrot.lane.b32.xlu0 %v1018_v42, %s7258_s2  ;;  %1255 = vrot.lane.b32.xlu1 %v6290_v39, %s7263_s3  ;;  %s7329_s2 = smov 112  }
 0x242   : > { %1372 = vrot.lane.b32.xlu1 %v6290_v39, %s7261_s0  ;;  %1605 = vrot.lane.b32.xlu0 %v6301_v44, %s7327_s10 }
 0x246   : > { %1721 = vrot.lane.b32.xlu0 %v6301_v44, %s7263_s3  ;;  %1491 = vrot.lane.b32.xlu1 %v6301_v44, %s7328_s29  ;;  %s6044_s3 = smov 56  }
 0x24a   : > { %1837 = vrot.lane.b32.xlu0 %v6301_v44, %s7261_s0  ;;  %1603 = vrot.lane.b32.xlu1 %v1019_v46, %s7265_s5  ;;  %s6043_s0 = smov 64   ;;  %s6045_s5 = smov 48  }
 0x24e   : > { %1719 = vrot.lane.b32.xlu1 %v1019_v46, %s7329_s2 }
 0x252   : > { %1835 = vrot.lane.b32.xlu1 %v1019_v46, %s7330_s8 }
 0x2a8   : > { %v1024_v47 = vpop.permute.xlu0 %1023  ;;  %v1139_v49 = vpop.permute.xlu1 %1138 }
 0x2a9   : > { %v1030_v48 = vsel %vm1025_vm2, %v1024_v47, 0  ;;  %v1144_v51 = vsel %vm1025_vm2, %v1139_v49, 0 }
 0x2aa   : > { %5347 = vmatpush3.bf16.xpose.msra.mxu1 %v1030_v48 }
 0x2ab   : > { %5358 = vmatprep.subr.bf16.mxu1 %v6034_v15 }
 0x2ac   : > { %v1137_v50 = vpop.permute.xlu1 %1136  ;;  %v1254_v55 = vpop.permute.xlu0 %1253 }
 0x2b0   : > { %v1256_v52 = vpop.permute.xlu1 %1255  ;;  %v1371_v58 = vpop.permute.xlu0 %1370 }
 0x2b1   : > { %5349 = vmatmul.mubr.msk.bf16.vlgmr.msra.gmra.mxu1 %vm1025_vm2, %v1018_v42  ;;  %v1261_v53 = vsel %vm1025_vm2, %v1256_v52, 0 }
 0x2b2   : > { %5359 = vmatpush3.bf16.xpose.msra.mxu1 %v1144_v51  ;;  %5360 = vmatprep.mubr.msk.bf16.mxu1 %vm6035_vm1, %v6034_v15 }
 0x2b3   : > { %5370 = vmatprep.subr.bf16.mxu1 %v6034_v15 }
 0x2b4   : > { %v1373_v54 = vpop.permute.xlu1 %1372  ;;  %v1606_v60 = vpop.permute.xlu0 %1605 }
 0x2b5   : > { %v1378_v56 = vsel %vm1025_vm2, %v1373_v54, 0  ;;  %v1611_v61 = vsel %vm1025_vm2, %v1606_v60, 0 }
 0x2b8   : > { %v1492_v57 = vpop.permute.xlu1 %1491  ;;  %v1722_v62 = vpop.permute.xlu0 %1721 }
 0x2b9   : > { %5361 = vmatmul.mubr.msk.bf16.vlgmr.msra.gmra.mxu1 %vm1025_vm2, %v1137_v50  ;;  %v1497_v59 = vsel %vm1025_vm2, %v1492_v57, 0  ;;  %v1727_v0 = vsel %vm1025_vm2, %v1722_v62, 0 }
 0x2ba   : > { %5371 = vmatpush3.bf16.xpose.msra.mxu1 %v1261_v53  ;;  %5372 = vmatprep.mubr.msk.bf16.mxu1 %vm6035_vm1, %v6034_v15 }
 0x2bb   : > { %5382 = vmatprep.subr.bf16.mxu1 %v6034_v15 }
 0x2bc   : > { %v1604_v63 = vpop.permute.xlu1 %1603  ;;  %v1838_v1 = vpop.permute.xlu0 %1837 }
 0x2bd   : > { %v1843_v3 = vsel %vm1025_vm2, %v1838_v1, 0 }
 0x2c0   : > { %v1720_v2 = vpop.permute.xlu1 %1719 }
 0x2c1   : > { %5373 = vmatmul.mubr.msk.bf16.vlgmr.msra.gmra.mxu1 %vm1025_vm2, %v1254_v55 }
 0x2c2   : > { %5383 = vmatpush3.bf16.xpose.msra.mxu1 %v1378_v56  ;;  %5384 = vmatprep.mubr.msk.bf16.mxu1 %vm6035_vm1, %v6034_v15 }
 0x2c3   : > { %5394 = vmatprep.subr.bf16.mxu1 %v6034_v15 }
 0x2c4   : > { %v1836_v4 = vpop.permute.xlu1 %1835 }
 0x2c9   : > { %5385 = vmatmul.mubr.msk.bf16.vlgmr.msra.gmra.mxu1 %vm1025_vm2, %v1371_v58 }
 0x2ca   : > { %5395 = vmatpush3.bf16.xpose.msra.mxu1 %v1497_v59  ;;  %5396 = vmatprep.mubr.msk.bf16.mxu1 %vm6035_vm1, %v6034_v15 }
 0x2cb   : > { %5406 = vmatprep.subr.bf16.mxu1 %v6034_v15 }
 0x2d1   : > { %5397 = vmatmul.mubr.msk.bf16.vlgmr.msra.gmra.mxu1 %vm1025_vm2, %v1019_v46 }
 0x2d2   : > { %5407 = vmatpush3.bf16.xpose.msra.mxu1 %v1611_v61  ;;  %5408 = vmatprep.mubr.msk.bf16.mxu1 %vm6035_vm1, %v6034_v15 }
 0x2d3   : > { %5418 = vmatprep.subr.bf16.mxu1 %v6034_v15 }
 0x2d9   : > { %5409 = vmatmul.mubr.msk.bf16.vlgmr.msra.gmra.mxu1 %vm1025_vm2, %v1604_v63 }
 0x2da   : > { %5419 = vmatpush3.bf16.xpose.msra.mxu1 %v1727_v0  ;;  %5420 = vmatprep.mubr.msk.bf16.mxu1 %vm6035_vm1, %v6034_v15 }
 0x2db   : > { %5430 = vmatprep.subr.bf16.mxu1 %v6034_v15 }
 0x2e1   : > { %5421 = vmatmul.mubr.msk.bf16.vlgmr.msra.gmra.mxu1 %vm1025_vm2, %v1720_v2 }
 0x2e2   : > { %5431 = vmatpush3.bf16.xpose.msra.mxu1 %v1843_v3  ;;  %5432 = vmatprep.mubr.msk.bf16.mxu1 %vm6035_vm1, %v6034_v15 }
 0x2e3   : > { %5442 = vmatprep.subr.bf16.mxu1 %v6034_v15 }
 0x2e9   : > { %5433 = vmatmul.mubr.msk.bf16.vlgmr.msra.gmra.mxu1 %vm1025_vm2, %v1836_v4 }
 0x2ea   : > { %5446 = vmatprep.mubr.msk.bf16.mxu1 %vm6035_vm1, %v6034_v15 }
 0x371   : > { %v1066_v5 = vpop.f32.mrf.mxu1 }
 0x372   : > { %v1072_v6 = vsel %vm1025_vm2, %v1066_v5, -inf }
 0x373   : > { %v5350_v7 = vpop.f32.mrf.mxu1  ;;  %1073 = vmax.xlane.f32.xlu0 %v1072_v6 }
 0x375   : > { %v1069_v8 = vpop.f32.mrf.mxu1 }
 0x377   : > { %v5351_v9 = vpop.f32.mrf.mxu1 }
 0x379   : > { %v1180_v10 = vpop.f32.mrf.mxu1 }
 0x37a   : > { %v1186_v11 = vsel %vm1025_vm2, %v1180_v10, -inf }
 0x37b   : > { %v5362_v12 = vpop.f32.mrf.mxu1  ;;  %1187 = vmax.xlane.f32.xlu1 %v1186_v11 }
 0x37d   : > { %v1183_v13 = vpop.f32.mrf.mxu1 }
 0x37f   : > { %v5363_v14 = vpop.f32.mrf.mxu1 }
 0x381   : > { %v6358_v16 = vpop.f32.mrf.mxu1 }
 0x382   : > { %v1303_v38 = vsel %vm1025_vm2, %v6358_v16, -inf }
 0x383   : > { %v5374_v17 = vpop.f32.mrf.mxu1 }
 0x385   : > { %v1300_v18 = vpop.f32.mrf.mxu1 }
 0x387   : > { %v5375_v19 = vpop.f32.mrf.mxu1 }
 0x389   : > { %v6360_v20 = vpop.f32.mrf.mxu1  ;;  %1085 = vrot.lane.b32.xlu0 %v6290_v39, %s6043_s0 }
 0x38a   : > { %v1420_v42 = vsel %vm1025_vm2, %v6360_v20, -inf }
 0x38b   : > { %v5386_v21 = vpop.f32.mrf.mxu1 }
 0x38c   : > { %1199 = vrot.lane.b32.xlu1 %v6290_v39, %s6044_s3 }
 0x38d   : > { %v1417_v22 = vpop.f32.mrf.mxu1 }
 0x38f   : > { %v5387_v23 = vpop.f32.mrf.mxu1 }
 0x391   : > { %v1533_v24 = vpop.f32.mrf.mxu1 }
 0x392   : > { %v1539_v46 = vsel %vm1025_vm2, %v1533_v24, -inf }
 0x393   : > { %v5398_v25 = vpop.f32.mrf.mxu1 }
 0x395   : > { %v1536_v26 = vpop.f32.mrf.mxu1 }
 0x397   : > { %v5399_v27 = vpop.f32.mrf.mxu1 }
 0x399   : > { %v1647_v28 = vpop.f32.mrf.mxu1 }
 0x39a   : > { %v1653_v47 = vsel %vm1025_vm2, %v1647_v28, -inf }
 0x39b   : > { %v5410_v29 = vpop.f32.mrf.mxu1 }
 0x39d   : > { %v1650_v30 = vpop.f32.mrf.mxu1 }
 0x39f   : > { %v5411_v33 = vpop.f32.mrf.mxu1 }
 0x3a1   : > { %v6366_v34 = vpop.f32.mrf.mxu1 }
 0x3a2   : > { %v1769_v48 = vsel %vm1025_vm2, %v6366_v34, -inf }
 0x3a3   : > { %v5422_v35 = vpop.f32.mrf.mxu1 }
 0x3a5   : > { %v1766_v36 = vpop.f32.mrf.mxu1 }
 0x3a7   : > { %v5423_v37 = vpop.f32.mrf.mxu1 }
 0x3a8   : > { %1304 = vmax.xlane.f32.xlu0 %v1303_v38 }
 0x3a9   : > { %v6370_v40 = vpop.f32.mrf.mxu1 }
 0x3aa   : > { %v1885_v49 = vsel %vm1025_vm2, %v6370_v40, -inf }
 0x3ab   : > { %v5434_v41 = vpop.f32.mrf.mxu1 }
 0x3ac   : > { %1421 = vmax.xlane.f32.xlu0 %v1420_v42 }
 0x3ad   : > { %v1882_v43 = vpop.f32.mrf.mxu1 }
 0x3af   : > { %v5435_v45 = vpop.f32.mrf.mxu1 }
 0x3b0   : > { %1540 = vmax.xlane.f32.xlu0 %v1539_v46  ;;  %1654 = vmax.xlane.f32.xlu1 %v1653_v47 }
 0x3b4   : > { %1770 = vmax.xlane.f32.xlu0 %v1769_v48  ;;  %1886 = vmax.xlane.f32.xlu1 %v1885_v49 }
 0x3ca   : > { %1316 = vrot.lane.b32.xlu0 %v6290_v39, %s6045_s5 }
 0x3fc   : > { %v1074_v50 = vpop.xlane.xlu0 %1073 }
 0x3fd   : > { %v1075_v51 = vsub.f32 %v1066_v5, %v1074_v50 }
 0x3ff   : > { %v1076_v52 = vmul.f32 1.442695, %v1075_v51 }
 0x400   : > { %v1086_v53 = vpop.permute.xlu0 %1085 }
 0x401   : > { %5808 = vpow2.f32 %v1076_v52  ;;  %v1092_v54 = vsel %vm1090_vm3, %v1086_v53, 0 }
 0x402   : > { %5353 = vmatpush3.bf16.msra.mxu0 %v1092_v54 }
 0x403   : > { %5364 = vmatprep.subr.bf16.mxu0 %v6034_v15 }
 0x404   : > { %v1188_v55 = vpop.xlane.xlu1 %1187 }
 0x405   : > { %v1189_v56 = vsub.f32 %v1180_v10, %v1188_v55 }
 0x407   : > { %v1190_v57 = vmul.f32 1.442695, %v1189_v56 }
 0x408   : > { %v1200_v1 = vpop.permute.xlu1 %1199 }
 0x409   : > { %5810 = vpow2.f32 %v1190_v57  ;;  %v1205_v37 = vsel %vm1090_vm3, %v1200_v1, 0 }
 0x40e   : > { %v5809_v58 = vpop.eup %5808 }
 0x40f   : > { %v1078_v59 = vsel %vm1025_vm2, %v5809_v58, 0.0 }
 0x410   : > { %1079 = vadd.xlane.f32.xlu0 %v1078_v59 }
 0x416   : > { %v6385_v60 = vpop.eup %5810 }
 0x417   : > { %v1192_v61 = vsel %vm1025_vm2, %v6385_v60, 0.0 }
 0x418   : > { %1193 = vadd.xlane.f32.xlu1 %v1192_v61 }
 0x429   : > { %1552 = vrot.lane.b32.xlu1 %v6301_v44, %s6043_s0  ;;  %s6046_s0 = smov 40  }
 0x431   : > { %v1305_v62 = vpop.xlane.xlu0 %1304 }
 0x432   : > { %v1306_v63 = vsub.f32 %v6358_v16, %v1305_v62 }
 0x434   : > { %v1307_v0 = vmul.f32 1.442695, %v1306_v63 }
 0x435   : > { %v1422_v2 = vpop.xlane.xlu0 %1421 }
 0x436   : > { %5812 = vpow2.f32 %v1307_v0  ;;  %v1423_v3 = vsub.f32 %v6360_v20, %v1422_v2 }
 0x438   : > { %v1424_v4 = vmul.f32 1.442695, %v1423_v3 }
 0x439   : > { %v1541_v5 = vpop.xlane.xlu0 %1540  ;;  %v1655_v6 = vpop.xlane.xlu1 %1654 }
 0x43a   : > { %v1542_v7 = vsub.f32 %v1533_v24, %v1541_v5  ;;  %5814 = vpow2.f32 %v1424_v4  ;;  %v1656_v9 = vsub.f32 %v1647_v28, %v1655_v6 }
 0x43c   : > { %v1543_v8 = vmul.f32 1.442695, %v1542_v7  ;;  %v1657_v10 = vmul.f32 1.442695, %v1656_v9 }
 0x43d   : > { %v1771_v20 = vpop.xlane.xlu0 %1770  ;;  %v1887_v23 = vpop.xlane.xlu1 %1886 }
 0x43e   : > { %5816 = vpow2.f32 %v1543_v8  ;;  %v1772_v21 = vsub.f32 %v6366_v34, %v1771_v20  ;;  %v1888_v24 = vsub.f32 %v6370_v40, %v1887_v23 }
 0x43f   : > { %5818 = vpow2.f32 %v1657_v10 }
 0x440   : > { %v1773_v22 = vmul.f32 1.442695, %v1772_v21  ;;  %v1889_v25 = vmul.f32 1.442695, %v1888_v24 }
 0x441   : > { %v1317_v29 = vpop.permute.xlu0 %1316 }
 0x442   : > { %5820 = vpow2.f32 %v1773_v22 }
 0x443   : > { %v5813_v11 = vpop.eup %5812  ;;  %5822 = vpow2.f32 %v1889_v25 }
 0x444   : > { %v1309_v12 = vsel %vm1025_vm2, %v5813_v11, 0.0 }
 0x445   : > { %1310 = vadd.xlane.f32.xlu0 %v1309_v12 }
 0x447   : > { %v6394_v13 = vpop.eup %5814 }
 0x448   : > { %v1426_v14 = vsel %vm1025_vm2, %v6394_v13, 0.0 }
 0x44b   : > { %v6398_v16 = vpop.eup %5816 }
 0x44c   : > { %v1545_v17 = vsel %vm1025_vm2, %v6398_v16, 0.0  ;;  %v6402_v18 = vpop.eup %5818 }
 0x44d   : > { %1427 = vadd.xlane.f32.xlu1 %v1426_v14  ;;  %v1659_v19 = vsel %vm1025_vm2, %v6402_v18, 0.0 }
 0x44f   : > { %v6411_v26 = vpop.eup %5820 }
 0x450   : > { %v1775_v27 = vsel %vm1025_vm2, %v6411_v26, 0.0 }
 0x451   : > { %1546 = vadd.xlane.f32.xlu1 %v1545_v17 }
 0x455   : > { %1660 = vadd.xlane.f32.xlu1 %v1659_v19 }
 0x45b   : > { %1433 = vrot.lane.b32.xlu0 %v6290_v39, %s6046_s0  ;;  %v6415_v39 = vpop.eup %5822 }
 0x45c   : > { %v1891_v28 = vsel %vm1025_vm2, %v6415_v39, 0.0 }
 0x466   : > { %1666 = vrot.lane.b32.xlu1 %v6301_v44, %s6044_s3 }
 0x47a   : > { %1776 = vadd.xlane.f32.xlu0 %v1775_v27 }
 0x48a   : > { %1892 = vadd.xlane.f32.xlu1 %v1891_v28 }
 0x490   : > { %1782 = vrot.lane.b32.xlu0 %v6301_v44, %s6045_s5  ;;  %s7267_s5 = sand.u32 1, %s6024_s4   ;;  %s7340_s4 = sld [smem:[#allocation30_spill]] }
 0x491   : > { %s6442_s3 = sshll.u32 %s7267_s5, 4  ;;  %s7277_s5 = smov 8  }
 0x499   : > { %v1080_v30 = vpop.xlane.xlu0 %1079 }
 0x49a   : > { %5824 = vrcp.f32 %v1080_v30 }
 0x49b   : > { %1898 = vrot.lane.b32.xlu1 %v6301_v44, %s6046_s0  ;;  %v1322_v44 = vsel %vm1090_vm3, %v1317_v29, 0  ;;  %s6452_s0 = scalar_lea.vmem [#allocation3], %s6442_s3 }
 0x49c   : > { %7331 = sst [smem:[#allocation18_spill]] %s6452_s0 }
 0x4a1   : > { %v1194_v33 = vpop.xlane.xlu1 %1193 }
 0x4a2   : > { %5826 = vrcp.f32 %v1194_v33 }
 0x4a5   : > { %v1553_v43 = vpop.permute.xlu1 %1552 }
 0x4a7   : > { %v5825_v34 = vpop.eup %5824 }
 0x4a8   : > { %v1082_v35 = vmul.f32 %v5825_v34, %v5809_v58 }
 0x4aa   : > { %v1084_v36 = vpack.c.bf16 %v1082_v35, %v1082_v35 }
 0x4ac   : > { %5355 = vmatmul.mubr.msk.bf16.vlgmr.msra.gmra.mxu0 %vm1025_vm2, %v1084_v36 }
 0x4ad   : > { %5365 = vmatpush3.bf16.msra.mxu0 %v1205_v37  ;;  %5366 = vmatprep.mubr.msk.bf16.mxu0 %vm6035_vm1, %v6034_v15 }
 0x4ae   : > { %5376 = vmatprep.subr.bf16.mxu0 %v6034_v15 }
 0x4af   : > { %v5827_v38 = vpop.eup %5826 }
 0x4b0   : > { %v1196_v40 = vmul.f32 %v5827_v38, %v6385_v60  ;;  %v1558_v60 = vsel %vm1090_vm3, %v1553_v43, 0 }
 0x4b2   : > { %v1198_v41 = vpack.c.bf16 %v1196_v40, %v1196_v40  ;;  %v1197_v53 = vadd.f32 %v1196_v40, %v1082_v35 }
 0x4b4   : > { %5367 = vmatmul.mubr.msk.bf16.vlgmr.msra.gmra.mxu0 %vm1025_vm2, %v1198_v41 }
 0x4b5   : > { %5377 = vmatpush3.bf16.msra.mxu0 %v1322_v44  ;;  %5378 = vmatprep.mubr.msk.bf16.mxu0 %vm6035_vm1, %v6034_v15 }
 0x4b6   : > { %5388 = vmatprep.subr.bf16.mxu0 %v6034_v15 }
 0x4ce   : > { %v1311_v42 = vpop.xlane.xlu0 %1310 }
 0x4cf   : > { %5828 = vrcp.f32 %v1311_v42 }
 0x4d2   : > { %v1434_v49 = vpop.permute.xlu0 %1433 }
 0x4d3   : > { %v1439_v52 = vsel %vm1090_vm3, %v1434_v49, 0 }
 0x4d6   : > { %v1428_v45 = vpop.xlane.xlu1 %1427 }
 0x4d7   : > { %5830 = vrcp.f32 %v1428_v45 }
 0x4da   : > { %v1547_v46 = vpop.xlane.xlu1 %1546 }
 0x4db   : > { %5832 = vrcp.f32 %v1547_v46 }
 0x4dc   : > { %v5829_v47 = vpop.eup %5828 }
 0x4dd   : > { %v1313_v48 = vmul.f32 %v5829_v47, %v5813_v11 }
 0x4de   : > { %v1661_v51 = vpop.xlane.xlu1 %1660 }
 0x4df   : > { %v1315_v50 = vpack.c.bf16 %v1313_v48, %v1313_v48  ;;  %5834 = vrcp.f32 %v1661_v51  ;;  %v1314_v55 = vadd.f32 %v1313_v48, %v1197_v53  ;;  %v5781_v53 = vld [vmem:[%s7332_s30 + $0x8] sm:$0xff]   ;;  %s7279_s30 = sshll.u32 %s7375_s11, 4 }
 0x4e0   : > { %5443 = vmatpush3.bf16.msra.mxu1 %v5781_v53 }
 0x4e1   : > { %5379 = vmatmul.mubr.msk.bf16.vlgmr.msra.gmra.mxu0 %vm1025_vm2, %v1315_v50  ;;  %5444 = vmatprep.subr.bf16.mxu1 %v6034_v15 }
 0x4e2   : > { %5389 = vmatpush3.bf16.msra.mxu0 %v1439_v52  ;;  %5390 = vmatprep.mubr.msk.bf16.mxu0 %vm6035_vm1, %v6034_v15  ;;  %v1667_v0 = vpop.permute.xlu1 %1666 }
 0x4e3   : > { %5400 = vmatprep.subr.bf16.mxu0 %v6034_v15  ;;  %v1672_v3 = vsel %vm1090_vm3, %v1667_v0, 0 }
 0x4e4   : > { %v5831_v54 = vpop.eup %5830 }
 0x4e5   : > { %v1430_v56 = vmul.f32 %v5831_v54, %v6394_v13 }
 0x4e7   : > { %v1432_v57 = vpack.c.bf16 %v1430_v56, %v1430_v56  ;;  %v1431_v58 = vadd.f32 %v1430_v56, %v1314_v55  ;;  %v5782_v55 = vld [vmem:[%s7333_s24] sm:$0xff]   ;;  %s7341_s24 = smov 120  }
 0x4e8   : > { %v5833_v59 = vpop.eup %5832  ;;  %5445 = vmatpush3.bf16.msra.mxu1 %v5782_v55 }
 0x4e9   : > { %5391 = vmatmul.mubr.msk.bf16.vlgmr.msra.gmra.mxu0 %vm1025_vm2, %v1432_v57  ;;  %v1487_v61 = vmul.f32 0.25, %v1431_v58  ;;  %v1549_v62 = vmul.f32 %v5833_v59, %v6398_v16 }
 0x4ea   : > { %5401 = vmatpush3.bf16.msra.mxu0 %v1558_v60  ;;  %5402 = vmatprep.mubr.msk.bf16.mxu0 %vm6035_vm1, %v6034_v15 }
 0x4eb   : > { %5412 = vmatprep.subr.bf16.mxu0 %v6034_v15  ;;  %v1488_v63 = vsel %vm1025_vm2, %v1487_v61, 0.0  ;;  %v1551_v1 = vpack.c.bf16 %v1549_v62, %v1549_v62 }
 0x4ec   : > { %1489 = vst [vmem:[%s6452_s0] sm:$0xff] %v1488_v63  ;;  %v5835_v2 = vpop.eup %5834 }
 0x4ed   : > { %v1663_v4 = vmul.f32 %v5835_v2, %v6402_v18 }
 0x4ef   : > { %v1665_v5 = vpack.c.bf16 %v1663_v4, %v1663_v4  ;;  %v1664_v16 = vadd.f32 %v1663_v4, %v1549_v62 }
 0x4f1   : > { %5403 = vmatmul.mubr.msk.bf16.vlgmr.msra.gmra.mxu0 %vm1025_vm2, %v1551_v1 }
 0x4f2   : > { %5413 = vmatpush3.bf16.msra.mxu0 %v1672_v3  ;;  %5414 = vmatprep.mubr.msk.bf16.mxu0 %vm6035_vm1, %v6034_v15 }
 0x4f3   : > { %5424 = vmatprep.subr.bf16.mxu0 %v6034_v15 }
 0x4f9   : > { %5415 = vmatmul.mubr.msk.bf16.vlgmr.msra.gmra.mxu0 %vm1025_vm2, %v1665_v5  ;;  %v5110_v5 = vld [vmem:[%s7335_s7] ss:$0 sm:$0xff]  ;;  %s885_s7 = scalar_lea.vmem %s7336_s27, %s7279_s30  ;;  %s7337_s27 = sld [smem:[#allocation29_spill]] }
 0x4fa   : > { %5426 = vmatprep.mubr.msk.bf16.mxu0 %vm6035_vm1, %v6034_v15  ;;  %s7347_s30 = smov 16  }
 0x503   : > { %v1777_v6 = vpop.xlane.xlu0 %1776 }
 0x504   : > { %5836 = vrcp.f32 %v1777_v6 }
 0x507   : > { %v1783_v7 = vpop.permute.xlu0 %1782 }
 0x508   : > { %v1788_v8 = vsel %vm1090_vm3, %v1783_v7, 0 }
 0x509   : > { %5425 = vmatpush3.bf16.msra.mxu0 %v1788_v8 }
 0x50a   : > { %5436 = vmatprep.subr.bf16.mxu0 %v6034_v15 }
 0x511   : > { %v5837_v9 = vpop.eup %5836 }
 0x512   : > { %v1779_v10 = vmul.f32 %v5837_v9, %v6411_v26 }
 0x513   : > { %v1893_v11 = vpop.xlane.xlu1 %1892 }
 0x514   : > { %5838 = vrcp.f32 %v1893_v11  ;;  %v1781_v12 = vpack.c.bf16 %v1779_v10, %v1779_v10  ;;  %v1780_v18 = vadd.f32 %v1779_v10, %v1664_v16 }
 0x516   : > { %5427 = vmatmul.mubr.msk.bf16.vlgmr.msra.gmra.mxu0 %vm1025_vm2, %v1781_v12 }
 0x517   : > { %v1899_v13 = vpop.permute.xlu1 %1898  ;;  %5438 = vmatprep.mubr.msk.bf16.mxu0 %vm6035_vm1, %v6034_v15 }
 0x518   : > { %v1904_v14 = vsel %vm1090_vm3, %v1899_v13, 0 }
 0x519   : > { %5437 = vmatpush3.bf16.msra.mxu0 %v1904_v14  ;;  %v6050_v14 = vmov 1983009808  }
 0x51a   : > { %5450 = vmatprep.subr.bf16.mxu0 %v6034_v15  ;;  %v2145_v16 = vunpack.c.l.s4 %v6050_v14 }
 0x521   : > { %v5839_v17 = vpop.eup %5838 }
 0x522   : > { %v1895_v19 = vmul.f32 %v5839_v17, %v6415_v39  ;;  %v2147_v17 = vlaneseq }
 0x524   : > { %v1897_v20 = vpack.c.bf16 %v1895_v19, %v1895_v19  ;;  %v1896_v21 = vadd.f32 %v1895_v19, %v1780_v18 }
 0x526   : > { %5439 = vmatmul.mubr.msk.bf16.vlgmr.msra.gmra.mxu0 %vm1025_vm2, %v1897_v20  ;;  %v1951_v22 = vmul.f32 0.25, %v1896_v21  ;;  %v2146_v20 = vunpack.c.0.s8 %v2145_v16  ;;  %v2148_v21 = vshrl.u32 %v2147_v17, 7 }
 0x527   : > { %5454 = vmatprep.mubr.msk.bf16.mxu0 %vm6035_vm1, %v6034_v15 }
 0x528   : > { %v1952_v23 = vsel %vm1025_vm2, %v1951_v22, 0.0 }
 0x529   : > { %5109 = vst [vmem:[%s6452_s0 + $0x8] sm:$0xff] %v1952_v23  ;;  %v6513_v23 = vsub.s32 %v2146_v20, %v2148_v21  ;;  %s7351_s0 = sld [smem:[#allocation22_spill]] }
 0x56c   : > { %v1128_v24 = vpop.f32.mrf.mxu0 }
 0x56d   : > { %1134 = vst.msk [vmem:[#allocation2] sm:$0xff] %vm1025_vm2, %v1128_v24  ;;  %v2135_v24 = vld [vmem:[%s885_s7] sm:$0xff] }
 0x56e   : > { %v5356_v25 = vpop.f32.mrf.mxu0 }
 0x570   : > { %v1131_v26 = vpop.f32.mrf.mxu0 }
 0x571   : > { %v2143_v26 = vcombine.high %v2135_v24, %v2135_v24 }
 0x572   : > { %v5357_v27 = vpop.f32.mrf.mxu0 }
 0x574   : > { %v1241_v28 = vpop.f32.mrf.mxu0 }
 0x575   : > { %1248 = vrot.lane.b32.xlu0 %v1241_v28, %s7277_s5  ;;  %v5120_v28 = vld.sshfl [vmem:[%s885_s7 + $0x8] sm:$0x3 pattern:$0x76325410] }
 0x576   : > { %v5368_v39 = vpop.f32.mrf.mxu0 }
 0x578   : > { %v1244_v29 = vpop.f32.mrf.mxu0 }
 0x579   : > { %v5121_v29 = vld.sshfl [vmem:[%s885_s7 + $0x18] sm:$0x3 pattern:$0x76325410] }
 0x57a   : > { %v5369_v30 = vpop.f32.mrf.mxu0 }
 0x57b   : > { %v2157_v30 = vrot.slane %v2143_v26, %v6513_v23 }
 0x5a1   : > { %v1358_v33 = vpop.f32.mrf.mxu0 }
 0x5a2   : > { %1365 = vrot.lane.b32.xlu0 %v1358_v33, %s7280_s28 }
 0x5a3   : > { %v5380_v34 = vpop.f32.mrf.mxu0 }
 0x5a5   : > { %v1361_v35 = vpop.f32.mrf.mxu0 }
 0x5a7   : > { %v5381_v36 = vpop.f32.mrf.mxu0 }
 0x5a9   : > { %v1475_v37 = vpop.f32.mrf.mxu0 }
 0x5aa   : > { %1482 = vrot.lane.b32.xlu0 %v1475_v37, %s7271_s6  ;;  %v5783_v37 = vld [vmem:[%s7337_s27 + $0x8] sm:$0xff]  }
 0x5ab   : > { %v5392_v38 = vpop.f32.mrf.mxu0  ;;  %5458 = vmatprep.subr.bf16.mxu1 %v5783_v37 }
 0x5ac   : > { %v5784_v38 = vld [vmem:[%s7337_s27] sm:$0xff]   ;;  %s6736_s27 = scalar_lea.vmem [#allocation5], %s6442_s3 }
 0x5ad   : > { %v1478_v40 = vpop.f32.mrf.mxu0  ;;  %7345 = sst [smem:[#allocation19_spill]] %s6736_s27 }
 0x5ae   : > { %v2159_v40 = vcombine.high %v2157_v30, %v2157_v30 }
 0x5af   : > { %v5393_v41 = vpop.f32.mrf.mxu0 }
 0x5b1   : > { %v1594_v44 = vpop.f32.mrf.mxu0 }
 0x5b2   : > { %1601 = vst.msk [vmem:[#allocation2 + $0x8] sm:$0xff] %vm1025_vm2, %v1594_v44 }
 0x5b3   : > { %v5404_v42 = vpop.f32.mrf.mxu0 }
 0x5b5   : > { %v1597_v43 = vpop.f32.mrf.mxu0 }
 0x5b6   : > { %v2192_v43 = vcombine.low %v2157_v30, %v2159_v40 }
 0x5b7   : > { %v5405_v45 = vpop.f32.mrf.mxu0 }
 0x5b9   : > { %v1708_v46 = vpop.f32.mrf.mxu0 }
 0x5ba   : > { %1715 = vrot.lane.b32.xlu1 %v1708_v46, %s7277_s5  ;;  %s7334_s5 = smov 24  }
 0x5bb   : > { %v5416_v47 = vpop.f32.mrf.mxu0 }
 0x5bd   : > { %v1711_v48 = vpop.f32.mrf.mxu0 }
 0x5be   : > { %v2206_v48 = vrot.slane %v2192_v43, %v6513_v23  ;;  %v5114_v43 = vld [vmem:[%s7239_s23 + $0x2] ss:$0 sm:$0xff] }
 0x5bf   : > { %v5417_v49 = vpop.f32.mrf.mxu0 }
 0x5d6   : > { %v1824_v50 = vpop.f32.mrf.mxu0 }
 0x5d7   : > { %1831 = vrot.lane.b32.xlu1 %v1824_v50, %s7280_s28  ;;  %s7346_s28 = smov 8  }
 0x5d8   : > { %v5428_v51 = vpop.f32.mrf.mxu0 }
 0x5da   : > { %v1827_v52 = vpop.f32.mrf.mxu0 }
 0x5dc   : > { %v5429_v54 = vpop.f32.mrf.mxu0 }
 0x5e6   : > { %v1940_v56 = vpop.f32.mrf.mxu0 }
 0x5e7   : > { %v1249_v57 = vpop.permute.xlu0 %1248  ;;  %1947 = vrot.lane.b32.xlu1 %v1940_v56, %s7334_s5 }
 0x5e8   : > { %1252 = vst.msk [vmem:[#allocation2] sm:$0xff] %vm1251_vm4, %v1249_v57  ;;  %v5440_v58 = vpop.f32.mrf.mxu0 }
 0x5ea   : > { %v1943_v59 = vpop.f32.mrf.mxu0 }
 0x5ec   : > { %v5441_v60 = vpop.f32.mrf.mxu0 }
 0x614   : > { %v1366_v61 = vpop.permute.xlu0 %1365 }
 0x615   : > { %1369 = vst.msk [vmem:[#allocation2] sm:$0xff] %vm1368_vm5, %v1366_v61 }
 0x61c   : > { %v1483_v62 = vpop.permute.xlu0 %1482 }
 0x61d   : > { %1486 = vst.msk [vmem:[#allocation2] sm:$0xff] %vm1485_vm6, %v1483_v62 }
 0x624   : > { %v1955_v2 = vld [vmem:[#allocation2] sm:$0xff] }
 0x62c   : > { %v1716_v63 = vpop.permute.xlu1 %1715 }
 0x62d   : > { %1718 = vst.msk [vmem:[#allocation2 + $0x8] sm:$0xff] %vm1251_vm4, %v1716_v63 }
 0x649   : > { %v1832_v0 = vpop.permute.xlu1 %1831 }
 0x64a   : > { %1834 = vst.msk [vmem:[#allocation2 + $0x8] sm:$0xff] %vm1368_vm5, %v1832_v0 }
 0x659   : > { %v1948_v1 = vpop.permute.xlu1 %1947 }
 0x65a   : > { %1950 = vst.msk [vmem:[#allocation2 + $0x8] sm:$0xff] %vm1485_vm6, %v1948_v1 }
 0x661   : > { %v1956_v3 = vld [vmem:[#allocation2 + $0x8] sm:$0xff] }
 0x662   : > { %v1957_v4 = vpack.c.bf16 %v1956_v3, %v1955_v2  ;;  %v5122_v2 = vld [vmem:[%s7340_s4] ss:$0 sm:$0xff]  ;;  %s7344_s4 = smov 72  }
 0x664   : > { %5447 = vmatmul.mubr.msk.bf16.vlgmr.msra.gmra.mxu1 %vm908_vm0, %v1957_v4 }
 0x665   : > { %5459 = vmatpush3.bf16.msra.mxu1 %v5783_v37 }
 0x666   : > { %5460 = vmatprep.subr.bf16.mxu1 %v5784_v38 }
 0x669   : > { %5461 = vmatpush3.bf16.msra.mxu1 %v5784_v38 }
 0x66a   : > { %5472 = vmatprep.subr.bf16.mxu1 %v6034_v15 }
 0x724   : > { %v2018_v6 = vpop.f32.mrf.mxu1 }
 0x725   : > { %v2019_v7 = vadd.f32 %v5110_v5, %v2018_v6 }
 0x726   : > { %v5448_v8 = vpop.f32.mrf.mxu1 }
 0x727   : > { %v2025_v9 = vadd.f32 %v2019_v7, %v6278_v31  ;;  %v2137_v31 = vld [vmem:[%s885_s7 + $0x10] sm:$0xff]  ;;  %s7338_s7 = sld [smem:[#allocation27_spill]] }
 0x728   : > { %v2021_v10 = vpop.f32.mrf.mxu1  ;;  %v2167_v22 = vcombine.high %v2137_v31, %v2137_v31  ;;  %v2174_v27 = vrot.slane %v2137_v31, %v6513_v23 }
 0x729   : > { %v2022_v11 = vadd.f32 %v5110_v5, %v2021_v10  ;;  %v2029_v12 = vsel %vm908_vm0, %v2025_v9, 0.0 }
 0x72a   : > { %2030 = vadd.xlane.f32.xlu0 %v2029_v12  ;;  %v5449_v13 = vpop.f32.mrf.mxu1  ;;  %v2181_v25 = vrot.slane %v2167_v22, %v6513_v23  ;;  %v2182_v34 = vcombine.high %v2174_v27, %v2174_v27  ;;  %v2208_v35 = vcombine.low %v5120_v28, %v2174_v27 }
 0x72b   : > { %v2026_v18 = vadd.f32 %v2022_v11, %v6280_v32  ;;  %v2150_v32 = vrot.slane %v2135_v24, %v6513_v23 }
 0x72c   : > { %v2183_v39 = vcombine.high %v2181_v25, %v2181_v25  ;;  %v2209_v44 = vcombine.low %v2182_v34, %v2181_v25  ;;  %v2216_v42 = vrot.slane %v2208_v35, %v6513_v23 }
 0x72d   : > { %v2032_v19 = vsel %vm908_vm0, %v2026_v18, 0.0  ;;  %v2158_v33 = vcombine.high %v2150_v32, %v2150_v32  ;;  %s7339_s6 = smov %s7338_s7  ;;  %v5785_v63 = vld [vmem:[%s7338_s7 + $0x8] sm:$0xff]   ;;  %s7350_s7 = sshll.u32 %s7375_s11, 4 }
 0x72e   : > { %2033 = vadd.xlane.f32.xlu1 %v2032_v19  ;;  %v2225_v36 = vcombine.low %v2183_v39, %v5121_v29  ;;  %v2223_v46 = vrot.slane %v2209_v44, %v6513_v23  ;;  %5451 = vmatpush3.bf16.msra.mxu0 %v5785_v63  ;;  %v5786_v0 = vld [vmem:[%s7339_s6] sm:$0xff]   ;;  %s7348_s6 = sld [smem:[#allocation31_spill]] }
 0x72f   : > { %v2191_v41 = vcombine.low %v2150_v32, %v2158_v33  ;;  %5452 = vmatprep.subr.bf16.mxu0 %v6034_v15 }
 0x730   : > { %v2232_v47 = vrot.slane %v2225_v36, %v6513_v23  ;;  %v2224_v49 = vcombine.low %v2216_v42, %v2223_v46 }
 0x731   : > { %v2199_v45 = vrot.slane %v2191_v41, %v6513_v23 }
 0x732   : > { %v2237_v51 = vpack.c.bf16 %v2232_v47, %v2232_v47  ;;  %5453 = vmatpush3.bf16.msra.mxu0 %v5786_v0 }
 0x733   : > { %v2207_v50 = vcombine.low %v2199_v45, %v2206_v48  ;;  %5466 = vmatprep.subr.bf16.mxu0 %v6034_v15  ;;  %v5115_v48 = vld [vmem:[%s7239_s23 + $0x3] ss:$0 sm:$0xff] }
 0x735   : > { %v2236_v52 = vpack.c.bf16 %v2224_v49, %v2207_v50 }
 0x737   : > { %5462 = vmatprep.mubr.msk.bf16.mxu1 %vm908_vm0, %v2236_v52 }
 0x738   : > { %5463 = vmatmul.mubr.msk.bf16.vlgmr.msra.gmra.mxu1 %vm908_vm0, %v2237_v51 }
 0x739   : > { %5474 = vmatprep.mubr.msk.bf16.mxu1 %vm6035_vm1, %v6034_v15 }
 0x7b3   : > { %v2031_v53 = vpop.xlane.xlu0 %2030 }
 0x7b4   : > { %v2035_v54 = vmul.f32 0.03125, %v2031_v53 }
 0x7b6   : > { %v6535_v55 = vsub.f32 %v2025_v9, %v2035_v54  ;;  %v5116_v54 = vld [vmem:[%s7342_s22] ss:$0 sm:$0xff] }
 0x7b7   : > { %v2034_v56 = vpop.xlane.xlu1 %2033 }
 0x7b8   : > { %v2036_v57 = vmul.f32 0.03125, %v2034_v56  ;;  %v2039_v58 = vmul.f32 %v6535_v55, %v6535_v55 }
 0x7ba   : > { %v6539_v59 = vsub.f32 %v2026_v18, %v2036_v57  ;;  %v2041_v60 = vsel %vm908_vm0, %v2039_v58, 0.0 }
 0x7bb   : > { %2042 = vadd.xlane.f32.xlu0 %v2041_v60 }
 0x7bc   : > { %v2040_v61 = vmul.f32 %v6539_v59, %v6539_v59 }
 0x7be   : > { %v2044_v62 = vsel %vm908_vm0, %v2040_v61, 0.0 }
 0x7bf   : > { %2045 = vadd.xlane.f32.xlu0 %v2044_v62 }
 0x7f8   : > { %v5464_v1 = vpop.f32.mrf.mxu1 }
 0x7f9   : > { %v2310_v8 = vadd.f32 %v5464_v1, %v5122_v2 }
 0x7fa   : > { %v2301_v3 = vpop.f32.mrf.mxu1 }
 0x7fb   : > { %v2302_v4 = vadd.f32 %v5122_v2, %v2301_v3  ;;  %v2358_v18 = vrot.slane %v2310_v8, %v6513_v23 }
 0x7fc   : > { %v5465_v5 = vpop.f32.mrf.mxu1 }
 0x7fd   : > { %v2318_v6 = vcombine.high %v2302_v4, %v2302_v4  ;;  %v2325_v7 = vrot.slane %v2302_v4, %v6513_v23  ;;  %v2359_v32 = vcombine.high %v2358_v18, %v2358_v18 }
 0x7fe   : > { %v2304_v9 = vpop.f32.mrf.mxu1 }
 0x7ff   : > { %v2332_v10 = vrot.slane %v2318_v6, %v6513_v23  ;;  %v2333_v11 = vcombine.high %v2325_v7, %v2325_v7  ;;  %v2305_v12 = vadd.f32 %v5122_v2, %v2304_v9  ;;  %v2411_v33 = vrot.slane %v2359_v32, %v6513_v23 }
 0x801   : > { %v2334_v13 = vcombine.high %v2332_v10, %v2332_v10  ;;  %v2364_v14 = vcombine.low %v2325_v7, %v2333_v11  ;;  %v2335_v16 = vcombine.high %v2305_v12, %v2305_v12  ;;  %v2342_v17 = vrot.slane %v2305_v12, %v6513_v23 }
 0x803   : > { %v2365_v19 = vcombine.low %v2332_v10, %v2334_v13  ;;  %v2372_v31 = vrot.slane %v2364_v14, %v6513_v23  ;;  %v2349_v20 = vrot.slane %v2335_v16, %v6513_v23  ;;  %v2350_v21 = vcombine.high %v2342_v17, %v2342_v17 }
 0x804   : > { %v2387_v25 = vrot.slane %v2342_v17, %v6513_v23 }
 0x805   : > { %v2379_v22 = vrot.slane %v2365_v19, %v6513_v23  ;;  %v2351_v24 = vcombine.high %v2349_v20, %v2349_v20  ;;  %v2388_v26 = vcombine.low %v2350_v21, %v2349_v20 }
 0x807   : > { %v2380_v27 = vcombine.low %v2372_v31, %v2379_v22  ;;  %v2389_v28 = vcombine.low %v2351_v24, %v2358_v18  ;;  %v2396_v39 = vrot.slane %v2388_v26, %v6513_v23 }
 0x809   : > { %v2403_v29 = vrot.slane %v2389_v28, %v6513_v23  ;;  %v6566_v30 = vpack.c.bf16 %v2387_v25, %v2380_v27 }
 0x80b   : > { %v2404_v34 = vcombine.low %v2396_v39, %v2403_v29  ;;  %2532 = vrot.lane.b32.xlu0 %v6566_v30, %s7341_s24  ;;  %v2422_v53 = vsel %vm1025_vm2, %v6566_v30, 0 }
 0x80d   : > { %v6571_v35 = vpack.c.bf16 %v2411_v33, %v2404_v34 }
 0x80f   : > { %2764 = vrot.lane.b32.xlu0 %v6566_v30, %s7330_s8  ;;  %v2885_v10 = vsel %vm1025_vm2, %v6571_v35, 0 }
 0x813   : > { %2993 = vrot.lane.b32.xlu0 %v6571_v35, %s7341_s24 }
 0x817   : > { %3109 = vrot.lane.b32.xlu0 %v6571_v35, %s7329_s2 }
 0x81b   : > { %3225 = vrot.lane.b32.xlu0 %v6571_v35, %s7330_s8 }
 0x844   : > { %v2043_v36 = vpop.xlane.xlu0 %2042 }
 0x845   : > { %v2047_v23 = vmul.f32 0.03125, %v2043_v36 }
 0x847   : > { %v2049_v37 = vadd.f32 1e-05, %v2047_v23 }
 0x848   : > { %v2046_v38 = vpop.xlane.xlu0 %2045 }
 0x849   : > { %5840 = vrsqrt.f32 %v2049_v37  ;;  %v2048_v40 = vmul.f32 0.03125, %v2046_v38 }
 0x84b   : > { %v2050_v41 = vadd.f32 1e-05, %v2048_v40 }
 0x84d   : > { %5842 = vrsqrt.f32 %v2050_v41 }
 0x856   : > { %v5841_v44 = vpop.eup %5840 }
 0x857   : > { %v2053_v42 = vmul.f32 %v5841_v44, %v6535_v55 }
 0x859   : > { %v2059_v47 = vmul.f32 %v5114_v43, %v2053_v42 }
 0x85a   : > { %v5843_v45 = vpop.eup %5842 }
 0x85b   : > { %v2054_v46 = vmul.f32 %v5843_v45, %v6539_v59  ;;  %v6589_v50 = vadd.f32 %v5115_v48, %v2059_v47 }
 0x85d   : > { %v2060_v49 = vmul.f32 %v5114_v43, %v2054_v46 }
 0x85f   : > { %v6591_v51 = vadd.f32 %v5115_v48, %v2060_v49 }
 0x861   : > { %v2067_v52 = vpack.c.bf16 %v6591_v51, %v6589_v50 }
 0x863   : > { %5455 = vmatmul.mubr.msk.bf16.vlgmr.msra.gmra.mxu0 %vm908_vm0, %v2067_v52 }
 0x864   : > { %5467 = vmatpush3.bf16.xpose.msra.mxu0 %v2422_v53  ;;  %5468 = vmatprep.mubr.msk.bf16.mxu0 %vm6035_vm1, %v6034_v15 }
 0x865   : > { %5478 = vmatprep.subr.bf16.mxu0 %v6034_v15 }
 0x87d   : > { %v2533_v60 = vpop.permute.xlu0 %2532 }
 0x87e   : > { %v2538_v62 = vsel %vm1025_vm2, %v2533_v60, 0 }
 0x881   : > { %v2765_v6 = vpop.permute.xlu0 %2764 }
 0x882   : > { %v2770_v8 = vsel %vm1025_vm2, %v2765_v6, 0 }
 0x885   : > { %v2994_v11 = vpop.permute.xlu0 %2993 }
 0x886   : > { %v2999_v12 = vsel %vm1025_vm2, %v2994_v11, 0 }
 0x889   : > { %v3110_v13 = vpop.permute.xlu0 %3109 }
 0x88a   : > { %v3115_v16 = vsel %vm1025_vm2, %v3110_v13, 0 }
 0x88d   : > { %v3226_v17 = vpop.permute.xlu0 %3225 }
 0x88e   : > { %v3231_v19 = vsel %vm1025_vm2, %v3226_v17, 0 }
 0x923   : > { %v2128_v55 = vpop.f32.mrf.mxu0 }
 0x924   : > { %v2129_v56 = vadd.f32 %v5116_v54, %v2128_v55 }
 0x925   : > { %v5456_v57 = vpop.f32.mrf.mxu0 }
 0x926   : > { %v2360_v58 = vmul.f32 0.35355338, %v2129_v56 }
 0x927   : > { %v2131_v59 = vpop.f32.mrf.mxu0 }
 0x928   : > { %v2362_v61 = vpack.c.bf16 %v2360_v58, %v2360_v58  ;;  %v2132_v0 = vadd.f32 %v5116_v54, %v2131_v59 }
 0x929   : > { %v5457_v63 = vpop.f32.mrf.mxu0 }
 0x92a   : > { %2530 = vrot.lane.b32.xlu1 %v2362_v61, %s7341_s24  ;;  %5469 = vmatmul.mubr.msk.bf16.vlgmr.msra.gmra.mxu0 %vm1025_vm2, %v2362_v61  ;;  %v2361_v1 = vmul.f32 0.35355338, %v2132_v0 }
 0x92b   : > { %5479 = vmatpush3.bf16.xpose.msra.mxu0 %v2538_v62  ;;  %5480 = vmatprep.mubr.msk.bf16.mxu0 %vm6035_vm1, %v6034_v15 }
 0x92c   : > { %5490 = vmatprep.subr.bf16.mxu0 %v6034_v15  ;;  %v2363_v2 = vpack.c.bf16 %v2361_v1, %v2361_v1 }
 0x92e   : > { %2648 = vrot.lane.b32.xlu1 %v6566_v30, %s7329_s2 }
 0x932   : > { %2646 = vrot.lane.b32.xlu1 %v2362_v61, %s7329_s2 }
 0x936   : > { %2762 = vrot.lane.b32.xlu1 %v2362_v61, %s7330_s8 }
 0x93a   : > { %2991 = vrot.lane.b32.xlu1 %v2363_v2, %s7341_s24 }
 0x93e   : > { %3107 = vrot.lane.b32.xlu1 %v2363_v2, %s7329_s2 }
 0x942   : > { %3223 = vrot.lane.b32.xlu1 %v2363_v2, %s7330_s8 }
 0x99c   : > { %v2531_v3 = vpop.permute.xlu1 %2530 }
 0x99d   : > { %5481 = vmatmul.mubr.msk.bf16.vlgmr.msra.gmra.mxu0 %vm1025_vm2, %v2531_v3 }
 0x99e   : > { %5492 = vmatprep.mubr.msk.bf16.mxu0 %vm6035_vm1, %v6034_v15 }
 0x9a0   : > { %v2649_v4 = vpop.permute.xlu1 %2648 }
 0x9a1   : > { %v2654_v5 = vsel %vm1025_vm2, %v2649_v4, 0 }
 0x9a2   : > { %5491 = vmatpush3.bf16.xpose.msra.mxu0 %v2654_v5 }
 0x9a3   : > { %5502 = vmatprep.subr.bf16.mxu0 %v6034_v15 }
 0x9a4   : > { %v2647_v7 = vpop.permute.xlu1 %2646 }
 0x9a8   : > { %v2763_v9 = vpop.permute.xlu1 %2762 }
 0x9a9   : > { %5493 = vmatmul.mubr.msk.bf16.vlgmr.msra.gmra.mxu0 %vm1025_vm2, %v2647_v7 }
 0x9aa   : > { %5503 = vmatpush3.bf16.xpose.msra.mxu0 %v2770_v8  ;;  %5504 = vmatprep.mubr.msk.bf16.mxu0 %vm6035_vm1, %v6034_v15 }
 0x9ab   : > { %5514 = vmatprep.subr.bf16.mxu0 %v6034_v15 }
 0x9ac   : > { %v2992_v14 = vpop.permute.xlu1 %2991 }
 0x9b0   : > { %v3108_v18 = vpop.permute.xlu1 %3107 }
 0x9b1   : > { %5505 = vmatmul.mubr.msk.bf16.vlgmr.msra.gmra.mxu0 %vm1025_vm2, %v2763_v9 }
 0x9b2   : > { %5515 = vmatpush3.bf16.xpose.msra.mxu0 %v2885_v10  ;;  %5516 = vmatprep.mubr.msk.bf16.mxu0 %vm6035_vm1, %v6034_v15 }
 0x9b3   : > { %5526 = vmatprep.subr.bf16.mxu0 %v6034_v15 }
 0x9b4   : > { %v3224_v31 = vpop.permute.xlu1 %3223 }
 0x9b9   : > { %5517 = vmatmul.mubr.msk.bf16.vlgmr.msra.gmra.mxu0 %vm1025_vm2, %v2363_v2 }
 0x9ba   : > { %5527 = vmatpush3.bf16.xpose.msra.mxu0 %v2999_v12  ;;  %5528 = vmatprep.mubr.msk.bf16.mxu0 %vm6035_vm1, %v6034_v15 }
 0x9bb   : > { %5538 = vmatprep.subr.bf16.mxu0 %v6034_v15 }
 0x9c1   : > { %5529 = vmatmul.mubr.msk.bf16.vlgmr.msra.gmra.mxu0 %vm1025_vm2, %v2992_v14 }
 0x9c2   : > { %5539 = vmatpush3.bf16.xpose.msra.mxu0 %v3115_v16  ;;  %5540 = vmatprep.mubr.msk.bf16.mxu0 %vm6035_vm1, %v6034_v15 }
 0x9c3   : > { %5550 = vmatprep.subr.bf16.mxu0 %v6034_v15 }
 0x9c9   : > { %5541 = vmatmul.mubr.msk.bf16.vlgmr.msra.gmra.mxu0 %vm1025_vm2, %v3108_v18 }
 0x9ca   : > { %5551 = vmatpush3.bf16.xpose.msra.mxu0 %v3231_v19  ;;  %5552 = vmatprep.mubr.msk.bf16.mxu0 %vm6035_vm1, %v6034_v15 }
 0x9cb   : > { %5562 = vmatprep.subr.bf16.mxu0 %v6034_v15 }
 0x9d1   : > { %5553 = vmatmul.mubr.msk.bf16.vlgmr.msra.gmra.mxu0 %vm1025_vm2, %v3224_v31 }
 0x9d2   : > { %5566 = vmatprep.mubr.msk.bf16.mxu0 %vm6035_vm1, %v6034_v15 }
 0x9ea   : > { %v2458_v20 = vpop.f32.mrf.mxu0 }
 0x9eb   : > { %v2465_v21 = vsel %vm2464_vm7, %v2458_v20, -inf }
 0x9ec   : > { %2466 = vmax.xlane.f32.xlu0 %v2465_v21  ;;  %v5470_v22 = vpop.f32.mrf.mxu0 }
 0x9ee   : > { %v2461_v24 = vpop.f32.mrf.mxu0 }
 0x9f0   : > { %v5471_v25 = vpop.f32.mrf.mxu0 }
 0xa02   : > { %2479 = vrot.lane.b32.xlu0 %v6566_v30, %s7328_s29 }
 0xa5d   : > { %v2574_v26 = vpop.f32.mrf.mxu0 }
 0xa5e   : > { %v2580_v32 = vsel %vm2464_vm7, %v2574_v26, -inf }
 0xa5f   : > { %2581 = vmax.xlane.f32.xlu1 %v2580_v32  ;;  %v5482_v27 = vpop.f32.mrf.mxu0 }
 0xa61   : > { %v2577_v28 = vpop.f32.mrf.mxu0 }
 0xa63   : > { %v5483_v39 = vpop.f32.mrf.mxu0 }
 0xa69   : > { %v2690_v29 = vpop.f32.mrf.mxu0 }
 0xa6a   : > { %v2696_v33 = vsel %vm2464_vm7, %v2690_v29, -inf }
 0xa6b   : > { %2697 = vmax.xlane.f32.xlu0 %v2696_v33  ;;  %v5494_v34 = vpop.f32.mrf.mxu0 }
 0xa6d   : > { %v2693_v36 = vpop.f32.mrf.mxu0 }
 0xa6f   : > { %v5495_v23 = vpop.f32.mrf.mxu0 }
 0xa70   : > { %2593 = vrot.lane.b32.xlu1 %v6566_v30, %s7327_s10 }
 0xa71   : > { %v2806_v37 = vpop.f32.mrf.mxu0 }
 0xa72   : > { %v2812_v38 = vsel %vm2464_vm7, %v2806_v37, -inf }
 0xa73   : > { %2813 = vmax.xlane.f32.xlu0 %v2812_v38  ;;  %v5506_v40 = vpop.f32.mrf.mxu0 }
 0xa75   : > { %v2467_v41 = vpop.xlane.xlu0 %2466  ;;  %v2809_v44 = vpop.f32.mrf.mxu0 }
 0xa76   : > { %v2468_v4 = vsub.f32 %v2458_v20, %v2467_v41 }
 0xa77   : > { %v5507_v42 = vpop.f32.mrf.mxu0 }
 0xa78   : > { %v2469_v5 = vmul.f32 1.442695, %v2468_v4 }
 0xa79   : > { %v2480_v43 = vpop.permute.xlu0 %2479  ;;  %v2921_v45 = vpop.f32.mrf.mxu0 }
 0xa7a   : > { %v2486_v46 = vsel %vm2484_vm8, %v2480_v43, 0  ;;  %v2927_v47 = vsel %vm2464_vm7, %v2921_v45, -inf  ;;  %5844 = vpow2.f32 %v2469_v5 }
 0xa7b   : > { %5473 = vmatpush3.bf16.msra.mxu1 %v2486_v46  ;;  %2928 = vmax.xlane.f32.xlu0 %v2927_v47  ;;  %v5518_v48 = vpop.f32.mrf.mxu0 }
 0xa7c   : > { %5484 = vmatprep.subr.bf16.mxu1 %v6034_v15 }
 0xa7d   : > { %v2924_v49 = vpop.f32.mrf.mxu0 }
 0xa7f   : > { %v5519_v52 = vpop.f32.mrf.mxu0 }
 0xa81   : > { %v3035_v53 = vpop.f32.mrf.mxu0 }
 0xa82   : > { %v3041_v0 = vsel %vm2464_vm7, %v3035_v53, -inf }
 0xa83   : > { %v5530_v54 = vpop.f32.mrf.mxu0 }
 0xa85   : > { %v3038_v55 = vpop.f32.mrf.mxu0 }
 0xa87   : > { %v5531_v56 = vpop.f32.mrf.mxu0  ;;  %v5845_v6 = vpop.eup %5844 }
 0xa88   : > { %v2471_v7 = vsel %vm2464_vm7, %v5845_v6, 0.0 }
 0xa89   : > { %v3151_v57 = vpop.f32.mrf.mxu0 }
 0xa8a   : > { %v3157_v58 = vsel %vm2464_vm7, %v3151_v57, -inf }
 0xa8b   : > { %3158 = vmax.xlane.f32.xlu0 %v3157_v58  ;;  %v5542_v59 = vpop.f32.mrf.mxu0 }
 0xa8d   : > { %v3154_v60 = vpop.f32.mrf.mxu0 }
 0xa8f   : > { %v5543_v61 = vpop.f32.mrf.mxu0 }
 0xa91   : > { %v6663_v62 = vpop.f32.mrf.mxu0 }
 0xa92   : > { %v3273_v3 = vsel %vm2464_vm7, %v6663_v62, -inf }
 0xa93   : > { %v5554_v63 = vpop.f32.mrf.mxu0 }
 0xa94   : > { %3042 = vmax.xlane.f32.xlu1 %v3041_v0 }
 0xa95   : > { %v3270_v1 = vpop.f32.mrf.mxu0 }
 0xa97   : > { %v5555_v2 = vpop.f32.mrf.mxu0 }
 0xa98   : > { %3274 = vmax.xlane.f32.xlu1 %v3273_v3 }
 0xaa1   : > { %2709 = vrot.lane.b32.xlu0 %v6566_v30, %s7343_s25 }
 0xac0   : > { %2472 = vadd.xlane.f32.xlu0 %v2471_v7 }
 0xae8   : > { %v2582_v8 = vpop.xlane.xlu1 %2581 }
 0xae9   : > { %v2583_v9 = vsub.f32 %v2574_v26, %v2582_v8 }
 0xaeb   : > { %v2584_v10 = vmul.f32 1.442695, %v2583_v9 }
 0xaec   : > { %v2594_v20 = vpop.permute.xlu1 %2593 }
 0xaed   : > { %5846 = vpow2.f32 %v2584_v10  ;;  %v2599_v49 = vsel %vm2484_vm8, %v2594_v20, 0 }
 0xaf4   : > { %v2698_v11 = vpop.xlane.xlu0 %2697 }
 0xaf5   : > { %v2699_v12 = vsub.f32 %v2690_v29, %v2698_v11 }
 0xaf7   : > { %v2700_v13 = vmul.f32 1.442695, %v2699_v12 }
 0xaf9   : > { %5848 = vpow2.f32 %v2700_v13 }
 0xafa   : > { %v6671_v14 = vpop.eup %5846 }
 0xafb   : > { %v2586_v16 = vsel %vm2464_vm7, %v6671_v14, 0.0 }
 0xafc   : > { %2587 = vadd.xlane.f32.xlu1 %v2586_v16  ;;  %v2814_v19 = vpop.xlane.xlu0 %2813 }
 0xafd   : > { %v2815_v31 = vsub.f32 %v2806_v37, %v2814_v19 }
 0xaff   : > { %v2816_v22 = vmul.f32 1.442695, %v2815_v31 }
 0xb01   : > { %5850 = vpow2.f32 %v2816_v22 }
 0xb04   : > { %v2929_v21 = vpop.xlane.xlu0 %2928 }
 0xb05   : > { %v2930_v24 = vsub.f32 %v2921_v45, %v2929_v21 }
 0xb06   : > { %v6675_v17 = vpop.eup %5848 }
 0xb07   : > { %v2702_v18 = vsel %vm2464_vm7, %v6675_v17, 0.0  ;;  %v2931_v26 = vmul.f32 1.442695, %v2930_v24 }
 0xb08   : > { %2703 = vadd.xlane.f32.xlu0 %v2702_v18 }
 0xb09   : > { %5852 = vpow2.f32 %v2931_v26 }
 0xb0d   : > { %2941 = vrot.lane.b32.xlu1 %v6571_v35, %s7328_s29 }
 0xb0e   : > { %v6683_v33 = vpop.eup %5850 }
 0xb0f   : > { %v2818_v34 = vsel %vm2464_vm7, %v6683_v33, 0.0 }
 0xb14   : > { %v3159_v27 = vpop.xlane.xlu0 %3158 }
 0xb15   : > { %v3160_v28 = vsub.f32 %v3151_v57, %v3159_v27 }
 0xb16   : > { %v6687_v36 = vpop.eup %5852 }
 0xb17   : > { %v3161_v29 = vmul.f32 1.442695, %v3160_v28 }
 0xb18   : > { %v2710_v41 = vpop.permute.xlu0 %2709 }
 0xb19   : > { %v2715_v59 = vsel %vm2484_vm8, %v2710_v41, 0 }
 0xb1d   : > { %v3043_v25 = vpop.xlane.xlu1 %3042 }
 0xb1e   : > { %2825 = vrot.lane.b32.xlu0 %v6566_v30, %s7344_s4  ;;  %v3044_v32 = vsub.f32 %v3035_v53, %v3043_v25  ;;  %v2933_v30 = vsel %vm2464_vm7, %v6687_v36, 0.0 }
 0xb20   : > { %v3045_v39 = vmul.f32 1.442695, %v3044_v32 }
 0xb21   : > { %v3275_v42 = vpop.xlane.xlu1 %3274 }
 0xb22   : > { %5854 = vpow2.f32 %v3045_v39  ;;  %v3276_v43 = vsub.f32 %v6663_v62, %v3275_v42 }
 0xb23   : > { %5856 = vpow2.f32 %v3161_v29 }
 0xb24   : > { %v3277_v47 = vmul.f32 1.442695, %v3276_v43 }
 0xb2f   : > { %v6691_v23 = vpop.eup %5854 }
 0xb30   : > { %v3047_v37 = vsel %vm2464_vm7, %v6691_v23, 0.0  ;;  %v6695_v38 = vpop.eup %5856 }
 0xb31   : > { %2819 = vadd.xlane.f32.xlu1 %v2818_v34  ;;  %v3163_v40 = vsel %vm2464_vm7, %v6695_v38, 0.0 }
 0xb35   : > { %2934 = vadd.xlane.f32.xlu1 %v2933_v30 }
 0xb39   : > { %3048 = vadd.xlane.f32.xlu1 %v3047_v37 }
 0xb3d   : > { %3164 = vadd.xlane.f32.xlu0 %v3163_v40 }
 0xb49   : > { %v2473_v44 = vpop.xlane.xlu0 %2472 }
 0xb4a   : > { %5858 = vrcp.f32 %v2473_v44  ;;  %3054 = vrot.lane.b32.xlu1 %v6571_v35, %s7327_s10 }
 0xb4b   : > { %5860 = vpow2.f32 %v3277_v47 }
 0xb53   : > { %3170 = vrot.lane.b32.xlu0 %v6571_v35, %s7343_s25 }
 0xb57   : > { %v5859_v45 = vpop.eup %5858 }
 0xb58   : > { %v2475_v46 = vmul.f32 %v5859_v45, %v5845_v6  ;;  %v6709_v52 = vpop.eup %5860 }
 0xb59   : > { %v3279_v53 = vsel %vm2464_vm7, %v6709_v52, 0.0 }
 0xb5a   : > { %v2477_v48 = vpack.c.bf16 %v2475_v46, %v2475_v46 }
 0xb5c   : > { %5475 = vmatmul.mubr.msk.bf16.vlgmr.msra.gmra.mxu1 %vm2464_vm7, %v2477_v48 }
 0xb5d   : > { %5485 = vmatpush3.bf16.msra.mxu1 %v2599_v49  ;;  %5486 = vmatprep.mubr.msk.bf16.mxu1 %vm6035_vm1, %v6034_v15 }
 0xb5e   : > { %5496 = vmatprep.subr.bf16.mxu1 %v6034_v15 }
 0xb6e   : > { %3280 = vadd.xlane.f32.xlu1 %v3279_v53 }
 0xb7f   : > { %3286 = vrot.lane.b32.xlu1 %v6571_v35, %s7344_s4 }
 0xb85   : > { %v2588_v54 = vpop.xlane.xlu1 %2587 }
 0xb86   : > { %5862 = vrcp.f32 %v2588_v54 }
 0xb89   : > { %v2942_v0 = vpop.permute.xlu1 %2941 }
 0xb8a   : > { %v2947_v12 = vsel %vm2484_vm8, %v2942_v0, 0 }
 0xb91   : > { %v2704_v55 = vpop.xlane.xlu0 %2703 }
 0xb92   : > { %5864 = vrcp.f32 %v2704_v55 }
 0xb93   : > { %v5863_v56 = vpop.eup %5862 }
 0xb94   : > { %v2590_v57 = vmul.f32 %v5863_v56, %v6671_v14 }
 0xb95   : > { %v2826_v61 = vpop.permute.xlu0 %2825 }
 0xb96   : > { %v2592_v58 = vpack.c.bf16 %v2590_v57, %v2590_v57  ;;  %v2831_v63 = vsel %vm2484_vm8, %v2826_v61, 0  ;;  %v2591_v4 = vadd.f32 %v2590_v57, %v2475_v46 }
 0xb98   : > { %5487 = vmatmul.mubr.msk.bf16.vlgmr.msra.gmra.mxu1 %vm2464_vm7, %v2592_v58 }
 0xb99   : > { %5497 = vmatpush3.bf16.msra.mxu1 %v2715_v59  ;;  %5498 = vmatprep.mubr.msk.bf16.mxu1 %vm6035_vm1, %v6034_v15 }
 0xb9a   : > { %5508 = vmatprep.subr.bf16.mxu1 %v6034_v15 }
 0xb9f   : > { %v5865_v60 = vpop.eup %5864 }
 0xba0   : > { %v2706_v35 = vmul.f32 %v5865_v60, %v6675_v17 }
 0xba2   : > { %v2708_v62 = vpack.c.bf16 %v2706_v35, %v2706_v35  ;;  %v2707_v6 = vadd.f32 %v2706_v35, %v2591_v4 }
 0xba4   : > { %5499 = vmatmul.mubr.msk.bf16.vlgmr.msra.gmra.mxu1 %vm2464_vm7, %v2708_v62 }
 0xba5   : > { %5509 = vmatpush3.bf16.msra.mxu1 %v2831_v63  ;;  %5510 = vmatprep.mubr.msk.bf16.mxu1 %vm6035_vm1, %v6034_v15 }
 0xba6   : > { %5520 = vmatprep.subr.bf16.mxu1 %v6034_v15 }
 0xbba   : > { %v2820_v1 = vpop.xlane.xlu1 %2819 }
 0xbbb   : > { %5866 = vrcp.f32 %v2820_v1 }
 0xbbe   : > { %v2935_v2 = vpop.xlane.xlu1 %2934 }
 0xbbf   : > { %5868 = vrcp.f32 %v2935_v2 }
 0xbc2   : > { %v3049_v3 = vpop.xlane.xlu1 %3048 }
 0xbc3   : > { %5870 = vrcp.f32 %v3049_v3 }
 0xbc6   : > { %v3165_v11 = vpop.xlane.xlu0 %3164  ;;  %v3055_v17 = vpop.permute.xlu1 %3054 }
 0xbc7   : > { %5872 = vrcp.f32 %v3165_v11  ;;  %v3060_v31 = vsel %vm2484_vm8, %v3055_v17, 0 }
 0xbc8   : > { %v5867_v5 = vpop.eup %5866 }
 0xbc9   : > { %v2822_v7 = vmul.f32 %v5867_v5, %v6683_v33  ;;  %v5787_v5 = vld [vmem:[%s7348_s6 + $0x8] sm:$0xff]  }
 0xbca   : > { %v3171_v21 = vpop.permute.xlu0 %3170  ;;  %5563 = vmatpush3.bf16.msra.mxu0 %v5787_v5 }
 0xbcb   : > { %v2824_v8 = vpack.c.bf16 %v2822_v7, %v2822_v7  ;;  %v2823_v9 = vadd.f32 %v2822_v7, %v2707_v6  ;;  %v3176_v25 = vsel %vm2484_vm8, %v3171_v21, 0  ;;  %v5788_v6 = vld [vmem:[%s7348_s6] sm:$0xff]   ;;  %5564 = vmatprep.subr.bf16.mxu0 %v6034_v15  ;;  %s892_s6 = scalar_lea.vmem %s7351_s0, %s7350_s7 }
 0xbcc   : > { %v5869_v10 = vpop.eup %5868 }
 0xbcd   : > { %5511 = vmatmul.mubr.msk.bf16.vlgmr.msra.gmra.mxu1 %vm2464_vm7, %v2824_v8  ;;  %v2878_v13 = vmul.f32 0.25, %v2823_v9  ;;  %v2937_v14 = vmul.f32 %v5869_v10, %v6687_v36 }
 0xbce   : > { %5521 = vmatpush3.bf16.msra.mxu1 %v2947_v12  ;;  %5522 = vmatprep.mubr.msk.bf16.mxu1 %vm6035_vm1, %v6034_v15 }
 0xbcf   : > { %5532 = vmatprep.subr.bf16.mxu1 %v6034_v15  ;;  %v2879_v16 = vsel %vm2464_vm7, %v2878_v13, 0.0  ;;  %v2939_v18 = vpack.c.bf16 %v2937_v14, %v2937_v14  ;;  %5565 = vmatpush3.bf16.msra.mxu0 %v5788_v6 }
 0xbd0   : > { %2880 = vst [vmem:[%s6736_s27] sm:$0xff] %v2879_v16  ;;  %v5871_v19 = vpop.eup %5870 }
 0xbd1   : > { %v3051_v20 = vmul.f32 %v5871_v19, %v6691_v23 }
 0xbd3   : > { %v3053_v22 = vpack.c.bf16 %v3051_v20, %v3051_v20  ;;  %v3052_v29 = vadd.f32 %v3051_v20, %v2937_v14  ;;  %v5144_v20 = vld [vmem:[%s7349_s12] ss:$0 sm:$0xff] }
 0xbd4   : > { %v5873_v24 = vpop.eup %5872 }
 0xbd5   : > { %5523 = vmatmul.mubr.msk.bf16.vlgmr.msra.gmra.mxu1 %vm2464_vm7, %v2939_v18  ;;  %v3167_v26 = vmul.f32 %v5873_v24, %v6695_v38 }
 0xbd6   : > { %5533 = vmatpush3.bf16.msra.mxu1 %v3060_v31  ;;  %5534 = vmatprep.mubr.msk.bf16.mxu1 %vm6035_vm1, %v6034_v15 }
 0xbd7   : > { %5544 = vmatprep.subr.bf16.mxu1 %v6034_v15  ;;  %v3169_v32 = vpack.c.bf16 %v3167_v26, %v3167_v26  ;;  %v3168_v34 = vadd.f32 %v3167_v26, %v3052_v29 }
 0xbdd   : > { %5535 = vmatmul.mubr.msk.bf16.vlgmr.msra.gmra.mxu1 %vm2464_vm7, %v3053_v22 }
 0xbde   : > { %5545 = vmatpush3.bf16.msra.mxu1 %v3176_v25  ;;  %5546 = vmatprep.mubr.msk.bf16.mxu1 %vm6035_vm1, %v6034_v15 }
 0xbdf   : > { %5556 = vmatprep.subr.bf16.mxu1 %v6034_v15 }
 0xbe5   : > { %5547 = vmatmul.mubr.msk.bf16.vlgmr.msra.gmra.mxu1 %vm2464_vm7, %v3169_v32 }
 0xbe6   : > { %5558 = vmatprep.mubr.msk.bf16.mxu1 %vm6035_vm1, %v6034_v15 }
 0xbf7   : > { %v3281_v27 = vpop.xlane.xlu1 %3280 }
 0xbf8   : > { %5874 = vrcp.f32 %v3281_v27 }
 0xbfb   : > { %v3287_v28 = vpop.permute.xlu1 %3286 }
 0xbfc   : > { %v3292_v39 = vsel %vm2484_vm8, %v3287_v28, 0 }
 0xbfd   : > { %5557 = vmatpush3.bf16.msra.mxu1 %v3292_v39 }
 0xbfe   : > { %5570 = vmatprep.subr.bf16.mxu1 %v6034_v15 }
 0xc05   : > { %v5875_v33 = vpop.eup %5874 }
 0xc06   : > { %v3283_v36 = vmul.f32 %v5875_v33, %v6709_v52  ;;  %v5790_v33 = vld [vmem:[%s7231_s15] sm:$0xff]  }
 0xc08   : > { %v3285_v30 = vpack.c.bf16 %v3283_v36, %v3283_v36  ;;  %v3284_v23 = vadd.f32 %v3283_v36, %v3168_v34  ;;  %v3523_v34 = vld [vmem:[%s892_s6] sm:$0xff]  ;;  %v3526_v36 = vld [vmem:[%s892_s6 + $0x18] sm:$0xf] }
 0xc0a   : > { %5559 = vmatmul.mubr.msk.bf16.vlgmr.msra.gmra.mxu1 %vm2464_vm7, %v3285_v30  ;;  %v3339_v37 = vmul.f32 0.25, %v3284_v23  ;;  %v3524_v30 = vld [vmem:[%s892_s6 + $0x8] sm:$0xf]  ;;  %v3531_v23 = vcombine.high %v3523_v34, %v3523_v34 }
 0xc0b   : > { %5574 = vmatprep.mubr.msk.bf16.mxu1 %vm6035_vm1, %v6034_v15 }
 0xc0c   : > { %v3340_v38 = vsel %vm2464_vm7, %v3339_v37, 0.0 }
 0xc0d   : > { %5143 = vst [vmem:[%s6736_s27 + $0x8] sm:$0xff] %v3340_v38  ;;  %s7087_s27 = sshll.u32 %s6216_s9, 8 }
 0xc0e   : > { %s7093_s0 = scalar_lea.hbm %s7357_s26, %s7087_s27 }
 0xc1c   : > { %v2522_v40 = vpop.f32.mrf.mxu1 }
 0xc1d   : > { %2528 = vst.msk [vmem:[#allocation2] sm:$0xff] %vm1025_vm2, %v2522_v40  ;;  %v3533_v40 = vcombine.low %v3523_v34, %v3531_v23 }
 0xc1e   : > { %v5476_v41 = vpop.f32.mrf.mxu1 }
 0xc20   : > { %v2525_v44 = vpop.f32.mrf.mxu1 }
 0xc22   : > { %v5477_v42 = vpop.f32.mrf.mxu1 }
 0xc58   : > { %v2635_v43 = vpop.f32.mrf.mxu1 }
 0xc59   : > { %2642 = vrot.lane.b32.xlu0 %v2635_v43, %s7346_s28 }
 0xc5a   : > { %v5488_v45 = vpop.f32.mrf.mxu1 }
 0xc5c   : > { %v2638_v46 = vpop.f32.mrf.mxu1 }
 0xc5e   : > { %v5489_v47 = vpop.f32.mrf.mxu1 }
 0xc64   : > { %v2751_v48 = vpop.f32.mrf.mxu1 }
 0xc65   : > { %2758 = vrot.lane.b32.xlu0 %v2751_v48, %s7347_s30 }
 0xc66   : > { %v5500_v49 = vpop.f32.mrf.mxu1 }
 0xc68   : > { %v2754_v52 = vpop.f32.mrf.mxu1 }
 0xc6a   : > { %v5501_v53 = vpop.f32.mrf.mxu1 }
 0xc8d   : > { %v2867_v54 = vpop.f32.mrf.mxu1 }
 0xc8e   : > { %2874 = vrot.lane.b32.xlu0 %v2867_v54, %s7334_s5 }
 0xc8f   : > { %v5512_v55 = vpop.f32.mrf.mxu1 }
 0xc91   : > { %v2870_v56 = vpop.f32.mrf.mxu1 }
 0xc92   : > { %v5794_v56 = vld [vmem:[%s7352_s13 + $0x8] sm:$0xff]  }
 0xc93   : > { %v5513_v57 = vpop.f32.mrf.mxu1  ;;  %5571 = vmatpush3.bf16.msra.mxu1 %v5794_v56 }
 0xc94   : > { %v5795_v57 = vld [vmem:[%s7352_s13] sm:$0xff]   ;;  %5572 = vmatprep.subr.bf16.mxu1 %v6034_v15 }
 0xc95   : > { %v2983_v58 = vpop.f32.mrf.mxu1 }
 0xc96   : > { %2989 = vst.msk [vmem:[#allocation2 + $0x8] sm:$0xff] %vm1025_vm2, %v2983_v58 }
 0xc97   : > { %v5524_v59 = vpop.f32.mrf.mxu1  ;;  %5573 = vmatpush3.bf16.msra.mxu1 %v5795_v57 }
 0xc98   : > { %5586 = vmatprep.subr.bf16.mxu1 %v6034_v15  ;;  %v5154_v59 = vld [vmem:[%s7232_s16] ss:$0 sm:$0xff] }
 0xc99   : > { %v2986_v60 = vpop.f32.mrf.mxu1 }
 0xc9b   : > { %v5525_v35 = vpop.f32.mrf.mxu1 }
 0xc9d   : > { %v3096_v61 = vpop.f32.mrf.mxu1 }
 0xc9e   : > { %3103 = vrot.lane.b32.xlu1 %v3096_v61, %s7346_s28 }
 0xc9f   : > { %v5536_v62 = vpop.f32.mrf.mxu1 }
 0xca1   : > { %v3099_v63 = vpop.f32.mrf.mxu1 }
 0xca3   : > { %v5537_v0 = vpop.f32.mrf.mxu1 }
 0xca5   : > { %v3212_v1 = vpop.f32.mrf.mxu1 }
 0xca6   : > { %3219 = vrot.lane.b32.xlu1 %v3212_v1, %s7347_s30 }
 0xca7   : > { %v5548_v2 = vpop.f32.mrf.mxu1 }
 0xca9   : > { %v3215_v3 = vpop.f32.mrf.mxu1 }
 0xcab   : > { %v5549_v4 = vpop.f32.mrf.mxu1 }
 0xcca   : > { %v3328_v7 = vpop.f32.mrf.mxu1 }
 0xccb   : > { %v2643_v8 = vpop.permute.xlu0 %2642  ;;  %3335 = vrot.lane.b32.xlu1 %v3328_v7, %s7334_s5 }
 0xccc   : > { %2645 = vst.msk [vmem:[#allocation2] sm:$0xff] %vm1251_vm4, %v2643_v8  ;;  %v5560_v9 = vpop.f32.mrf.mxu1 }
 0xcce   : > { %v3331_v10 = vpop.f32.mrf.mxu1 }
 0xcd0   : > { %v5561_v11 = vpop.f32.mrf.mxu1 }
 0xcd7   : > { %v2759_v12 = vpop.permute.xlu0 %2758 }
 0xcd8   : > { %2761 = vst.msk [vmem:[#allocation2] sm:$0xff] %vm1368_vm5, %v2759_v12 }
 0xd00   : > { %v2875_v13 = vpop.permute.xlu0 %2874 }
 0xd01   : > { %2877 = vst.msk [vmem:[#allocation2] sm:$0xff] %vm1485_vm6, %v2875_v13 }
 0xd08   : > { %v3343_v18 = vld [vmem:[#allocation2] sm:$0xff] }
 0xd10   : > { %v3104_v14 = vpop.permute.xlu1 %3103 }
 0xd11   : > { %3106 = vst.msk [vmem:[#allocation2 + $0x8] sm:$0xff] %vm1251_vm4, %v3104_v14 }
 0xd18   : > { %v3220_v16 = vpop.permute.xlu1 %3219 }
 0xd19   : > { %3222 = vst.msk [vmem:[#allocation2 + $0x8] sm:$0xff] %vm1368_vm5, %v3220_v16 }
 0xd3d   : > { %v3336_v17 = vpop.permute.xlu1 %3335 }
 0xd3e   : > { %3338 = vst.msk [vmem:[#allocation2 + $0x8] sm:$0xff] %vm1485_vm6, %v3336_v17  ;;  %v5148_v17 = vld [vmem:[%s7239_s23 + $0x4] ss:$0 sm:$0xff] }
 0xd45   : > { %v3344_v19 = vld [vmem:[#allocation2 + $0x8] sm:$0xff] }
 0xd46   : > { %v3345_v31 = vpack.c.bf16 %v3344_v19, %v3343_v18 }
 0xd48   : > { %5567 = vmatmul.mubr.msk.bf16.vlgmr.msra.gmra.mxu0 %vm908_vm0, %v3345_v31 }
 0xe08   : > { %v3406_v21 = vpop.f32.mrf.mxu0 }
 0xe09   : > { %v3407_v22 = vadd.f32 %v5144_v20, %v3406_v21 }
 0xe0a   : > { %v5568_v24 = vpop.f32.mrf.mxu0 }
 0xe0b   : > { %v3413_v25 = vadd.f32 %v3407_v22, %v6589_v50  ;;  %v5789_v50 = vld [vmem:[%s7231_s15 + $0x8] sm:$0xff]  }
 0xe0c   : > { %v3409_v26 = vpop.f32.mrf.mxu0  ;;  %5578 = vmatprep.subr.bf16.mxu0 %v5789_v50 }
 0xe0d   : > { %v3410_v32 = vadd.f32 %v5144_v20, %v3409_v26  ;;  %v3417_v27 = vsel %vm908_vm0, %v3413_v25, 0.0  ;;  %5579 = vmatpush3.bf16.msra.mxu0 %v5789_v50  ;;  %v5149_v20 = vld [vmem:[%s7239_s23 + $0x5] ss:$0 sm:$0xff] }
 0xe0e   : > { %3418 = vadd.xlane.f32.xlu0 %v3417_v27  ;;  %v5569_v28 = vpop.f32.mrf.mxu0  ;;  %5580 = vmatprep.subr.bf16.mxu0 %v5790_v33 }
 0xe0f   : > { %v3414_v39 = vadd.f32 %v3410_v32, %v6591_v51  ;;  %v3525_v51 = vld [vmem:[%s892_s6 + $0x10] sm:$0xff]  ;;  %v5150_v32 = vld [vmem:[%s7353_s14] ss:$0 sm:$0xff]  ;;  %s4843_s6 = sand.u32 1, %s6216_s9   ;;  %s6051_s9 = smov [#allocation5]  }
 0xe10   : > { %v3532_v37 = vcombine.high %v3525_v51, %v3525_v51  ;;  %v3534_v38 = vcombine.low %v3524_v30, %v3525_v51  ;;  %s7098_s20 = scalar_lea.sflag [#allocation6], %s4843_s6 }
 0xe11   : > { %v3420_v29 = vsel %vm908_vm0, %v3414_v39, 0.0  ;;  %5581 = vmatpush3.bf16.msra.mxu0 %v5790_v33 }
 0xe12   : > { %3421 = vadd.xlane.f32.xlu1 %v3420_v29  ;;  %v3535_v41 = vcombine.low %v3532_v37, %v3526_v36  ;;  %v3539_v44 = vpack.c.bf16 %v3534_v38, %v3533_v40  ;;  %5592 = vmatprep.subr.bf16.mxu0 %v6034_v15 }
 0xe14   : > { %v3540_v42 = vpack.c.bf16 %v3535_v41, %v3535_v41  ;;  %5582 = vmatprep.mubr.msk.bf16.mxu0 %vm908_vm0, %v3539_v44 }
 0xe16   : > { %5583 = vmatmul.mubr.msk.bf16.vlgmr.msra.gmra.mxu0 %vm908_vm0, %v3540_v42 }
 0xe17   : > { %5594 = vmatprep.mubr.msk.bf16.mxu0 %vm6035_vm1, %v6034_v15 }
 0xe97   : > { %v3419_v43 = vpop.xlane.xlu0 %3418 }
 0xe98   : > { %v3423_v45 = vmul.f32 0.03125, %v3419_v43 }
 0xe9a   : > { %v3425_v46 = vsub.f32 %v3413_v25, %v3423_v45 }
 0xe9b   : > { %v3422_v47 = vpop.xlane.xlu1 %3421 }
 0xe9c   : > { %v3424_v48 = vmul.f32 0.03125, %v3422_v47  ;;  %v3427_v49 = vmul.f32 %v3425_v46, %v3425_v46 }
 0xe9e   : > { %v3426_v52 = vsub.f32 %v3414_v39, %v3424_v48  ;;  %v3429_v53 = vsel %vm908_vm0, %v3427_v49, 0.0 }
 0xe9f   : > { %3430 = vadd.xlane.f32.xlu0 %v3429_v53 }
 0xea0   : > { %v3428_v54 = vmul.f32 %v3426_v52, %v3426_v52 }
 0xea2   : > { %v3432_v55 = vsel %vm908_vm0, %v3428_v54, 0.0 }
 0xea3   : > { %3433 = vadd.xlane.f32.xlu0 %v3432_v55 }
 0xed6   : > { %v5584_v58 = vpop.f32.mrf.mxu0 }
 0xed7   : > { %v3613_v0 = vadd.f32 %v5584_v58, %v5154_v59 }
 0xed8   : > { %v3604_v60 = vpop.f32.mrf.mxu0 }
 0xed9   : > { %v3605_v35 = vadd.f32 %v5154_v59, %v3604_v60  ;;  %v3623_v5 = vcombine.high %v3613_v0, %v3613_v0 }
 0xeda   : > { %v5585_v61 = vpop.f32.mrf.mxu0 }
 0xedb   : > { %v3621_v62 = vcombine.high %v3605_v35, %v3605_v35 }
 0xedc   : > { %v3607_v63 = vpop.f32.mrf.mxu0 }
 0xedd   : > { %v3629_v1 = vcombine.low %v3605_v35, %v3621_v62  ;;  %v3608_v2 = vadd.f32 %v5154_v59, %v3607_v63 }
 0xedf   : > { %v3622_v3 = vcombine.high %v3608_v2, %v3608_v2  ;;  %v6820_v4 = vpack.c.bf16 %v3608_v2, %v3629_v1 }
 0xee1   : > { %v3630_v6 = vcombine.low %v3622_v3, %v3613_v0  ;;  %3749 = vrot.lane.b32.xlu0 %v6820_v4, %s7341_s24  ;;  %v3639_v26 = vsel %vm1025_vm2, %v6820_v4, 0 }
 0xee3   : > { %v6824_v7 = vpack.c.bf16 %v3623_v5, %v3630_v6 }
 0xee5   : > { %3981 = vrot.lane.b32.xlu0 %v6820_v4, %s7330_s8 }
 0xee9   : > { %4210 = vrot.lane.b32.xlu0 %v6824_v7, %s7341_s24 }
 0xeed   : > { %4326 = vrot.lane.b32.xlu0 %v6824_v7, %s7329_s2 }
 0xef1   : > { %4442 = vrot.lane.b32.xlu0 %v6824_v7, %s7330_s8 }
 0xf28   : > { %v3431_v8 = vpop.xlane.xlu0 %3430 }
 0xf29   : > { %v3435_v9 = vmul.f32 0.03125, %v3431_v8 }
 0xf2b   : > { %v3437_v10 = vadd.f32 1e-05, %v3435_v9 }
 0xf2c   : > { %v3434_v11 = vpop.xlane.xlu0 %3433 }
 0xf2d   : > { %5876 = vrsqrt.f32 %v3437_v10  ;;  %v3436_v12 = vmul.f32 0.03125, %v3434_v11 }
 0xf2f   : > { %v3438_v13 = vadd.f32 1e-05, %v3436_v12 }
 0xf31   : > { %5878 = vrsqrt.f32 %v3438_v13 }
 0xf3a   : > { %v5877_v14 = vpop.eup %5876 }
 0xf3b   : > { %v3441_v16 = vmul.f32 %v5877_v14, %v3425_v46  ;;  %v4102_v46 = vsel %vm1025_vm2, %v6824_v7, 0 }
 0xf3d   : > { %v3447_v31 = vmul.f32 %v5148_v17, %v3441_v16 }
 0xf3e   : > { %v5879_v18 = vpop.eup %5878 }
 0xf3f   : > { %v3442_v19 = vmul.f32 %v5879_v18, %v3426_v52  ;;  %v6840_v22 = vadd.f32 %v5149_v20, %v3447_v31 }
 0xf41   : > { %v3448_v21 = vmul.f32 %v5148_v17, %v3442_v19 }
 0xf43   : > { %v6842_v24 = vadd.f32 %v5149_v20, %v3448_v21 }
 0xf45   : > { %v3455_v25 = vpack.c.bf16 %v6842_v24, %v6840_v22 }
 0xf47   : > { %5575 = vmatmul.mubr.msk.bf16.vlgmr.msra.gmra.mxu1 %vm908_vm0, %v3455_v25 }
 0xf48   : > { %5587 = vmatpush3.bf16.xpose.msra.mxu1 %v3639_v26  ;;  %5588 = vmatprep.mubr.msk.bf16.mxu1 %vm6035_vm1, %v6034_v15 }
 0xf49   : > { %5598 = vmatprep.subr.bf16.mxu1 %v6034_v15 }
 0xf53   : > { %v3750_v33 = vpop.permute.xlu0 %3749 }
 0xf54   : > { %v3755_v36 = vsel %vm1025_vm2, %v3750_v33, 0 }
 0xf57   : > { %v3982_v44 = vpop.permute.xlu0 %3981 }
 0xf58   : > { %v3987_v43 = vsel %vm1025_vm2, %v3982_v44, 0 }
 0xf5b   : > { %v4211_v47 = vpop.permute.xlu0 %4210 }
 0xf5c   : > { %v4216_v48 = vsel %vm1025_vm2, %v4211_v47, 0 }
 0xf5f   : > { %v4327_v49 = vpop.permute.xlu0 %4326 }
 0xf60   : > { %v4332_v53 = vsel %vm1025_vm2, %v4327_v49, 0 }
 0xf63   : > { %v4443_v54 = vpop.permute.xlu0 %4442 }
 0xf64   : > { %v4448_v56 = vsel %vm1025_vm2, %v4443_v54, 0 }
0x1007   : > { %v3516_v27 = vpop.f32.mrf.mxu1 }
0x1008   : > { %v3517_v28 = vadd.f32 %v5150_v32, %v3516_v27 }
0x1009   : > { %v5576_v39 = vpop.f32.mrf.mxu1 }
0x100a   : > { %v3625_v29 = vmul.f32 0.35355338, %v3517_v28 }
0x100b   : > { %v3519_v50 = vpop.f32.mrf.mxu1 }
0x100c   : > { %v3627_v34 = vpack.c.bf16 %v3625_v29, %v3625_v29  ;;  %v3520_v51 = vadd.f32 %v5150_v32, %v3519_v50 }
0x100d   : > { %v5577_v30 = vpop.f32.mrf.mxu1 }
0x100e   : > { %3747 = vrot.lane.b32.xlu1 %v3627_v34, %s7341_s24  ;;  %5589 = vmatmul.mubr.msk.bf16.vlgmr.msra.gmra.mxu1 %vm1025_vm2, %v3627_v34  ;;  %v3626_v23 = vmul.f32 0.35355338, %v3520_v51 }
0x100f   : > { %5599 = vmatpush3.bf16.xpose.msra.mxu1 %v3755_v36  ;;  %5600 = vmatprep.mubr.msk.bf16.mxu1 %vm6035_vm1, %v6034_v15 }
0x1010   : > { %5610 = vmatprep.subr.bf16.mxu1 %v6034_v15  ;;  %v3628_v37 = vpack.c.bf16 %v3626_v23, %v3626_v23 }
0x1012   : > { %3865 = vrot.lane.b32.xlu1 %v6820_v4, %s7329_s2 }
0x1016   : > { %3863 = vrot.lane.b32.xlu1 %v3627_v34, %s7329_s2 }
0x101a   : > { %3979 = vrot.lane.b32.xlu1 %v3627_v34, %s7330_s8 }
0x101e   : > { %4208 = vrot.lane.b32.xlu1 %v3628_v37, %s7341_s24 }
0x1022   : > { %4324 = vrot.lane.b32.xlu1 %v3628_v37, %s7329_s2 }
0x1026   : > { %4440 = vrot.lane.b32.xlu1 %v3628_v37, %s7330_s8  ;;  %s6987_s8 = scalar_lea.vmem [#allocation7], %s6442_s3 }
0x1080   : > { %v3748_v38 = vpop.permute.xlu1 %3747 }
0x1081   : > { %5601 = vmatmul.mubr.msk.bf16.vlgmr.msra.gmra.mxu1 %vm1025_vm2, %v3748_v38 }
0x1082   : > { %5612 = vmatprep.mubr.msk.bf16.mxu1 %vm6035_vm1, %v6034_v15 }
0x1084   : > { %v3866_v40 = vpop.permute.xlu1 %3865 }
0x1085   : > { %v3871_v41 = vsel %vm1025_vm2, %v3866_v40, 0 }
0x1086   : > { %5611 = vmatpush3.bf16.xpose.msra.mxu1 %v3871_v41 }
0x1087   : > { %5622 = vmatprep.subr.bf16.mxu1 %v6034_v15 }
0x1088   : > { %v3864_v42 = vpop.permute.xlu1 %3863 }
0x108c   : > { %v3980_v45 = vpop.permute.xlu1 %3979 }
0x108d   : > { %5613 = vmatmul.mubr.msk.bf16.vlgmr.msra.gmra.mxu1 %vm1025_vm2, %v3864_v42 }
0x108e   : > { %5623 = vmatpush3.bf16.xpose.msra.mxu1 %v3987_v43  ;;  %5624 = vmatprep.mubr.msk.bf16.mxu1 %vm6035_vm1, %v6034_v15 }
0x108f   : > { %5634 = vmatprep.subr.bf16.mxu1 %v6034_v15 }
0x1090   : > { %v4209_v52 = vpop.permute.xlu1 %4208 }
0x1094   : > { %v4325_v55 = vpop.permute.xlu1 %4324 }
0x1095   : > { %5625 = vmatmul.mubr.msk.bf16.vlgmr.msra.gmra.mxu1 %vm1025_vm2, %v3980_v45 }
0x1096   : > { %5635 = vmatpush3.bf16.xpose.msra.mxu1 %v4102_v46  ;;  %5636 = vmatprep.mubr.msk.bf16.mxu1 %vm6035_vm1, %v6034_v15 }
0x1097   : > { %5646 = vmatprep.subr.bf16.mxu1 %v6034_v15 }
0x1098   : > { %v4441_v57 = vpop.permute.xlu1 %4440 }
0x109d   : > { %5637 = vmatmul.mubr.msk.bf16.vlgmr.msra.gmra.mxu1 %vm1025_vm2, %v3628_v37 }
0x109e   : > { %5647 = vmatpush3.bf16.xpose.msra.mxu1 %v4216_v48  ;;  %5648 = vmatprep.mubr.msk.bf16.mxu1 %vm6035_vm1, %v6034_v15 }
0x109f   : > { %5658 = vmatprep.subr.bf16.mxu1 %v6034_v15 }
0x10a5   : > { %5649 = vmatmul.mubr.msk.bf16.vlgmr.msra.gmra.mxu1 %vm1025_vm2, %v4209_v52 }
0x10a6   : > { %5659 = vmatpush3.bf16.xpose.msra.mxu1 %v4332_v53  ;;  %5660 = vmatprep.mubr.msk.bf16.mxu1 %vm6035_vm1, %v6034_v15 }
0x10a7   : > { %5670 = vmatprep.subr.bf16.mxu1 %v6034_v15 }
0x10ad   : > { %5661 = vmatmul.mubr.msk.bf16.vlgmr.msra.gmra.mxu1 %vm1025_vm2, %v4325_v55 }
0x10ae   : > { %5671 = vmatpush3.bf16.xpose.msra.mxu1 %v4448_v56  ;;  %5672 = vmatprep.mubr.msk.bf16.mxu1 %vm6035_vm1, %v6034_v15 }
0x10af   : > { %5682 = vmatprep.subr.bf16.mxu1 %v6034_v15 }
0x10b5   : > { %5673 = vmatmul.mubr.msk.bf16.vlgmr.msra.gmra.mxu1 %vm1025_vm2, %v4441_v57 }
0x10b6   : > { %5686 = vmatprep.mubr.msk.bf16.mxu1 %vm6035_vm1, %v6034_v15 }
0x10ce   : > { %v3675_v58 = vpop.f32.mrf.mxu1 }
0x10cf   : > { %v3682_v59 = vsel %vm3681_vm9, %v3675_v58, -inf }
0x10d0   : > { %3683 = vmax.xlane.f32.xlu0 %v3682_v59  ;;  %v5590_v60 = vpop.f32.mrf.mxu1 }
0x10d2   : > { %v3678_v35 = vpop.f32.mrf.mxu1 }
0x10d4   : > { %v5591_v61 = vpop.f32.mrf.mxu1 }
0x10e6   : > { %3696 = vrot.lane.b32.xlu0 %v6820_v4, %s7328_s29 }
0x1141   : > { %v3791_v62 = vpop.f32.mrf.mxu1 }
0x1142   : > { %v3797_v63 = vsel %vm3681_vm9, %v3791_v62, -inf }
0x1143   : > { %3798 = vmax.xlane.f32.xlu1 %v3797_v63  ;;  %v5602_v0 = vpop.f32.mrf.mxu1 }
0x1145   : > { %v3794_v1 = vpop.f32.mrf.mxu1 }
0x1147   : > { %v5603_v2 = vpop.f32.mrf.mxu1 }
0x114d   : > { %v3907_v3 = vpop.f32.mrf.mxu1 }
0x114e   : > { %v3913_v5 = vsel %vm3681_vm9, %v3907_v3, -inf }
0x114f   : > { %3914 = vmax.xlane.f32.xlu0 %v3913_v5  ;;  %v5614_v6 = vpop.f32.mrf.mxu1 }
0x1151   : > { %v3910_v8 = vpop.f32.mrf.mxu1 }
0x1153   : > { %v5615_v9 = vpop.f32.mrf.mxu1 }
0x1154   : > { %3810 = vrot.lane.b32.xlu1 %v6820_v4, %s7327_s10 }
0x1155   : > { %v4023_v10 = vpop.f32.mrf.mxu1 }
0x1156   : > { %v4029_v11 = vsel %vm3681_vm9, %v4023_v10, -inf }
0x1157   : > { %4030 = vmax.xlane.f32.xlu0 %v4029_v11  ;;  %v5626_v12 = vpop.f32.mrf.mxu1 }
0x1159   : > { %v3684_v13 = vpop.xlane.xlu0 %3683  ;;  %v4026_v14 = vpop.f32.mrf.mxu1 }
0x115a   : > { %v3685_v40 = vsub.f32 %v3675_v58, %v3684_v13 }
0x115b   : > { %v5627_v16 = vpop.f32.mrf.mxu1 }
0x115c   : > { %v3686_v41 = vmul.f32 1.442695, %v3685_v40 }
0x115d   : > { %v3697_v17 = vpop.permute.xlu0 %3696  ;;  %v4138_v18 = vpop.f32.mrf.mxu1 }
0x115e   : > { %v3703_v19 = vsel %vm3701_vm10, %v3697_v17, 0  ;;  %v4144_v31 = vsel %vm3681_vm9, %v4138_v18, -inf  ;;  %5880 = vpow2.f32 %v3686_v41 }
0x115f   : > { %5593 = vmatpush3.bf16.msra.mxu0 %v3703_v19  ;;  %4145 = vmax.xlane.f32.xlu0 %v4144_v31  ;;  %v5638_v20 = vpop.f32.mrf.mxu1 }
0x1160   : > { %5604 = vmatprep.subr.bf16.mxu0 %v6034_v15 }
0x1161   : > { %v4141_v21 = vpop.f32.mrf.mxu1 }
0x1163   : > { %v5639_v25 = vpop.f32.mrf.mxu1 }
0x1165   : > { %v4252_v26 = vpop.f32.mrf.mxu1 }
0x1166   : > { %v4258_v51 = vsel %vm3681_vm9, %v4252_v26, -inf }
0x1167   : > { %v5650_v32 = vpop.f32.mrf.mxu1 }
0x1169   : > { %v4255_v27 = vpop.f32.mrf.mxu1 }
0x116b   : > { %v5651_v28 = vpop.f32.mrf.mxu1  ;;  %v5881_v44 = vpop.eup %5880 }
0x116c   : > { %v3688_v42 = vsel %vm3681_vm9, %v5881_v44, 0.0 }
0x116d   : > { %v4368_v39 = vpop.f32.mrf.mxu1 }
0x116e   : > { %v4374_v29 = vsel %vm3681_vm9, %v4368_v39, -inf }
0x116f   : > { %4375 = vmax.xlane.f32.xlu0 %v4374_v29  ;;  %v5662_v50 = vpop.f32.mrf.mxu1 }
0x1171   : > { %v4371_v33 = vpop.f32.mrf.mxu1 }
0x1173   : > { %v5663_v34 = vpop.f32.mrf.mxu1 }
0x1175   : > { %v6914_v36 = vpop.f32.mrf.mxu1 }
0x1176   : > { %v4490_v38 = vsel %vm3681_vm9, %v6914_v36, -inf }
0x1177   : > { %v5674_v30 = vpop.f32.mrf.mxu1 }
0x1178   : > { %4259 = vmax.xlane.f32.xlu1 %v4258_v51 }
0x1179   : > { %v4487_v23 = vpop.f32.mrf.mxu1 }
0x117b   : > { %v5675_v37 = vpop.f32.mrf.mxu1 }
0x117c   : > { %4491 = vmax.xlane.f32.xlu1 %v4490_v38 }
0x1185   : > { %3926 = vrot.lane.b32.xlu0 %v6820_v4, %s7343_s25 }
0x11a4   : > { %3689 = vadd.xlane.f32.xlu0 %v3688_v42 }
0x11cc   : > { %v3799_v43 = vpop.xlane.xlu1 %3798 }
0x11cd   : > { %v3800_v45 = vsub.f32 %v3791_v62, %v3799_v43 }
0x11cf   : > { %v3801_v46 = vmul.f32 1.442695, %v3800_v45 }
0x11d0   : > { %v3811_v58 = vpop.permute.xlu1 %3810 }
0x11d1   : > { %5882 = vpow2.f32 %v3801_v46  ;;  %v3816_v21 = vsel %vm3701_vm10, %v3811_v58, 0 }
0x11d8   : > { %v3915_v47 = vpop.xlane.xlu0 %3914 }
0x11d9   : > { %v3916_v48 = vsub.f32 %v3907_v3, %v3915_v47 }
0x11db   : > { %v3917_v49 = vmul.f32 1.442695, %v3916_v48 }
0x11dd   : > { %5884 = vpow2.f32 %v3917_v49 }
0x11de   : > { %v6922_v52 = vpop.eup %5882 }
0x11df   : > { %v3803_v53 = vsel %vm3681_vm9, %v6922_v52, 0.0 }
0x11e0   : > { %3804 = vadd.xlane.f32.xlu1 %v3803_v53  ;;  %v4031_v56 = vpop.xlane.xlu0 %4030 }
0x11e1   : > { %v4032_v57 = vsub.f32 %v4023_v10, %v4031_v56 }
0x11e3   : > { %v4033_v60 = vmul.f32 1.442695, %v4032_v57 }
0x11e5   : > { %5886 = vpow2.f32 %v4033_v60 }
0x11e8   : > { %v4146_v59 = vpop.xlane.xlu0 %4145 }
0x11e9   : > { %v4147_v35 = vsub.f32 %v4138_v18, %v4146_v59 }
0x11ea   : > { %v6926_v54 = vpop.eup %5884 }
0x11eb   : > { %v3919_v55 = vsel %vm3681_vm9, %v6926_v54, 0.0  ;;  %v4148_v62 = vmul.f32 1.442695, %v4147_v35 }
0x11ec   : > { %3920 = vadd.xlane.f32.xlu0 %v3919_v55 }
0x11ed   : > { %5888 = vpow2.f32 %v4148_v62 }
0x11f1   : > { %4158 = vrot.lane.b32.xlu1 %v6824_v7, %s7328_s29  ;;  %s5920_s29 = sshll.u32 %s6051_s9, 4  ;;  %s5921_s29 = int_to_ptr.vmem [resolvable:$false] %s5920_s29 }
0x11f2   : > { %v6934_v5 = vpop.eup %5886 }
0x11f3   : > { %v4035_v6 = vsel %vm3681_vm9, %v6934_v5, 0.0 }
0x11f8   : > { %v4376_v0 = vpop.xlane.xlu0 %4375 }
0x11f9   : > { %v4377_v1 = vsub.f32 %v4368_v39, %v4376_v0 }
0x11fa   : > { %v6938_v8 = vpop.eup %5888 }
0x11fb   : > { %v4378_v3 = vmul.f32 1.442695, %v4377_v1 }
0x11fc   : > { %v3927_v13 = vpop.permute.xlu0 %3926 }
0x11fd   : > { %v3932_v50 = vsel %vm3701_vm10, %v3927_v13, 0 }
0x1201   : > { %v4260_v61 = vpop.xlane.xlu1 %4259 }
0x1202   : > { %4042 = vrot.lane.b32.xlu0 %v6820_v4, %s7344_s4  ;;  %v4261_v63 = vsub.f32 %v4252_v26, %v4260_v61  ;;  %v4150_v4 = vsel %vm3681_vm9, %v6938_v8, 0.0 }
0x1204   : > { %v4262_v2 = vmul.f32 1.442695, %v4261_v63 }
0x1205   : > { %v4492_v16 = vpop.xlane.xlu1 %4491 }
0x1206   : > { %5890 = vpow2.f32 %v4262_v2  ;;  %v4493_v17 = vsub.f32 %v6914_v36, %v4492_v16 }
0x1207   : > { %5892 = vpow2.f32 %v4378_v3 }
0x1208   : > { %v4494_v31 = vmul.f32 1.442695, %v4493_v17 }
0x1213   : > { %v6942_v9 = vpop.eup %5890 }
0x1214   : > { %v4264_v10 = vsel %vm3681_vm9, %v6942_v9, 0.0  ;;  %v6946_v11 = vpop.eup %5892 }
0x1215   : > { %4036 = vadd.xlane.f32.xlu1 %v4035_v6  ;;  %v4380_v12 = vsel %vm3681_vm9, %v6946_v11, 0.0 }
0x1219   : > { %4151 = vadd.xlane.f32.xlu1 %v4150_v4 }
0x121d   : > { %4265 = vadd.xlane.f32.xlu1 %v4264_v10 }
0x1221   : > { %4381 = vadd.xlane.f32.xlu0 %v4380_v12 }
0x122d   : > { %v3690_v14 = vpop.xlane.xlu0 %3689 }
0x122e   : > { %5894 = vrcp.f32 %v3690_v14  ;;  %4271 = vrot.lane.b32.xlu1 %v6824_v7, %s7327_s10  ;;  %s5922_s10 = scalar_lea.vmem %s5921_s29, 512 }
0x122f   : > { %5896 = vpow2.f32 %v4494_v31 }
0x1237   : > { %4387 = vrot.lane.b32.xlu0 %v6824_v7, %s7343_s25  ;;  %s7354_s25 = sld [smem:[#allocation35_spill]] }
0x123b   : > { %v5895_v18 = vpop.eup %5894 }
0x123c   : > { %v3692_v19 = vmul.f32 %v5895_v18, %v5881_v44  ;;  %v6960_v25 = vpop.eup %5896 }
0x123d   : > { %v4496_v26 = vsel %vm3681_vm9, %v6960_v25, 0.0 }
0x123e   : > { %v3694_v20 = vpack.c.bf16 %v3692_v19, %v3692_v19 }
0x1240   : > { %5595 = vmatmul.mubr.msk.bf16.vlgmr.msra.gmra.mxu0 %vm3681_vm9, %v3694_v20 }
0x1241   : > { %5605 = vmatpush3.bf16.msra.mxu0 %v3816_v21  ;;  %5606 = vmatprep.mubr.msk.bf16.mxu0 %vm6035_vm1, %v6034_v15 }
0x1242   : > { %5616 = vmatprep.subr.bf16.mxu0 %v6034_v15 }
0x1252   : > { %4497 = vadd.xlane.f32.xlu1 %v4496_v26 }
0x1263   : > { %4503 = vrot.lane.b32.xlu1 %v6824_v7, %s7344_s4  ;;  %s7355_s4 = sld [smem:[#allocation19_spill]] }
0x1269   : > { %v3805_v32 = vpop.xlane.xlu1 %3804  ;;  %s4882_s12 = sshll.u32 %s7355_s4, 4  ;;  %s7096_s12 = int_to_ptr.vmem [resolvable:$true] %s4882_s12 }
0x126a   : > { %5898 = vrcp.f32 %v3805_v32  ;;  %s5916_s1 = scalar_lea.vmem %s7096_s12, 256  ;;  %p5923_p0 = scmp.lt.s32.totalorder %s7096_s12, %s5921_s29 }
0x126b   : > { %p5917_p11 = scmp.ne.s32.totalorder %s7096_s12, %s5916_s1  ;;  %p5924_p1 = scmp.lt.s32.totalorder %s5922_s10, %s5916_s1 }
0x126d   : > { %v4159_v51 = vpop.permute.xlu1 %4158  ;;  %p5918_p12 = pnand %p5917_p11, %p6235_p5  ;;  %p5925_p2 = por %p5924_p1, %p5923_p0 }
0x126e   : > { %v4164_v48 = vsel %vm3701_vm10, %v4159_v51, 0 }
0x126f   : > { %p5919_p13 = pneg %p5918_p12 }
0x1271   : > { %p5926_p3 = pnand %p5925_p2, %p5919_p13 }
0x1275   : > { %v3921_v27 = vpop.xlane.xlu0 %3920 }
0x1276   : > { %5900 = vrcp.f32 %v3921_v27 }
0x1277   : > { %v5899_v28 = vpop.eup %5898 }
0x1278   : > { %v3807_v39 = vmul.f32 %v5899_v28, %v6922_v52 }
0x1279   : > { %v4043_v34 = vpop.permute.xlu0 %4042 }
0x127a   : > { %v3809_v29 = vpack.c.bf16 %v3807_v39, %v3807_v39  ;;  %v4048_v30 = vsel %vm3701_vm10, %v4043_v34, 0  ;;  %v3808_v40 = vadd.f32 %v3807_v39, %v3692_v19 }
0x127c   : > { %5607 = vmatmul.mubr.msk.bf16.vlgmr.msra.gmra.mxu0 %vm3681_vm9, %v3809_v29 }
0x127d   : > { %5617 = vmatpush3.bf16.msra.mxu0 %v3932_v50  ;;  %5618 = vmatprep.mubr.msk.bf16.mxu0 %vm6035_vm1, %v6034_v15 }
0x127e   : > { %5628 = vmatprep.subr.bf16.mxu0 %v6034_v15 }
0x1283   : > { %v5901_v33 = vpop.eup %5900 }
0x1284   : > { %v3923_v7 = vmul.f32 %v5901_v33, %v6926_v54 }
0x1286   : > { %v3925_v36 = vpack.c.bf16 %v3923_v7, %v3923_v7  ;;  %v3924_v44 = vadd.f32 %v3923_v7, %v3808_v40 }
0x1288   : > { %5619 = vmatmul.mubr.msk.bf16.vlgmr.msra.gmra.mxu0 %vm3681_vm9, %v3925_v36 }
0x1289   : > { %5629 = vmatpush3.bf16.msra.mxu0 %v4048_v30  ;;  %5630 = vmatprep.mubr.msk.bf16.mxu0 %vm6035_vm1, %v6034_v15 }
0x128a   : > { %5640 = vmatprep.subr.bf16.mxu0 %v6034_v15 }
0x129e   : > { %v4037_v23 = vpop.xlane.xlu1 %4036 }
0x129f   : > { %5902 = vrcp.f32 %v4037_v23 }
0x12a2   : > { %v4152_v37 = vpop.xlane.xlu1 %4151 }
0x12a3   : > { %5904 = vrcp.f32 %v4152_v37 }
0x12a6   : > { %v4266_v38 = vpop.xlane.xlu1 %4265 }
0x12a7   : > { %5906 = vrcp.f32 %v4266_v38 }
0x12aa   : > { %v4382_v47 = vpop.xlane.xlu0 %4381  ;;  %v4272_v54 = vpop.permute.xlu1 %4271 }
0x12ab   : > { %5908 = vrcp.f32 %v4382_v47  ;;  %v4277_v57 = vsel %vm3701_vm10, %v4272_v54, 0 }
0x12ac   : > { %v5903_v41 = vpop.eup %5902 }
0x12ad   : > { %v4039_v42 = vmul.f32 %v5903_v41, %v6934_v5  ;;  %v5796_v41 = vld [vmem:[%s7233_s17 + $0x8] sm:$0xff]  }
0x12ae   : > { %v4388_v59 = vpop.permute.xlu0 %4387  ;;  %5683 = vmatpush3.bf16.msra.mxu1 %v5796_v41 }
0x12af   : > { %v4040_v43 = vadd.f32 %v4039_v42, %v3924_v44  ;;  %v4041_v45 = vpack.c.bf16 %v4039_v42, %v4039_v42  ;;  %v4393_v61 = vsel %vm3701_vm10, %v4388_v59, 0  ;;  %v5797_v44 = vld [vmem:[%s7233_s17] sm:$0xff]   ;;  %5684 = vmatprep.subr.bf16.mxu1 %v6034_v15 }
0x12b0   : > { %v5905_v46 = vpop.eup %5904 }
0x12b1   : > { %5631 = vmatmul.mubr.msk.bf16.vlgmr.msra.gmra.mxu0 %vm3681_vm9, %v4041_v45  ;;  %v4095_v49 = vmul.f32 0.25, %v4040_v43  ;;  %v4154_v52 = vmul.f32 %v5905_v46, %v6938_v8 }
0x12b2   : > { %5641 = vmatpush3.bf16.msra.mxu0 %v4164_v48  ;;  %5642 = vmatprep.mubr.msk.bf16.mxu0 %vm6035_vm1, %v6034_v15 }
0x12b3   : > { %5652 = vmatprep.subr.bf16.mxu0 %v6034_v15  ;;  %v4096_v53 = vsel %vm3681_vm9, %v4095_v49, 0.0  ;;  %v4156_v55 = vpack.c.bf16 %v4154_v52, %v4154_v52  ;;  %5685 = vmatpush3.bf16.msra.mxu1 %v5797_v44 }
0x12b4   : > { %4097 = vst [vmem:[%s6987_s8] sm:$0xff] %v4096_v53  ;;  %v5907_v56 = vpop.eup %5906  ;;  %5698 = vmatprep.subr.bf16.mxu1 %v6034_v15 }
0x12b5   : > { %v4268_v58 = vmul.f32 %v5907_v56, %v6942_v9 }
0x12b7   : > { %v4270_v60 = vpack.c.bf16 %v4268_v58, %v4268_v58  ;;  %v4269_v3 = vadd.f32 %v4268_v58, %v4154_v52  ;;  %v5176_v58 = vld [vmem:[%s7234_s18] ss:$0 sm:$0xff] }
0x12b8   : > { %v5909_v35 = vpop.eup %5908 }
0x12b9   : > { %5643 = vmatmul.mubr.msk.bf16.vlgmr.msra.gmra.mxu0 %vm3681_vm9, %v4156_v55  ;;  %v4384_v62 = vmul.f32 %v5909_v35, %v6946_v11 }
0x12ba   : > { %5653 = vmatpush3.bf16.msra.mxu0 %v4277_v57  ;;  %5654 = vmatprep.mubr.msk.bf16.mxu0 %vm6035_vm1, %v6034_v15 }
0x12bb   : > { %5664 = vmatprep.subr.bf16.mxu0 %v6034_v15  ;;  %v4386_v63 = vpack.c.bf16 %v4384_v62, %v4384_v62  ;;  %v4385_v6 = vadd.f32 %v4384_v62, %v4269_v3 }
0x12c1   : > { %5655 = vmatmul.mubr.msk.bf16.vlgmr.msra.gmra.mxu0 %vm3681_vm9, %v4270_v60 }
0x12c2   : > { %5665 = vmatpush3.bf16.msra.mxu0 %v4393_v61  ;;  %5666 = vmatprep.mubr.msk.bf16.mxu0 %vm6035_vm1, %v6034_v15 }
0x12c3   : > { %5676 = vmatprep.subr.bf16.mxu0 %v6034_v15 }
0x12c9   : > { %5667 = vmatmul.mubr.msk.bf16.vlgmr.msra.gmra.mxu0 %vm3681_vm9, %v4386_v63 }
0x12ca   : > { %5678 = vmatprep.mubr.msk.bf16.mxu0 %vm6035_vm1, %v6034_v15 }
0x12db   : > { %v4498_v0 = vpop.xlane.xlu1 %4497 }
0x12dc   : > { %5910 = vrcp.f32 %v4498_v0 }
0x12df   : > { %v4504_v1 = vpop.permute.xlu1 %4503 }
0x12e0   : > { %v4509_v2 = vsel %vm3701_vm10, %v4504_v1, 0 }
0x12e1   : > { %5677 = vmatpush3.bf16.msra.mxu0 %v4509_v2 }
0x12e2   : > { %5690 = vmatprep.subr.bf16.mxu0 %v6034_v15 }
0x12e9   : > { %v5911_v5 = vpop.eup %5910 }
0x12ea   : > { %v4500_v8 = vmul.f32 %v5911_v5, %v6960_v25 }
0x12ec   : > { %v4501_v4 = vadd.f32 %v4500_v8, %v4385_v6  ;;  %v4502_v9 = vpack.c.bf16 %v4500_v8, %v4500_v8 }
0x12ee   : > { %5679 = vmatmul.mubr.msk.bf16.vlgmr.msra.gmra.mxu0 %vm3681_vm9, %v4502_v9  ;;  %v4556_v10 = vmul.f32 0.25, %v4501_v4 }
0x12ef   : > { %5694 = vmatprep.mubr.msk.bf16.mxu0 %vm6035_vm1, %v6034_v15 }
0x12f0   : > { %v4557_v11 = vsel %vm3681_vm9, %v4556_v10, 0.0 }
0x12f1   : > { %5175 = vst [vmem:[%s6987_s8 + $0x8] sm:$0xff] %v4557_v11 }
0x1300   : > { %v3739_v12 = vpop.f32.mrf.mxu0 }
0x1301   : > { %3745 = vst.msk [vmem:[#allocation2] sm:$0xff] %vm1025_vm2, %v3739_v12 }
0x1302   : > { %v5596_v13 = vpop.f32.mrf.mxu0 }
0x1304   : > { %v3742_v14 = vpop.f32.mrf.mxu0 }
0x1305   : > { %v5799_v14 = vld [vmem:[%s7235_s19] sm:$0xff]  }
0x1306   : > { %v5597_v16 = vpop.f32.mrf.mxu0 }
0x1307   : > { %v5800_v16 = vld [vmem:[%s7237_s21 + $0x18] sm:$0xff]  }
0x133c   : > { %v3852_v17 = vpop.f32.mrf.mxu0 }
0x133d   : > { %3859 = vrot.lane.b32.xlu0 %v3852_v17, %s7346_s28 }
0x133e   : > { %v5608_v18 = vpop.f32.mrf.mxu0 }
0x1340   : > { %v3855_v19 = vpop.f32.mrf.mxu0 }
0x1342   : > { %v5609_v31 = vpop.f32.mrf.mxu0 }
0x1348   : > { %v3968_v20 = vpop.f32.mrf.mxu0 }
0x1349   : > { %3975 = vrot.lane.b32.xlu0 %v3968_v20, %s7347_s30 }
0x134a   : > { %v5620_v21 = vpop.f32.mrf.mxu0 }
0x134c   : > { %v3971_v25 = vpop.f32.mrf.mxu0 }
0x134e   : > { %v5621_v26 = vpop.f32.mrf.mxu0 }
0x1371   : > { %v4084_v32 = vpop.f32.mrf.mxu0 }
0x1372   : > { %4091 = vrot.lane.b32.xlu0 %v4084_v32, %s7334_s5  ;;  %v5180_v32 = vld [vmem:[%s7239_s23 + $0x6] ss:$0 sm:$0xff] }
0x1373   : > { %v5632_v27 = vpop.f32.mrf.mxu0 }
0x1375   : > { %v4087_v28 = vpop.f32.mrf.mxu0 }
0x1377   : > { %v5633_v39 = vpop.f32.mrf.mxu0 }
0x1379   : > { %v4200_v29 = vpop.f32.mrf.mxu0 }
0x137a   : > { %4206 = vst.msk [vmem:[#allocation2 + $0x8] sm:$0xff] %vm1025_vm2, %v4200_v29  ;;  %v5181_v29 = vld [vmem:[%s7239_s23 + $0x7] ss:$0 sm:$0xff] }
0x137b   : > { %v5644_v50 = vpop.f32.mrf.mxu0 }
0x137d   : > { %v4203_v33 = vpop.f32.mrf.mxu0 }
0x137f   : > { %v5645_v7 = vpop.f32.mrf.mxu0 }
0x1381   : > { %v4313_v34 = vpop.f32.mrf.mxu0 }
0x1382   : > { %4320 = vrot.lane.b32.xlu1 %v4313_v34, %s7346_s28 }
0x1383   : > { %v5656_v36 = vpop.f32.mrf.mxu0 }
0x1384   : > { %v5801_v36 = vld [vmem:[%s7237_s21 + $0x10] sm:$0xff]  }
0x1385   : > { %v4316_v30 = vpop.f32.mrf.mxu0 }
0x1386   : > { %v5802_v30 = vld [vmem:[%s7237_s21 + $0x8] sm:$0xff]  }
0x1387   : > { %v5657_v51 = vpop.f32.mrf.mxu0 }
0x1388   : > { %v5803_v51 = vld [vmem:[%s7237_s21] sm:$0xff]  }
0x1389   : > { %v4429_v23 = vpop.f32.mrf.mxu0 }
0x138a   : > { %4436 = vrot.lane.b32.xlu1 %v4429_v23, %s7347_s30  ;;  %v5182_v23 = vld [vmem:[%s7354_s25] ss:$0 sm:$0xff] }
0x138b   : > { %v5668_v37 = vpop.f32.mrf.mxu0 }
0x138d   : > { %v4432_v38 = vpop.f32.mrf.mxu0 }
0x138f   : > { %v5669_v40 = vpop.f32.mrf.mxu0 }
0x13ae   : > { %v4545_v42 = vpop.f32.mrf.mxu0 }
0x13af   : > { %v3860_v43 = vpop.permute.xlu0 %3859  ;;  %4552 = vrot.lane.b32.xlu1 %v4545_v42, %s7334_s5 }
0x13b0   : > { %3862 = vst.msk [vmem:[#allocation2] sm:$0xff] %vm1251_vm4, %v3860_v43  ;;  %v5680_v45 = vpop.f32.mrf.mxu0 }
0x13b2   : > { %v4548_v46 = vpop.f32.mrf.mxu0 }
0x13b4   : > { %v5681_v47 = vpop.f32.mrf.mxu0 }
0x13bb   : > { %v3976_v48 = vpop.permute.xlu0 %3975 }
0x13bc   : > { %3978 = vst.msk [vmem:[#allocation2] sm:$0xff] %vm1368_vm5, %v3976_v48 }
0x13e4   : > { %v4092_v49 = vpop.permute.xlu0 %4091 }
0x13e5   : > { %4094 = vst.msk [vmem:[#allocation2] sm:$0xff] %vm1485_vm6, %v4092_v49 }
0x13ec   : > { %v4560_v55 = vld [vmem:[#allocation2] sm:$0xff] }
0x13f4   : > { %v4321_v52 = vpop.permute.xlu1 %4320 }
0x13f5   : > { %4323 = vst.msk [vmem:[#allocation2 + $0x8] sm:$0xff] %vm1251_vm4, %v4321_v52 }
0x13fc   : > { %v4437_v53 = vpop.permute.xlu1 %4436 }
0x13fd   : > { %4439 = vst.msk [vmem:[#allocation2 + $0x8] sm:$0xff] %vm1368_vm5, %v4437_v53 }
0x1421   : > { %v4553_v54 = vpop.permute.xlu1 %4552 }
0x1422   : > { %4555 = vst.msk [vmem:[#allocation2 + $0x8] sm:$0xff] %vm1485_vm6, %v4553_v54 }
0x1429   : > { %v4561_v56 = vld [vmem:[#allocation2 + $0x8] sm:$0xff] }
0x142a   : > { %v4562_v57 = vpack.c.bf16 %v4561_v56, %v4560_v55 }
0x142c   : > { %5687 = vmatmul.mubr.msk.bf16.vlgmr.msra.gmra.mxu1 %vm908_vm0, %v4562_v57 }
0x142d   : > { %5706 = vmatprep.mubr.msk.bf16.mxu1 %vm6035_vm1, %v6034_v15  ;;  %5699 = vmatpush3.bf16.msra.mxu1 %v5800_v16 }
0x142e   : > { %5700 = vmatprep.subr.bf16.mxu1 %v6034_v15 }
0x1431   : > { %5701 = vmatpush3.bf16.msra.mxu1 %v5801_v36 }
0x1432   : > { %5702 = vmatprep.subr.bf16.mxu1 %v6034_v15 }
0x1435   : > { %5703 = vmatpush3.bf16.msra.mxu1 %v5802_v30 }
0x1436   : > { %5704 = vmatprep.subr.bf16.mxu1 %v6034_v15 }
0x1439   : > { %5705 = vmatpush3.bf16.msra.mxu1 %v5803_v51 }
0x14ec   : > { %v4623_v59 = vpop.f32.mrf.mxu1 }
0x14ed   : > { %v4624_v60 = vadd.f32 %v5176_v58, %v4623_v59 }
0x14ee   : > { %v5688_v35 = vpop.f32.mrf.mxu1 }
0x14ef   : > { %v4630_v61 = vadd.f32 %v4624_v60, %v6840_v22 }
0x14f0   : > { %v4626_v62 = vpop.f32.mrf.mxu1 }
0x14f1   : > { %v4627_v63 = vadd.f32 %v5176_v58, %v4626_v62  ;;  %v4634_v0 = vsel %vm908_vm0, %v4630_v61, 0.0 }
0x14f2   : > { %4635 = vadd.xlane.f32.xlu0 %v4634_v0  ;;  %v5689_v1 = vpop.f32.mrf.mxu1 }
0x14f3   : > { %v4631_v2 = vadd.f32 %v4627_v63, %v6842_v24  ;;  %v5798_v24 = vld [vmem:[%s7235_s19 + $0x8] sm:$0xff]  }
0x14f4   : > { %5691 = vmatpush3.bf16.msra.mxu0 %v5798_v24 }
0x14f5   : > { %v4637_v3 = vsel %vm908_vm0, %v4631_v2, 0.0  ;;  %5692 = vmatprep.subr.bf16.mxu0 %v6034_v15 }
0x14f6   : > { %4638 = vadd.xlane.f32.xlu1 %v4637_v3 }
0x14f8   : > { %5693 = vmatpush3.bf16.msra.mxu0 %v5799_v14 }
0x157b   : > { %v4636_v5 = vpop.xlane.xlu0 %4635 }
0x157c   : > { %v4640_v6 = vmul.f32 0.03125, %v4636_v5 }
0x157e   : > { %v4642_v8 = vsub.f32 %v4630_v61, %v4640_v6 }
0x157f   : > { %v4639_v4 = vpop.xlane.xlu1 %4638 }
0x1580   : > { %v4641_v9 = vmul.f32 0.03125, %v4639_v4  ;;  %v4644_v10 = vmul.f32 %v4642_v8, %v4642_v8 }
0x1582   : > { %v4643_v11 = vsub.f32 %v4631_v2, %v4641_v9  ;;  %v4646_v22 = vsel %vm908_vm0, %v4644_v10, 0.0 }
0x1583   : > { %4647 = vadd.xlane.f32.xlu0 %v4646_v22 }
0x1584   : > { %v4645_v12 = vmul.f32 %v4643_v11, %v4643_v11 }
0x1586   : > { %v4649_v13 = vsel %vm908_vm0, %v4645_v12, 0.0 }
0x1587   : > { %4650 = vadd.xlane.f32.xlu0 %v4649_v13 }
0x160c   : > { %v4648_v17 = vpop.xlane.xlu0 %4647 }
0x160d   : > { %v4652_v18 = vmul.f32 0.03125, %v4648_v17 }
0x160f   : > { %v4654_v19 = vadd.f32 1e-05, %v4652_v18 }
0x1610   : > { %v4651_v31 = vpop.xlane.xlu0 %4650 }
0x1611   : > { %5912 = vrsqrt.f32 %v4654_v19  ;;  %v4653_v20 = vmul.f32 0.03125, %v4651_v31 }
0x1613   : > { %v4655_v21 = vadd.f32 1e-05, %v4653_v20 }
0x1615   : > { %5914 = vrsqrt.f32 %v4655_v21 }
0x161e   : > { %v5913_v25 = vpop.eup %5912 }
0x161f   : > { %v4658_v26 = vmul.f32 %v5913_v25, %v4642_v8 }
0x1621   : > { %v4664_v28 = vmul.f32 %v5180_v32, %v4658_v26 }
0x1622   : > { %v5915_v27 = vpop.eup %5914 }
0x1623   : > { %v4659_v39 = vmul.f32 %v5915_v27, %v4643_v11  ;;  %v7066_v7 = vadd.f32 %v5181_v29, %v4664_v28 }
0x1625   : > { %v4665_v50 = vmul.f32 %v5180_v32, %v4659_v39 }
0x1627   : > { %v7064_v33 = vadd.f32 %v5181_v29, %v4665_v50 }
0x1629   : > { %v4672_v34 = vpack.c.bf16 %v7064_v33, %v7066_v7 }
0x162b   : > { %5695 = vmatmul.mubr.msk.bf16.vlgmr.msra.gmra.mxu0 %vm908_vm0, %v4672_v34 }
0x16eb   : > { %v4733_v37 = vpop.f32.mrf.mxu0 }
0x16ec   : > { %v4734_v40 = vadd.f32 %v5182_v23, %v4733_v37 }
0x16ed   : > { %v5696_v38 = vpop.f32.mrf.mxu0 }
0x16ee   : > { %v4740_v43 = vmax.f32 %v4734_v40, 0.0 }
0x16ef   : > { %v4736_v41 = vpop.f32.mrf.mxu0 }
0x16f0   : > { %v4737_v44 = vadd.f32 %v5182_v23, %v4736_v41 }
0x16f1   : > { %v5697_v42 = vpop.f32.mrf.mxu0 }
0x16f2   : > { %v4741_v15 = vmax.f32 %v4737_v44, 0.0 }
0x16f4   : > { %v4742_v45 = vpack.c.bf16 %v4741_v15, %v4740_v43 }
0x16f6   : > { %5707 = vmatmul.mubr.msk.bf16.vlgmr.msra.gmra.mxu1 %vm4775_vm11, %v4742_v45 }
0x16f7   : > { %5929 = shalt.err (!%p5926_p3)
}
0x16f8   : > { %s5930_s2 = scalar_lea.hbm %s7093_s0, 256  ;;  %s5934_s24 = scalar_lea.hbm %s7357_s26, 512 }
0x16f9   : > { %p5931_p4 = scmp.ne.s32.totalorder %s7093_s0, %s5930_s2  ;;  %p5935_p9 = scmp.lt.s32.totalorder %s7093_s0, %s7357_s26 }
0x16fa   : > { %p5936_p10 = scmp.lt.s32.totalorder %s5934_s24, %s5930_s2 }
0x16fb   : > { %p5932_p7 = pnand %p5931_p4, %p6235_p5 }
0x16fc   : > { %p5937_p11 = por %p5936_p10, %p5935_p9 }
0x16fd   : > { %p5933_p8 = pneg %p5932_p7 }
0x16ff   : > { %p5938_p12 = pnand %p5937_p11, %p5933_p8 }
0x1701   : > { %5941 = shalt.err (!%p5938_p12)
}
0x1702   : > { %s6052_s6 = smov 128   ;;  %s7358_s7 = sld [smem:[#allocation18_spill]] }
0x1703   : > { %s7359_s22 = sld [smem:[#allocation11_spill]] }
0x1704   : > { %5711 = dma.vmem_to_hbm [thread:$0]  (%p6235_p5), %s7096_s12, 256, %s7093_s0, %s7098_s20, %s6052_s6, %s6052_s6, %s7346_s28  }
0x1705   : > { %s7360_s29 = sld [smem:[#allocation38_spill]]  ;;  %s6053_s0 = smov [#allocation3]  }
0x1706   : > { %s7361_s24 = sld [smem:[#allocation40_spill]]  ;;  %s5946_s12 = sshll.u32 %s6053_s0, 4  ;;  %s5947_s12 = int_to_ptr.vmem [resolvable:$false] %s5946_s12 }
0x1708   : > { %s4866_s2 = sshll.u32 %s7358_s7, 4  ;;  %s5948_s7 = scalar_lea.vmem %s5947_s12, 512  ;;  %s7131_s2 = int_to_ptr.vmem [resolvable:$true] %s4866_s2 }
0x1709   : > { %s7362_s4 = sand.u32 1, %s7359_s22   ;;  %s5942_s14 = scalar_lea.vmem %s7131_s2, 256 }
0x170a   : > { %s4839_s13 = scalar_lea.sflag [#allocation4], %s7362_s4  ;;  %p5943_p13 = scmp.ne.s32.totalorder %s7131_s2, %s5942_s14 }
0x170b   : > { %s7128_s10 = scalar_lea.hbm %s7360_s29, %s7087_s27  ;;  %p5949_p2 = scmp.lt.s32.totalorder %s7131_s2, %s5947_s12 }
0x170c   : > { %s7137_s25 = scalar_lea.hbm %s7361_s24, %s7087_s27  ;;  %p5944_p0 = pnand %p5943_p13, %p6235_p5 }
0x170d   : > { %p5950_p3 = scmp.lt.s32.totalorder %s5948_s7, %s5942_s14 }
0x170e   : > { %p5945_p1 = pneg %p5944_p0 }
0x170f   : > { %p5951_p4 = por %p5950_p3, %p5949_p2 }
0x1711   : > { %p5952_p7 = pnand %p5951_p4, %p5945_p1 }
0x1713   : > { %5955 = shalt.err (!%p5952_p7)
}
0x1714   : > { %s5956_s27 = scalar_lea.hbm %s7128_s10, 256  ;;  %s5960_s9 = scalar_lea.hbm %s7360_s29, 512 }
0x1715   : > { %p5957_p8 = scmp.ne.s32.totalorder %s7128_s10, %s5956_s27  ;;  %p5961_p11 = scmp.lt.s32.totalorder %s7128_s10, %s7360_s29 }
0x1716   : > { %p5962_p12 = scmp.lt.s32.totalorder %s5960_s9, %s5956_s27 }
0x1717   : > { %p5958_p9 = pnand %p5957_p8, %p6235_p5 }
0x1718   : > { %p5963_p13 = por %p5962_p12, %p5961_p11 }
0x1719   : > { %p5959_p10 = pneg %p5958_p9 }
0x171b   : > { %p5964_p0 = pnand %p5963_p13, %p5959_p10 }
0x171d   : > { %5967 = shalt.err (!%p5964_p0)
}
0x171e   : > { %5710 = dma.vmem_to_hbm [thread:$0]  (%p6235_p5), %s7131_s2, 256, %s7128_s10, %s4839_s13, %s6052_s6, %s6052_s6, %s7346_s28  }
0x171f   : > { %s4898_s14 = sshll.u32 %s6987_s8, 4  ;;  %s6054_s0 = smov [#allocation7]   ;;  %s4899_s14 = int_to_ptr.vmem [resolvable:$true] %s4898_s14 }
0x1720   : > { %s5968_s4 = scalar_lea.vmem %s4899_s14, 256  ;;  %s5972_s12 = sshll.u32 %s6054_s0, 4  ;;  %s5973_s12 = int_to_ptr.vmem [resolvable:$false] %s5972_s12 }
0x1721   : > { %p5969_p1 = scmp.ne.s32.totalorder %s4899_s14, %s5968_s4  ;;  %s5974_s7 = scalar_lea.vmem %s5973_s12, 512 }
0x1722   : > { %p5975_p4 = scmp.lt.s32.totalorder %s4899_s14, %s5973_s12  ;;  %p5976_p7 = scmp.lt.s32.totalorder %s5974_s7, %s5968_s4 }
0x1723   : > { %p5970_p2 = pnand %p5969_p1, %p6235_p5 }
0x1724   : > { %p5977_p8 = por %p5976_p7, %p5975_p4 }
0x1725   : > { %p5971_p3 = pneg %p5970_p2 }
0x1727   : > { %p5978_p9 = pnand %p5977_p8, %p5971_p3 }
0x1729   : > { %5981 = shalt.err (!%p5978_p9)
}
0x172a   : > { %s5982_s13 = scalar_lea.hbm %s7137_s25, 256  ;;  %s5986_s2 = scalar_lea.hbm %s7361_s24, 512 }
0x172b   : > { %p5983_p10 = scmp.ne.s32.totalorder %s7137_s25, %s5982_s13  ;;  %p5987_p13 = scmp.lt.s32.totalorder %s7137_s25, %s7361_s24 }
0x172c   : > { %p5988_p0 = scmp.lt.s32.totalorder %s5986_s2, %s5982_s13 }
0x172d   : > { %p5984_p11 = pnand %p5983_p10, %p6235_p5 }
0x172e   : > { %p5989_p1 = por %p5988_p0, %p5987_p13 }
0x172f   : > { %p5985_p12 = pneg %p5984_p11 }
0x1731   : > { %p5990_p2 = pnand %p5989_p1, %p5985_p12 }
0x1733   : > { %5993 = shalt.err (!%p5990_p2)
}
0x1734   : > { %5712 = dma.vmem_to_hbm [thread:$0]  (%p6235_p5), %s4899_s14, 256, %s7137_s25, %s7098_s20, %s6052_s6, %s6052_s6, %s7346_s28  }
0x1735   : > { %s7363_s3 = sld [smem:[#allocation36_spill]]  ;;  %s7364_s5 = sshll.u32 %s7375_s11, 3 }
0x1736   : > { %s7365_s12 = sld [smem:[#allocation37_spill]] }
0x173b   : > { %v5191_v47 = vld [vmem:[%s7363_s3] ss:$0 sm:$0xff] }
0x173c   : > { %s898_s7 = scalar_lea.vmem %s7365_s12, %s7364_s5 }
0x17b6   : > { %v4813_v46 = vpop.f32.mrf.mxu1 }
0x17b7   : > { %v4820_v48 = vadd.f32 %v4813_v46, %v7066_v7 }
0x17b8   : > { %v5708_v49 = vpop.f32.mrf.mxu1 }
0x17b9   : > { %v4829_v52 = vadd.f32 %v5191_v47, %v4820_v48 }
0x17ba   : > { %v4816_v53 = vpop.f32.mrf.mxu1 }
0x17bb   : > { %4831 = vst.msk [vmem:[%s898_s7] sm:$0xff] %vm908_vm0, %v4829_v52  ;;  %v4821_v54 = vadd.f32 %v4816_v53, %v7064_v33 }
0x17bc   : > { %v5709_v55 = vpop.f32.mrf.mxu1 }
0x17bd   : > { %v4830_v56 = vadd.f32 %v5191_v47, %v4821_v54 }
0x17bf   : > { %4832 = vst.msk [vmem:[%s898_s7 + $0x8] sm:$0xff] %vm908_vm0, %v4830_v56 }
0x17c0 PF: > { %s7366_s28 = sld [smem:[#allocation13_spill]] }
0x17c1   : > { %s7367_s30 = sld [smem:[#allocation10_spill]] }
0x17c6   : > { %p5726_p5 = scmp.ge.s32.totalorder %s7366_s28, 2 }
0x17c7   : > { %s4921_s11 = sand.u32 1, %s7367_s30  }
0x17c8   : > { %p5717_p3 = pnand %p5726_p5, %p6239_p6  ;;  %s4922_s6 = scalar_lea.sflag [#allocation4], %s4921_s11 }
0x17ca   : > { %p5718_p4 = pneg %p5717_p3 }
0x17cc   : > { %6011 = dma.done.wait (%p5718_p4), %s4922_s6, 256  }
0x17cd   : > { %6013 = vsyncadd (%p5718_p4), %s4922_s6, 4294967040  ;;  %s7369_s25 = sadd.s32 4294967294, %s7366_s28  }
0x17ce   : > { %s4930_s14 = sand.u32 1, %s7369_s25  }
0x17cf   : > { %s4931_s13 = scalar_lea.sflag [#allocation6], %s4930_s14 }
0x17d0   : > { %6015 = dma.done.wait (%p5718_p4), %s4931_s13, 512  }
0x17d1   : > { %6017 = vsyncadd (%p5718_p4), %s4931_s13, 4294966784  ;;  %s7370_s30 = sld [smem:[#allocation14_spill]] }
0x17d2   : > { %s7371_s7 = sld [smem:[#allocation11_spill]] }
0x17d3   : > { %s7372_s4 = sld [smem:[#allocation12_spill]] }
0x17d4   : > { %s7373_s8 = sld [smem:[#allocation15_spill]] }
0x17d7   : > { %p41_p7 = scmp.ge.s32.totalorder %s7370_s30, 4  }
0x17d9   :  { %43 = sbr.rel (!%p41_p7) target bundleno = 27 (0x1b), region = 205 }
0x17de   :  { %4945 = vsyncpa [#allocation4], 1 }
0x17df   :  { %4947 = vsyncpa [#allocation4 + $0x1], 1 }
0x17e0   :  { %4948 = vsyncpa [#allocation6], 1 }
0x17e1   :  { %4950 = vsyncpa [#allocation6 + $0x1], 1 }

</bundles_post_ra>
